<compile_context>
chip_gen: v6e
topology: v6e:2x2x1
jax: 0.10.0
libtpu: 0.0.40
codegen_flags: <defaults>
</compile_context>

<pallas_src>
import jax
import jax.numpy as jnp
from jax.experimental import pallas as pl
from jax.experimental.pallas import tpu as pltpu


def _round_up(x, m):
    return ((x + m - 1) // m) * m


def _lane(d):
    return max(d, 128)


def _store_lane_dense(zw, b2_scalar, out_ref):
    # zw : (te, F) already ReLU'd and scaled by w2.  Reduce over F and lay the
    # te per-edge scores out as a (te//128, 128) lane-dense slab.
    tr = out_ref.shape[0]
    zw3 = zw.reshape(tr, 128, zw.shape[-1])        # leading-dim split (layout no-op)
    out_ref[...] = jnp.sum(zw3, axis=-1) + b2_scalar


def _mlp_edge_kernel_resident(src_ref, dst_ref, h_ref, w1s_ref, w1d_ref,
                              b1_ref, w2_ref, b2_ref, out_ref):
    # src_ref/dst_ref : (te, 1) int32    h_ref : (N, F)   (VMEM-resident)
    # w1s/w1d : (F, F)   b1/w2 : (1, F)  b2 : (1, 1) SMEM  out : (te//128, 128)
    te = src_ref.shape[0]
    n = h_ref.shape[0]
    node_iota = jax.lax.broadcasted_iota(jnp.int32, (te, n), 1)
    oh_src = (node_iota == src_ref[...]).astype(jnp.float32)   # (te, N) one-hot
    oh_dst = (node_iota == dst_ref[...]).astype(jnp.float32)
    h_all = h_ref[...]
    # Row gather done on the MXU (no HBM-materialized (E, F) intermediates).
    h_src = jnp.dot(oh_src, h_all, preferred_element_type=jnp.float32)
    h_dst = jnp.dot(oh_dst, h_all, preferred_element_type=jnp.float32)
    z = (jnp.dot(h_src, w1s_ref[...], preferred_element_type=jnp.float32)
         + jnp.dot(h_dst, w1d_ref[...], preferred_element_type=jnp.float32)
         + b1_ref[...])
    z = jnp.maximum(z, 0.0)                                    # ReLU
    zw = z * w2_ref[...]                                       # VPU 2nd layer (N=1)
    _store_lane_dense(zw, b2_ref[0, 0], out_ref)


def _mlp_edge_kernel_gathered(hs_ref, hd_ref, w1s_ref, w1d_ref, b1_ref,
                              w2_ref, b2_ref, out_ref):
    # Fallback path: hs/hd already gathered in the wrapper (large N).
    z = (jnp.dot(hs_ref[...], w1s_ref[...], preferred_element_type=jnp.float32)
         + jnp.dot(hd_ref[...], w1d_ref[...], preferred_element_type=jnp.float32)
         + b1_ref[...])
    z = jnp.maximum(z, 0.0)
    zw = z * w2_ref[...]
    _store_lane_dense(zw, b2_ref[0, 0], out_ref)


# Conservative per-grid-step working-set budget: fits v5e's ~16 MiB scoped
# default and leaves plenty of headroom on v6e (32 MiB) / v7x (64 MiB VMEM).
_VMEM_STEP_BUDGET_BYTES = 6 * 1024 * 1024
_RESIDENT_H_MAX_BYTES = 2 * 1024 * 1024   # lane-padded h footprint kept in VMEM
_RESIDENT_H_MAX_NODES = 2048              # one-hot gather flops scale with N


def _auto_tile_e(E, F, N, resident):
    if resident:
        # idx columns (lane-padded, double-buffered) + two (te, N) one-hots
        # + hs/hd/z/zw intermediates.
        per_row = 4 * (2 * 2 * 128 + 2 * _lane(N) + 4 * _lane(F))
    else:
        # double-buffered hs/hd input tiles + z/zw intermediates.
        per_row = 4 * (2 * 2 * _lane(F) + 2 * _lane(F))
    te = (_VMEM_STEP_BUDGET_BYTES // per_row) // 1024 * 1024
    return max(1024, min(te, 8192))


def mlp_predictor_scores(h, src_ids, dst_ids, w1, b1, w2, b2, *, tile_e=None):
    """Pallas-backed equivalent of MLPPredictor.forward(g, h).

    h        : (N, F)  float32 node features
    src_ids  : (E,)    int32 edge source node indices
    dst_ids  : (E,)    int32 edge destination node indices
    w1       : (2F, F) float32   (== torch W1.weight.T)
    b1       : (F,)    float32
    w2       : (F, 1)  float32   (== torch W2.weight.T)
    b2       : (1,)    float32
    returns  : (E,)    float32 edge scores
    """
    N, F = h.shape
    E = src_ids.shape[0]

    w1s = w1[:F, :]                      # (F, F) acts on h[src]
    w1d = w1[F:, :]                      # (F, F) acts on h[dst]
    b1_row = b1.reshape(1, F)
    w2_row = w2.reshape(1, F)
    b2_s = b2.reshape(1, 1)

    resident = (N * _lane(F) * 4 <= _RESIDENT_H_MAX_BYTES) and (N <= _RESIDENT_H_MAX_NODES)

    if tile_e is None:
        te = _auto_tile_e(E, F, N, resident)
    else:
        te = _round_up(max(int(tile_e), 1), 1024)
    te = min(te, _round_up(E, 1024))     # don't tile past the padded edge count
    e_pad = _round_up(E, te)
    pad = e_pad - E
    grid = (e_pad // te,)
    tr = te // 128                       # sublane rows of lane-dense out block

    src_p = jnp.pad(src_ids.astype(jnp.int32), (0, pad))
    dst_p = jnp.pad(dst_ids.astype(jnp.int32), (0, pad))

    out_shape = jax.ShapeDtypeStruct((e_pad // 128, 128), jnp.float32)
    out_spec = pl.BlockSpec((tr, 128), lambda i: (i, 0))
    const2d = lambda i: (0, 0)

    weight_specs = [
        pl.BlockSpec((F, F), const2d),                        # W1 src half (resident)
        pl.BlockSpec((F, F), const2d),                        # W1 dst half (resident)
        pl.BlockSpec((1, F), const2d),                        # b1 row      (resident)
        pl.BlockSpec((1, F), const2d),                        # W2 row      (resident)
        pl.BlockSpec(memory_space=pltpu.MemorySpace.SMEM),    # b2 scalar
    ]
    cparams = pltpu.CompilerParams(dimension_semantics=("parallel",))

    if resident:
        src_col = src_p.reshape(e_pad, 1)
        dst_col = dst_p.reshape(e_pad, 1)
        flops = 2 * e_pad * (2 * N * F + 2 * F * F + F)
        bytes_accessed = 4 * (3 * e_pad + N * F + 2 * F * F + 2 * F + 1)
        out = pl.pallas_call(
            _mlp_edge_kernel_resident,
            out_shape=out_shape,
            grid=grid,
            in_specs=[
                pl.BlockSpec((te, 1), lambda i: (i, 0)),       # src ids (pipelined)
                pl.BlockSpec((te, 1), lambda i: (i, 0)),       # dst ids (pipelined)
                pl.BlockSpec((N, F), const2d),                 # h table (resident)
            ] + weight_specs,
            out_specs=out_spec,
            compiler_params=cparams,
            cost_estimate=pl.CostEstimate(
                flops=flops, bytes_accessed=bytes_accessed, transcendentals=0),
        )(src_col, dst_col, h, w1s, w1d, b1_row, w2_row, b2_s)
    else:
        # TODO(synk): replace this XLA gather (2x (E,F) HBM intermediates) with
        # an in-kernel manual DMA gather from h kept in pl.ANY for large N.
        h_src = h[src_p]
        h_dst = h[dst_p]
        flops = 2 * e_pad * (2 * F * F + F)
        bytes_accessed = 4 * (2 * e_pad * F + e_pad + 2 * F * F + 2 * F + 1)
        out = pl.pallas_call(
            _mlp_edge_kernel_gathered,
            out_shape=out_shape,
            grid=grid,
            in_specs=[
                pl.BlockSpec((te, F), lambda i: (i, 0)),       # h_src tile (pipelined)
                pl.BlockSpec((te, F), lambda i: (i, 0)),       # h_dst tile (pipelined)
            ] + weight_specs,
            out_specs=out_spec,
            compiler_params=cparams,
            cost_estimate=pl.CostEstimate(
                flops=flops, bytes_accessed=bytes_accessed, transcendentals=0),
        )(h_src, h_dst, w1s, w1d, b1_row, w2_row, b2_s)

    return out.reshape(-1)[:E]           # .squeeze(1), drop padding


if __name__ == "__main__":
    # 64 nodes, h_feats=32, 3000 edges; tile_e=1024 -> 3 edge tiles
    # (exercises the pipelined grid, the lane-dense output, and padding).
    key = jax.random.PRNGKey(0)
    k_h, k_w1, k_b1, k_w2, k_b2, k_src, k_dst = jax.random.split(key, 7)

    num_nodes = 64
    h_feats = 32
    num_edges = 3000

    h = jax.random.normal(k_h, (num_nodes, h_feats), dtype=jnp.float32)
    src_ids = jax.random.randint(k_src, (num_edges,), 0, num_nodes, dtype=jnp.int32)
    dst_ids = jax.random.randint(k_dst, (num_edges,), 0, num_nodes, dtype=jnp.int32)

    # Parameters (deterministic init, Linear-like uniform bounds).
    bound1 = 1.0 / jnp.sqrt(2.0 * h_feats)
    w1 = jax.random.uniform(k_w1, (2 * h_feats, h_feats), jnp.float32, -bound1, bound1)
    b1 = jax.random.uniform(k_b1, (h_feats,), jnp.float32, -bound1, bound1)
    bound2 = 1.0 / jnp.sqrt(1.0 * h_feats)
    w2 = jax.random.uniform(k_w2, (h_feats, 1), jnp.float32, -bound2, bound2)
    b2 = jax.random.uniform(k_b2, (1,), jnp.float32, -bound2, bound2)

    scores = mlp_predictor_scores(h, src_ids, dst_ids, w1, b1, w2, b2, tile_e=1024)
    scores = jax.block_until_ready(scores)

    # Reference check in plain JAX (same math as the PyTorch module).
    x_ref = jnp.concatenate([h[src_ids], h[dst_ids]], axis=1)
    ref = (jnp.maximum(x_ref @ w1 + b1, 0.0) @ w2 + b2)[:, 0]
    assert scores.shape == (num_edges,)
    max_err = float(jnp.max(jnp.abs(scores - ref)))
    # Tolerance covers TPU matmul input-rounding differences between the
    # Pallas and XLA lowerings (both f32-accumulated).
    assert jnp.allclose(scores, ref, atol=2e-2, rtol=2e-2), max_err

    print("KERNEL_OK")
</pallas_src>

<mosaic_0001>
module attributes {stable_mosaic.version = 11 : i64} {
  func.func @_mlp_edge_kernel_resident(%arg0: i32, %arg1: memref<1024x1xi32, #tpu.memory_space<vmem>>, %arg2: memref<1024x1xi32, #tpu.memory_space<vmem>>, %arg3: memref<64x32xf32, #tpu.memory_space<vmem>>, %arg4: memref<32x32xf32, #tpu.memory_space<vmem>>, %arg5: memref<32x32xf32, #tpu.memory_space<vmem>>, %arg6: memref<1x32xf32, #tpu.memory_space<vmem>>, %arg7: memref<1x32xf32, #tpu.memory_space<vmem>>, %arg8: memref<1x1xf32, #tpu.memory_space<smem>>, %arg9: memref<8x128xf32, #tpu.memory_space<vmem>>) attributes {dimension_semantics = [#tpu.dimension_semantics<parallel>], iteration_bounds = array<i64: 3>, scalar_prefetch = 0 : i64, scratch_operands = 0 : i64, tpu.core_type = #tpu.core_type<tc>, window_params = [{transform_indices = @transform_0, window_bounds = array<i64: 1024, 1>}, {transform_indices = @transform_1, window_bounds = array<i64: 1024, 1>}, {pipeline_mode = #tpu.pipeline_mode<synchronous>, transform_indices = @transform_2, window_bounds = array<i64: 64, 32>}, {pipeline_mode = #tpu.pipeline_mode<synchronous>, transform_indices = @transform_3, window_bounds = array<i64: 32, 32>}, {pipeline_mode = #tpu.pipeline_mode<synchronous>, transform_indices = @transform_4, window_bounds = array<i64: 32, 32>}, {pipeline_mode = #tpu.pipeline_mode<synchronous>, transform_indices = @transform_5, window_bounds = array<i64: 1, 32>}, {pipeline_mode = #tpu.pipeline_mode<synchronous>, transform_indices = @transform_6, window_bounds = array<i64: 1, 32>}, {transform_indices = @transform_7, window_bounds = array<i64: 1, 1>}, {transform_indices = @transform_8, window_bounds = array<i64: 8, 128>}]} {
    %0 = tpu.iota {dimensions = array<i32: 1>} : vector<1024x64xi32>
    %c0 = arith.constant 0 : index
    %c0_0 = arith.constant 0 : index
    %1 = vector.load %arg1[%c0, %c0_0] : memref<1024x1xi32, #tpu.memory_space<vmem>>, vector<1024x1xi32>
    %2 = vector.broadcast %1 : vector<1024x1xi32> to vector<1024x64xi32>
    %3 = arith.cmpi eq, %0, %2 : vector<1024x64xi32>
    %4 = arith.extui %3 : vector<1024x64xi1> to vector<1024x64xi32>
    %5 = arith.sitofp %4 : vector<1024x64xi32> to vector<1024x64xf32>
    %c0_1 = arith.constant 0 : index
    %c0_2 = arith.constant 0 : index
    %6 = vector.load %arg2[%c0_1, %c0_2] : memref<1024x1xi32, #tpu.memory_space<vmem>>, vector<1024x1xi32>
    %7 = vector.broadcast %6 : vector<1024x1xi32> to vector<1024x64xi32>
    %8 = arith.cmpi eq, %0, %7 : vector<1024x64xi32>
    %9 = arith.extui %8 : vector<1024x64xi1> to vector<1024x64xi32>
    %10 = arith.sitofp %9 : vector<1024x64xi32> to vector<1024x64xf32>
    %c0_3 = arith.constant 0 : index
    %c0_4 = arith.constant 0 : index
    %11 = vector.load %arg3[%c0_3, %c0_4] : memref<64x32xf32, #tpu.memory_space<vmem>>, vector<64x32xf32>
    %cst = arith.constant dense<0.000000e+00> : vector<1024x32xf32>
    %12 = tpu.matmul %5, %11, %cst {dimension_numbers = #tpu.dot_dimension_numbers<[1], [0], [0], [1], [0, 0, 1, 1], [], []>} : vector<1024x64xf32>, vector<64x32xf32>, vector<1024x32xf32> -> vector<1024x32xf32>
    %cst_5 = arith.constant dense<0.000000e+00> : vector<1024x32xf32>
    %13 = tpu.matmul %10, %11, %cst_5 {dimension_numbers = #tpu.dot_dimension_numbers<[1], [0], [0], [1], [0, 0, 1, 1], [], []>} : vector<1024x64xf32>, vector<64x32xf32>, vector<1024x32xf32> -> vector<1024x32xf32>
    %c0_6 = arith.constant 0 : index
    %c0_7 = arith.constant 0 : index
    %14 = vector.load %arg4[%c0_6, %c0_7] : memref<32x32xf32, #tpu.memory_space<vmem>>, vector<32x32xf32>
    %cst_8 = arith.constant dense<0.000000e+00> : vector<1024x32xf32>
    %15 = tpu.matmul %12, %14, %cst_8 {dimension_numbers = #tpu.dot_dimension_numbers<[1], [0], [0], [1], [0, 0, 1, 1], [], []>} : vector<1024x32xf32>, vector<32x32xf32>, vector<1024x32xf32> -> vector<1024x32xf32>
    %c0_9 = arith.constant 0 : index
    %c0_10 = arith.constant 0 : index
    %16 = vector.load %arg5[%c0_9, %c0_10] : memref<32x32xf32, #tpu.memory_space<vmem>>, vector<32x32xf32>
    %cst_11 = arith.constant dense<0.000000e+00> : vector<1024x32xf32>
    %17 = tpu.matmul %13, %16, %cst_11 {dimension_numbers = #tpu.dot_dimension_numbers<[1], [0], [0], [1], [0, 0, 1, 1], [], []>} : vector<1024x32xf32>, vector<32x32xf32>, vector<1024x32xf32> -> vector<1024x32xf32>
    %18 = arith.addf %15, %17 : vector<1024x32xf32>
    %c0_12 = arith.constant 0 : index
    %c0_13 = arith.constant 0 : index
    %19 = vector.load %arg6[%c0_12, %c0_13] : memref<1x32xf32, #tpu.memory_space<vmem>>, vector<1x32xf32>
    %20 = vector.broadcast %19 : vector<1x32xf32> to vector<1024x32xf32>
    %21 = arith.addf %18, %20 : vector<1024x32xf32>
    %cst_14 = arith.constant 0.000000e+00 : f32
    %22 = vector.broadcast %cst_14 : f32 to vector<1024x32xf32>
    %23 = arith.maximumf %21, %22 : vector<1024x32xf32>
    %c0_15 = arith.constant 0 : index
    %c0_16 = arith.constant 0 : index
    %24 = vector.load %arg7[%c0_15, %c0_16] : memref<1x32xf32, #tpu.memory_space<vmem>>, vector<1x32xf32>
    %25 = vector.broadcast %24 : vector<1x32xf32> to vector<1024x32xf32>
    %26 = arith.mulf %23, %25 : vector<1024x32xf32>
    %c0_17 = arith.constant 0 : index
    %c0_18 = arith.constant 0 : index
    %27 = memref.load %arg8[%c0_17, %c0_18] : memref<1x1xf32, #tpu.memory_space<smem>>
    %28 = vector.shape_cast %26 : vector<1024x32xf32> to vector<8x128x32xf32>
    %cst_19 = arith.constant dense<0.000000e+00> : vector<8x128xf32>
    %29 = vector.multi_reduction <add>, %28, %cst_19 [2] : vector<8x128x32xf32> to vector<8x128xf32>
    %30 = vector.broadcast %27 : f32 to vector<8x128xf32>
    %31 = arith.addf %29, %30 : vector<8x128xf32>
    %c0_20 = arith.constant 0 : index
    %c0_21 = arith.constant 0 : index
    %32 = vector.load %arg9[%c0_20, %c0_21] : memref<8x128xf32, #tpu.memory_space<vmem>>, vector<8x128xf32>
    tpu.vector_store %arg9[%c0_20, %c0_21], %31 {strides = array<i32>} : memref<8x128xf32, #tpu.memory_space<vmem>>, vector<8x128xf32>,
    return
  }
  func.func @transform_0(%arg0: i32) -> (i32, i32) {
    %c0_i32 = arith.constant 0 : i32
    %c0_i32_0 = arith.constant 0 : i32
    return %arg0, %c0_i32 : i32, i32
  }
  func.func @transform_1(%arg0: i32) -> (i32, i32) {
    %c0_i32 = arith.constant 0 : i32
    %c0_i32_0 = arith.constant 0 : i32
    return %arg0, %c0_i32 : i32, i32
  }
  func.func @transform_2(%arg0: i32) -> (i32, i32) {
    %c0_i32 = arith.constant 0 : i32
    %c0_i32_0 = arith.constant 0 : i32
    %c0_i32_1 = arith.constant 0 : i32
    return %c0_i32, %c0_i32_0 : i32, i32
  }
  func.func @transform_3(%arg0: i32) -> (i32, i32) {
    %c0_i32 = arith.constant 0 : i32
    %c0_i32_0 = arith.constant 0 : i32
    %c0_i32_1 = arith.constant 0 : i32
    return %c0_i32, %c0_i32_0 : i32, i32
  }
  func.func @transform_4(%arg0: i32) -> (i32, i32) {
    %c0_i32 = arith.constant 0 : i32
    %c0_i32_0 = arith.constant 0 : i32
    %c0_i32_1 = arith.constant 0 : i32
    return %c0_i32, %c0_i32_0 : i32, i32
  }
  func.func @transform_5(%arg0: i32) -> (i32, i32) {
    %c0_i32 = arith.constant 0 : i32
    %c0_i32_0 = arith.constant 0 : i32
    %c0_i32_1 = arith.constant 0 : i32
    return %c0_i32, %c0_i32_0 : i32, i32
  }
  func.func @transform_6(%arg0: i32) -> (i32, i32) {
    %c0_i32 = arith.constant 0 : i32
    %c0_i32_0 = arith.constant 0 : i32
    %c0_i32_1 = arith.constant 0 : i32
    return %c0_i32, %c0_i32_0 : i32, i32
  }
  func.func @transform_7(%arg0: i32) -> (i32, i32) {
    %c0_i32 = arith.constant 0 : i32
    %c0_i32_0 = arith.constant 0 : i32
    %c0_i32_1 = arith.constant 0 : i32
    return %c0_i32, %c0_i32_0 : i32, i32
  }
  func.func @transform_8(%arg0: i32) -> (i32, i32) {
    %c0_i32 = arith.constant 0 : i32
    %c0_i32_0 = arith.constant 0 : i32
    return %arg0, %c0_i32 : i32, i32
  }
}

</mosaic_0001>

<bundles_post_ra>
// kernel: tpu_custom_call.1
= control target key start
LH: loop header
LB: loop body
LE: loop exit
PB: predicated region body
PF: predicated region fallthrough
CT: control target
= control target key end

     0   :  { %s13708_s0 = inlined_call_operand.vmem [shape: s32[3072,1], index: 0, kind: input, shape index: {}]   ;;  %s13709_s1 = inlined_call_operand.vmem [shape: s32[3072,1], index: 1, kind: input, shape index: {}]   ;;  %s13710_s2 = inlined_call_operand.vmem [shape: f32[64,32], index: 2, kind: input, shape index: {}]   ;;  %s13711_s3 = inlined_call_operand.vmem [shape: f32[32,32], index: 3, kind: input, shape index: {}]   ;;  %s13712_s4 = inlined_call_operand.vmem [shape: f32[32,32], index: 4, kind: input, shape index: {}]   ;;  %s13713_s5 = inlined_call_operand.vmem [shape: f32[1,32], index: 5, kind: input, shape index: {}]   ;;  %s13714_s6 = inlined_call_operand.vmem [shape: f32[1,32], index: 6, kind: input, shape index: {}]   ;;  %s13715_s7 = inlined_call_operand.<no memory space> [shape: f32[1,1], index: 7, kind: input, shape index: {}]   ;;  %s13716_s8 = inlined_call_operand.hbm [shape: f32[24,128], index: 8, kind: output, shape index: {}]  }
   0x1   :  { %13 = sst [smem:[#allocation2]] %s13715_s7 }
   0x2   :  { %14 = vsyncpa [#allocation4], 0 }
   0x3   :  { %16 = vsyncpa [#allocation4 + $0x1], 0  ;;  %s10595_s29 = smov 0   ;;  %s10597_s30 = smov 0  }
   0x4   :  { %s10599_s9 = smov 0   ;;  %s10601_s10 = smov 0  }
   0x5 LB: > { %s8299_s7 = sadd.s32 4294967295, %s10542_s10   ;;  %s8300_s11 = sadd.s32 4294967294, %s10542_s10   ;;  %s10542_s10 = sphi %s10601_s10, %s13918_s10   ;;  %s10538_s9 = sphi %s10599_s9, %s13917_s9   ;;  %s10534_s30 = sphi %s10597_s30, %s13916_s30   ;;  %s10530_s29 = sphi %s10595_s29, %s13915_s29  }
   0x6   : > { %s10618_s12 = sadd.s32 1, %s10542_s10   ;;  %s207_s13 = sadd.s32 1, %s10538_s9 }
   0x7   : > { %s204_s14 = ssub.s32 %s10542_s10, %s10618_s12  ;;  %p217_p0 = scmp.ne.s32.totalorder %s10538_s9, %s10534_s30 }
   0x8   : > { %p205_p1 = scmp.eq.s32.totalorder %s204_s14, 0  ;;  %p218_p2 = scmp.eq.s32.totalorder %s8299_s7, 2 }
   0x9   : > { %p223_p3 = scmp.ne.s32.totalorder %s10534_s30, %s10530_s29  ;;  %p224_p4 = scmp.eq.s32.totalorder %s8300_s11, 2 }
   0xa   : > { %s10628_s15 = scalar_select %p205_p1, %s10538_s9, %s207_s13  }
   0xb   : > { %p10630_p5 = por %p218_p2, %p217_p0  ;;  %p10634_p6 = por %p224_p4, %p223_p3 }
   0xc   : > { %p8303_p7 = scmp.ge.s32.totalorder %s10542_s10, 1  ;;  %p278_p8 = scmp.lt.s32.totalorder %s10542_s10, 4 }
   0xe   : > { %p279_p9 = pnand %p8303_p7, %p278_p8 }
  0x10   : > { %282 = sbr.rel (%p279_p9) target bundleno = 1287 (0x507), region = 52 }
  0x15   : > { %s10640_s18 = sshll.u32 %s8299_s7, 7  ;;  %v2130_v0 = vld [vmem:[%s13710_s2 + $0x38] sm:$0xff]  ;;  %v10544_v1 = vmov 0   ;;  %v2129_v2 = vld [vmem:[%s13710_s2 + $0x30] sm:$0xff]  ;;  %v2128_v3 = vld [vmem:[%s13710_s2 + $0x28] sm:$0xff]  ;;  %vm2131_vm0 = vcmask 523264  }
  0x16   : > { %10477 = vset.pattern.permute.xlu1 %v10544_v1  ;;  %10476 = vset.pattern.permute.xlu0 %v10544_v1  ;;  %p318_p10 = scmp.lt.s32.totalorder %s10640_s18, 383  ;;  %v2127_v4 = vld [vmem:[%s13710_s2 + $0x20] sm:$0xff]  ;;  %v2126_v7 = vld [vmem:[%s13710_s2 + $0x18] sm:$0xff]  ;;  %v2125_v10 = vld [vmem:[%s13710_s2 + $0x10] sm:$0xff]  ;;  %s12962_s28 = sld [smem:[#allocation2]] }
  0x17   : > { %9619 = vmatprep.subr.mxu0 %v2130_v0  ;;  %9827 = vmatprep.subr.mxu1 %v2130_v0  ;;  %v2124_v13 = vld [vmem:[%s13710_s2 + $0x8] sm:$0xff]  ;;  %v2123_v20 = vld [vmem:[%s13710_s2] sm:$0xff]  ;;  %s314_s19 = sand.u32 1, %s10534_s30   ;;  %s13671_s24 = scalar_lea.hbm %s13716_s8, %s10640_s18 }
  0x18   : > { %s10650_s23 = scalar_select %p318_p10, %s10640_s18, 383  ;;  %9620 = vmatpush3.msra.mxu0 %v2130_v0  ;;  %9828 = vmatpush3.msra.mxu1 %v2130_v0 }
  0x19   : > { %9621 = vmatprep.subr.mxu0 %v2129_v2  ;;  %9829 = vmatprep.subr.mxu1 %v2129_v2  ;;  %s8216_s25 = scalar_lea.sflag [#allocation4], %s314_s19 }
  0x1a   : > { %s8306_s26 = sshll.u32 %s10650_s23, 3  ;;  %9622 = vmatpush3.msra.mxu0 %v2129_v2  ;;  %9830 = vmatpush3.msra.mxu1 %v2129_v2 }
  0x1b   : > { %s10661_s7 = scalar_lea.vmem %s13708_s0, %s8306_s26  ;;  %9623 = vmatprep.subr.mxu0 %v2128_v3  ;;  %9831 = vmatprep.subr.mxu1 %v2128_v3  ;;  %s10929_s13 = scalar_lea.vmem %s13709_s1, %s8306_s26 }
  0x1c   : > { %v333_v5 = vld [vmem:[%s10661_s7 + $0x10] sm:$0xff]  ;;  %v331_v6 = vld [vmem:[%s10661_s7] sm:$0xff]  ;;  %9624 = vmatpush3.msra.mxu0 %v2128_v3  ;;  %9832 = vmatpush3.msra.mxu1 %v2128_v3  ;;  %v334_v8 = vld [vmem:[%s10661_s7 + $0x18] sm:$0xff] }
  0x1d   : > { %466 = vperm.xlu1 %10477, %v333_v5   ;;  %460 = vperm.xlu0 %10476, %v331_v6   ;;  %v332_v9 = vld [vmem:[%s10661_s7 + $0x8] sm:$0xff]  ;;  %v335_v12 = vld [vmem:[%s10661_s7 + $0x20] sm:$0xff]  ;;  %v338_v14 = vld [vmem:[%s10661_s7 + $0x38] sm:$0xff]  ;;  %v13717_v5 = vlaneseq }
  0x1e   : > { %9625 = vmatprep.subr.mxu0 %v2127_v4  ;;  %9833 = vmatprep.subr.mxu1 %v2127_v4  ;;  %v336_v11 = vld [vmem:[%s10661_s7 + $0x28] sm:$0xff]  ;;  %v337_v15 = vld [vmem:[%s10661_s7 + $0x30] sm:$0xff]  ;;  %v339_v17 = vld [vmem:[%s10661_s7 + $0x40] sm:$0xff] }
  0x1f   : > { %9626 = vmatpush3.msra.mxu0 %v2127_v4  ;;  %9834 = vmatpush3.msra.mxu1 %v2127_v4  ;;  %v340_v16 = vld [vmem:[%s10661_s7 + $0x48] sm:$0xff]  ;;  %v342_v18 = vld [vmem:[%s10661_s7 + $0x58] sm:$0xff]  ;;  %v341_v19 = vld [vmem:[%s10661_s7 + $0x50] sm:$0xff] }
  0x20   : > { %9627 = vmatprep.subr.mxu0 %v2126_v7  ;;  %9835 = vmatprep.subr.mxu1 %v2126_v7  ;;  %v344_v21 = vld [vmem:[%s10661_s7 + $0x68] sm:$0xff]  ;;  %v343_v22 = vld [vmem:[%s10661_s7 + $0x60] sm:$0xff]  ;;  %v346_v23 = vld [vmem:[%s10661_s7 + $0x78] sm:$0xff] }
  0x21   : > { %469 = vperm.xlu1 %10477, %v334_v8   ;;  %463 = vperm.xlu0 %10476, %v332_v9   ;;  %v345_v24 = vld [vmem:[%s10661_s7 + $0x70] sm:$0xff]  ;;  %v348_v25 = vld [vmem:[%s10661_s7 + $0x88] sm:$0xff]  ;;  %v347_v26 = vld [vmem:[%s10661_s7 + $0x80] sm:$0xff]  ;;  %v10741_v8 = vand.u32 127, %v13717_v5 }
  0x22   : > { %9628 = vmatpush3.msra.mxu0 %v2126_v7  ;;  %9836 = vmatpush3.msra.mxu1 %v2126_v7  ;;  %v350_v27 = vld [vmem:[%s10661_s7 + $0x98] sm:$0xff]  ;;  %v349_v28 = vld [vmem:[%s10661_s7 + $0x90] sm:$0xff]  ;;  %v352_v29 = vld [vmem:[%s10661_s7 + $0xa8] sm:$0xff] }
  0x23   : > { %9629 = vmatprep.subr.mxu0 %v2125_v10  ;;  %9837 = vmatprep.subr.mxu1 %v2125_v10  ;;  %v351_v30 = vld [vmem:[%s10661_s7 + $0xa0] sm:$0xff]  ;;  %v354_v31 = vld [vmem:[%s10661_s7 + $0xb8] sm:$0xff]  ;;  %v353_v32 = vld [vmem:[%s10661_s7 + $0xb0] sm:$0xff]  ;;  %13724 = vst [vmem:[#allocation6_spill] sm:$0xff] %v10741_v8 }
  0x24   : > { %9630 = vmatpush3.msra.mxu0 %v2125_v10  ;;  %9838 = vmatpush3.msra.mxu1 %v2125_v10  ;;  %v356_v33 = vld [vmem:[%s10661_s7 + $0xc8] sm:$0xff]  ;;  %v355_v34 = vld [vmem:[%s10661_s7 + $0xc0] sm:$0xff]  ;;  %v358_v35 = vld [vmem:[%s10661_s7 + $0xd8] sm:$0xff] }
  0x25   : > { %475 = vperm.xlu1 %10477, %v336_v11   ;;  %472 = vperm.xlu0 %10476, %v335_v12   ;;  %v357_v36 = vld [vmem:[%s10661_s7 + $0xd0] sm:$0xff]  ;;  %v360_v37 = vld [vmem:[%s10661_s7 + $0xe8] sm:$0xff]  ;;  %v359_v38 = vld [vmem:[%s10661_s7 + $0xe0] sm:$0xff] }
  0x26   : > { %9631 = vmatprep.subr.mxu0 %v2124_v13  ;;  %9839 = vmatprep.subr.mxu1 %v2124_v13  ;;  %v362_v39 = vld [vmem:[%s10661_s7 + $0xf8] sm:$0xff]  ;;  %v361_v40 = vld [vmem:[%s10661_s7 + $0xf0] sm:$0xff]  ;;  %v364_v41 = vld [vmem:[%s10661_s7 + $0x108] sm:$0xff] }
  0x27   : > { %9632 = vmatpush3.msra.mxu0 %v2124_v13  ;;  %9840 = vmatpush3.msra.mxu1 %v2124_v13  ;;  %v363_v42 = vld [vmem:[%s10661_s7 + $0x100] sm:$0xff]  ;;  %v366_v43 = vld [vmem:[%s10661_s7 + $0x118] sm:$0xff]  ;;  %v365_v44 = vld [vmem:[%s10661_s7 + $0x110] sm:$0xff]  ;;  %v10545_v13 = vmov 0.0  }
  0x28   : > { %9633 = vmatprep.subr.mxu0 %v2123_v20  ;;  %9841 = vmatprep.subr.mxu1 %v2123_v20  ;;  %v368_v45 = vld [vmem:[%s10661_s7 + $0x128] sm:$0xff]  ;;  %v367_v46 = vld [vmem:[%s10661_s7 + $0x120] sm:$0xff]  ;;  %v370_v47 = vld [vmem:[%s10661_s7 + $0x138] sm:$0xff] }
  0x29   : > { %481 = vperm.xlu1 %10477, %v338_v14   ;;  %478 = vperm.xlu0 %10476, %v337_v15   ;;  %v369_v48 = vld [vmem:[%s10661_s7 + $0x130] sm:$0xff]  ;;  %v372_v49 = vld [vmem:[%s10661_s7 + $0x148] sm:$0xff]  ;;  %v371_v50 = vld [vmem:[%s10661_s7 + $0x140] sm:$0xff] }
  0x2a   : > { %9634 = vmatpush3.msra.mxu0 %v2123_v20  ;;  %9842 = vmatpush3.msra.mxu1 %v2123_v20  ;;  %v374_v51 = vld [vmem:[%s10661_s7 + $0x158] sm:$0xff]  ;;  %v373_v52 = vld [vmem:[%s10661_s7 + $0x150] sm:$0xff]  ;;  %v376_v53 = vld [vmem:[%s10661_s7 + $0x168] sm:$0xff] }
  0x2b   : > { %v375_v54 = vld [vmem:[%s10661_s7 + $0x160] sm:$0xff]  ;;  %v378_v55 = vld [vmem:[%s10661_s7 + $0x178] sm:$0xff]  ;;  %v377_v56 = vld [vmem:[%s10661_s7 + $0x170] sm:$0xff] }
  0x2c   : > { %v380_v57 = vld [vmem:[%s10661_s7 + $0x188] sm:$0xff]  ;;  %v379_v58 = vld [vmem:[%s10661_s7 + $0x180] sm:$0xff]  ;;  %v382_v59 = vld [vmem:[%s10661_s7 + $0x198] sm:$0xff] }
  0x2d   : > { %487 = vperm.xlu1 %10477, %v340_v16   ;;  %484 = vperm.xlu0 %10476, %v339_v17   ;;  %v381_v60 = vld [vmem:[%s10661_s7 + $0x190] sm:$0xff]  ;;  %v384_v61 = vld [vmem:[%s10661_s7 + $0x1a8] sm:$0xff]  ;;  %v383_v62 = vld [vmem:[%s10661_s7 + $0x1a0] sm:$0xff] }
  0x2e   : > { %v386_v63 = vld [vmem:[%s10661_s7 + $0x1b8] sm:$0xff]  ;;  %v385_v0 = vld [vmem:[%s10661_s7 + $0x1b0] sm:$0xff]  ;;  %v388_v1 = vld [vmem:[%s10661_s7 + $0x1c8] sm:$0xff] }
  0x2f   : > { %v387_v2 = vld [vmem:[%s10661_s7 + $0x1c0] sm:$0xff]  ;;  %v390_v3 = vld [vmem:[%s10661_s7 + $0x1d8] sm:$0xff]  ;;  %v389_v4 = vld [vmem:[%s10661_s7 + $0x1d0] sm:$0xff] }
  0x30   : > { %v392_v6 = vld [vmem:[%s10661_s7 + $0x1e8] sm:$0xff]  ;;  %v391_v7 = vld [vmem:[%s10661_s7 + $0x1e0] sm:$0xff]  ;;  %v394_v9 = vld [vmem:[%s10661_s7 + $0x1f8] sm:$0xff] }
  0x31   : > { %493 = vperm.xlu1 %10477, %v342_v18   ;;  %490 = vperm.xlu0 %10476, %v341_v19   ;;  %v393_v10 = vld [vmem:[%s10661_s7 + $0x1f0] sm:$0xff]  ;;  %v396_v15 = vld [vmem:[%s10661_s7 + $0x208] sm:$0xff]  ;;  %v395_v16 = vld [vmem:[%s10661_s7 + $0x200] sm:$0xff] }
  0x32   : > { %v398_v20 = vld [vmem:[%s10661_s7 + $0x218] sm:$0xff] }
  0x35   : > { %499 = vperm.xlu1 %10477, %v344_v21   ;;  %496 = vperm.xlu0 %10476, %v343_v22   ;;  %v397_v21 = vld [vmem:[%s10661_s7 + $0x210] sm:$0xff] }
  0x39   : > { %505 = vperm.xlu1 %10477, %v346_v23   ;;  %502 = vperm.xlu0 %10476, %v345_v24  }
  0x3d   : > { %511 = vperm.xlu1 %10477, %v348_v25   ;;  %508 = vperm.xlu0 %10476, %v347_v26  }
  0x41   : > { %517 = vperm.xlu1 %10477, %v350_v27   ;;  %514 = vperm.xlu0 %10476, %v349_v28   ;;  %v400_v27 = vld [vmem:[%s10661_s7 + $0x228] sm:$0xff]  ;;  %v399_v28 = vld [vmem:[%s10661_s7 + $0x220] sm:$0xff] }
  0x45   : > { %523 = vperm.xlu1 %10477, %v352_v29   ;;  %520 = vperm.xlu0 %10476, %v351_v30  }
  0x49   : > { %529 = vperm.xlu1 %10477, %v354_v31   ;;  %526 = vperm.xlu0 %10476, %v353_v32  }
  0x4d   : > { %535 = vperm.xlu1 %10477, %v356_v33   ;;  %532 = vperm.xlu0 %10476, %v355_v34   ;;  %v402_v33 = vld [vmem:[%s10661_s7 + $0x238] sm:$0xff]  ;;  %v401_v34 = vld [vmem:[%s10661_s7 + $0x230] sm:$0xff] }
  0x51   : > { %541 = vperm.xlu1 %10477, %v358_v35   ;;  %538 = vperm.xlu0 %10476, %v357_v36  }
  0x55   : > { %547 = vperm.xlu1 %10477, %v360_v37   ;;  %544 = vperm.xlu0 %10476, %v359_v38  }
  0x59   : > { %553 = vperm.xlu1 %10477, %v362_v39   ;;  %550 = vperm.xlu0 %10476, %v361_v40   ;;  %v404_v39 = vld [vmem:[%s10661_s7 + $0x248] sm:$0xff]  ;;  %v403_v40 = vld [vmem:[%s10661_s7 + $0x240] sm:$0xff] }
  0x5d   : > { %559 = vperm.xlu1 %10477, %v364_v41   ;;  %556 = vperm.xlu0 %10476, %v363_v42  }
  0x61   : > { %565 = vperm.xlu1 %10477, %v366_v43   ;;  %562 = vperm.xlu0 %10476, %v365_v44  }
  0x65   : > { %571 = vperm.xlu1 %10477, %v368_v45   ;;  %568 = vperm.xlu0 %10476, %v367_v46   ;;  %v406_v45 = vld [vmem:[%s10661_s7 + $0x258] sm:$0xff]  ;;  %v405_v46 = vld [vmem:[%s10661_s7 + $0x250] sm:$0xff] }
  0x69   : > { %577 = vperm.xlu1 %10477, %v370_v47   ;;  %574 = vperm.xlu0 %10476, %v369_v48  }
  0x6d   : > { %583 = vperm.xlu1 %10477, %v372_v49   ;;  %580 = vperm.xlu0 %10476, %v371_v50  }
  0x71   : > { %589 = vperm.xlu1 %10477, %v374_v51   ;;  %586 = vperm.xlu0 %10476, %v373_v52   ;;  %v408_v51 = vld [vmem:[%s10661_s7 + $0x268] sm:$0xff]  ;;  %v407_v52 = vld [vmem:[%s10661_s7 + $0x260] sm:$0xff] }
  0x75   : > { %595 = vperm.xlu1 %10477, %v376_v53   ;;  %592 = vperm.xlu0 %10476, %v375_v54  }
  0x79   : > { %601 = vperm.xlu1 %10477, %v378_v55   ;;  %598 = vperm.xlu0 %10476, %v377_v56  }
  0x7d   : > { %607 = vperm.xlu1 %10477, %v380_v57   ;;  %604 = vperm.xlu0 %10476, %v379_v58   ;;  %v410_v57 = vld [vmem:[%s10661_s7 + $0x278] sm:$0xff]  ;;  %v409_v58 = vld [vmem:[%s10661_s7 + $0x270] sm:$0xff] }
  0x81   : > { %613 = vperm.xlu1 %10477, %v382_v59   ;;  %610 = vperm.xlu0 %10476, %v381_v60  }
  0x85   : > { %619 = vperm.xlu1 %10477, %v384_v61   ;;  %616 = vperm.xlu0 %10476, %v383_v62  }
  0x89   : > { %625 = vperm.xlu1 %10477, %v386_v63   ;;  %622 = vperm.xlu0 %10476, %v385_v0   ;;  %v412_v63 = vld [vmem:[%s10661_s7 + $0x288] sm:$0xff]  ;;  %v411_v0 = vld [vmem:[%s10661_s7 + $0x280] sm:$0xff] }
  0x8d   : > { %631 = vperm.xlu1 %10477, %v388_v1   ;;  %628 = vperm.xlu0 %10476, %v387_v2  }
  0x91   : > { %637 = vperm.xlu1 %10477, %v390_v3   ;;  %634 = vperm.xlu0 %10476, %v389_v4  }
  0x95   : > { %643 = vperm.xlu1 %10477, %v392_v6   ;;  %640 = vperm.xlu0 %10476, %v391_v7   ;;  %v414_v6 = vld [vmem:[%s10661_s7 + $0x298] sm:$0xff]  ;;  %v413_v7 = vld [vmem:[%s10661_s7 + $0x290] sm:$0xff] }
  0x98   : > { %v467_v11 = vpop.permute.xlu1 %466  ;;  %v461_v12 = vpop.permute.xlu0 %460 }
  0x99   : > { %649 = vperm.xlu1 %10477, %v394_v9   ;;  %646 = vperm.xlu0 %10476, %v393_v10   ;;  %vm843_vm1 = vcmp.eq.s32.totalorder %v10741_v8, %v461_v12  ;;  %vm845_vm2 = vcmp.eq.s32.totalorder %v10741_v8, %v467_v11 }
  0x9a   : > { %v8309_v14 = vsel %vm843_vm1, 1.0, %v10545_v13  ;;  %v8311_v22 = vsel %vm845_vm2, 1.0, %v10545_v13 }
  0x9b   : > { %9635 = vmatprep.mubr.msk.f32.mxu0 %vm2131_vm0, %v8309_v14  ;;  %v416_v14 = vld [vmem:[%s10661_s7 + $0x2a8] sm:$0xff] }
  0x9c   : > { %v470_v17 = vpop.permute.xlu1 %469  ;;  %v464_v18 = vpop.permute.xlu0 %463 }
  0x9d   : > { %vm844_vm3 = vcmp.eq.s32.totalorder %v10741_v8, %v464_v18  ;;  %655 = vperm.xlu1 %10477, %v396_v15   ;;  %652 = vperm.xlu0 %10476, %v395_v16   ;;  %vm846_vm4 = vcmp.eq.s32.totalorder %v10741_v8, %v470_v17  ;;  %v415_v15 = vld [vmem:[%s10661_s7 + $0x2a0] sm:$0xff] }
  0x9e   : > { %v8310_v19 = vsel %vm844_vm3, 1.0, %v10545_v13  ;;  %v8312_v25 = vsel %vm846_vm4, 1.0, %v10545_v13 }
  0x9f   : > { %9636 = vmatmul.mubr.msk.f32.vlgmr.msra.gmra.mxu0 %vm2131_vm0, %v8310_v19 }
  0xa0   : > { %v476_v23 = vpop.permute.xlu1 %475  ;;  %9638 = vmatprep.mubr.msk.f32.mxu0 %vm2131_vm0, %v8311_v22  ;;  %v473_v24 = vpop.permute.xlu0 %472 }
  0xa1   : > { %vm847_vm5 = vcmp.eq.s32.totalorder %v10741_v8, %v473_v24  ;;  %661 = vperm.xlu1 %10477, %v398_v20   ;;  %658 = vperm.xlu0 %10476, %v397_v21   ;;  %vm848_vm6 = vcmp.eq.s32.totalorder %v10741_v8, %v476_v23  ;;  %v418_v20 = vld [vmem:[%s10661_s7 + $0x2b8] sm:$0xff]  ;;  %v417_v21 = vld [vmem:[%s10661_s7 + $0x2b0] sm:$0xff] }
  0xa2   : > { %v8313_v26 = vsel %vm847_vm5, 1.0, %v10545_v13  ;;  %v8314_v31 = vsel %vm848_vm6, 1.0, %v10545_v13 }
  0xa3   : > { %9639 = vmatmul.mubr.msk.f32.gmra.mxu0 %vm2131_vm0, %v8312_v25 }
  0xa4   : > { %v482_v29 = vpop.permute.xlu1 %481  ;;  %9641 = vmatprep.mubr.msk.f32.mxu0 %vm2131_vm0, %v8313_v26  ;;  %v479_v30 = vpop.permute.xlu0 %478  ;;  %v420_v26 = vld [vmem:[%s10661_s7 + $0x2c8] sm:$0xff] }
  0xa5   : > { %vm849_vm7 = vcmp.eq.s32.totalorder %v10741_v8, %v479_v30  ;;  %667 = vperm.xlu1 %10477, %v400_v27   ;;  %664 = vperm.xlu0 %10476, %v399_v28   ;;  %vm850_vm8 = vcmp.eq.s32.totalorder %v10741_v8, %v482_v29  ;;  %v419_v27 = vld [vmem:[%s10661_s7 + $0x2c0] sm:$0xff] }
  0xa6   : > { %v8315_v32 = vsel %vm849_vm7, 1.0, %v10545_v13  ;;  %v8316_v37 = vsel %vm850_vm8, 1.0, %v10545_v13 }
  0xa7   : > { %9642 = vmatmul.mubr.msk.f32.gmra.mxu0 %vm2131_vm0, %v8314_v31 }
  0xa8   : > { %v488_v35 = vpop.permute.xlu1 %487  ;;  %9644 = vmatprep.mubr.msk.f32.mxu0 %vm2131_vm0, %v8315_v32  ;;  %v485_v36 = vpop.permute.xlu0 %484  ;;  %v422_v32 = vld [vmem:[%s10661_s7 + $0x2d8] sm:$0xff] }
  0xa9   : > { %vm851_vm9 = vcmp.eq.s32.totalorder %v10741_v8, %v485_v36  ;;  %673 = vperm.xlu1 %10477, %v402_v33   ;;  %670 = vperm.xlu0 %10476, %v401_v34   ;;  %vm852_vm10 = vcmp.eq.s32.totalorder %v10741_v8, %v488_v35  ;;  %v421_v33 = vld [vmem:[%s10661_s7 + $0x2d0] sm:$0xff] }
  0xaa   : > { %v8317_v38 = vsel %vm851_vm9, 1.0, %v10545_v13  ;;  %v8318_v43 = vsel %vm852_vm10, 1.0, %v10545_v13 }
  0xab   : > { %9645 = vmatmul.mubr.msk.f32.gmra.mxu0 %vm2131_vm0, %v8316_v37 }
  0xac   : > { %v494_v41 = vpop.permute.xlu1 %493  ;;  %9647 = vmatprep.mubr.msk.f32.mxu0 %vm2131_vm0, %v8317_v38  ;;  %v491_v42 = vpop.permute.xlu0 %490  ;;  %v424_v38 = vld [vmem:[%s10661_s7 + $0x2e8] sm:$0xff] }
  0xad   : > { %vm853_vm11 = vcmp.eq.s32.totalorder %v10741_v8, %v491_v42  ;;  %679 = vperm.xlu1 %10477, %v404_v39   ;;  %676 = vperm.xlu0 %10476, %v403_v40   ;;  %vm854_vm12 = vcmp.eq.s32.totalorder %v10741_v8, %v494_v41  ;;  %v423_v39 = vld [vmem:[%s10661_s7 + $0x2e0] sm:$0xff] }
  0xae   : > { %v8319_v44 = vsel %vm853_vm11, 1.0, %v10545_v13  ;;  %v8320_v49 = vsel %vm854_vm12, 1.0, %v10545_v13 }
  0xaf   : > { %9648 = vmatmul.mubr.msk.f32.gmra.mxu0 %vm2131_vm0, %v8318_v43 }
  0xb0   : > { %v500_v47 = vpop.permute.xlu1 %499  ;;  %9650 = vmatprep.mubr.msk.f32.mxu0 %vm2131_vm0, %v8319_v44  ;;  %v497_v48 = vpop.permute.xlu0 %496  ;;  %v426_v44 = vld [vmem:[%s10661_s7 + $0x2f8] sm:$0xff] }
  0xb1   : > { %vm855_vm13 = vcmp.eq.s32.totalorder %v10741_v8, %v497_v48  ;;  %685 = vperm.xlu1 %10477, %v406_v45   ;;  %682 = vperm.xlu0 %10476, %v405_v46   ;;  %vm856_vm14 = vcmp.eq.s32.totalorder %v10741_v8, %v500_v47  ;;  %v425_v45 = vld [vmem:[%s10661_s7 + $0x2f0] sm:$0xff] }
  0xb2   : > { %v8321_v50 = vsel %vm855_vm13, 1.0, %v10545_v13  ;;  %v8322_v55 = vsel %vm856_vm14, 1.0, %v10545_v13 }
  0xb3   : > { %9651 = vmatmul.mubr.msk.f32.gmra.mxu0 %vm2131_vm0, %v8320_v49 }
  0xb4   : > { %v506_v53 = vpop.permute.xlu1 %505  ;;  %9653 = vmatprep.mubr.msk.f32.mxu0 %vm2131_vm0, %v8321_v50  ;;  %v503_v54 = vpop.permute.xlu0 %502  ;;  %v428_v50 = vld [vmem:[%s10661_s7 + $0x308] sm:$0xff] }
  0xb5   : > { %vm857_vm15 = vcmp.eq.s32.totalorder %v10741_v8, %v503_v54  ;;  %691 = vperm.xlu1 %10477, %v408_v51   ;;  %688 = vperm.xlu0 %10476, %v407_v52   ;;  %vm858_vm1 = vcmp.eq.s32.totalorder %v10741_v8, %v506_v53  ;;  %v427_v51 = vld [vmem:[%s10661_s7 + $0x300] sm:$0xff] }
  0xb6   : > { %v8323_v56 = vsel %vm857_vm15, 1.0, %v10545_v13  ;;  %v8324_v61 = vsel %vm858_vm1, 1.0, %v10545_v13 }
  0xb7   : > { %9654 = vmatmul.mubr.msk.f32.gmra.mxu0 %vm2131_vm0, %v8322_v55 }
  0xb8   : > { %v512_v59 = vpop.permute.xlu1 %511  ;;  %9656 = vmatprep.mubr.msk.f32.mxu0 %vm2131_vm0, %v8323_v56  ;;  %v509_v60 = vpop.permute.xlu0 %508  ;;  %v430_v56 = vld [vmem:[%s10661_s7 + $0x318] sm:$0xff] }
  0xb9   : > { %vm859_vm2 = vcmp.eq.s32.totalorder %v10741_v8, %v509_v60  ;;  %697 = vperm.xlu1 %10477, %v410_v57   ;;  %694 = vperm.xlu0 %10476, %v409_v58   ;;  %vm860_vm3 = vcmp.eq.s32.totalorder %v10741_v8, %v512_v59  ;;  %v429_v57 = vld [vmem:[%s10661_s7 + $0x310] sm:$0xff] }
  0xba   : > { %v8325_v62 = vsel %vm859_vm2, 1.0, %v10545_v13  ;;  %v8326_v3 = vsel %vm860_vm3, 1.0, %v10545_v13 }
  0xbb   : > { %9657 = vmatmul.mubr.msk.f32.gmra.mxu0 %vm2131_vm0, %v8324_v61 }
  0xbc   : > { %v518_v1 = vpop.permute.xlu1 %517  ;;  %9659 = vmatprep.mubr.msk.f32.mxu0 %vm2131_vm0, %v8325_v62  ;;  %v515_v2 = vpop.permute.xlu0 %514  ;;  %v432_v62 = vld [vmem:[%s10661_s7 + $0x328] sm:$0xff] }
  0xbd   : > { %vm861_vm4 = vcmp.eq.s32.totalorder %v10741_v8, %v515_v2  ;;  %703 = vperm.xlu1 %10477, %v412_v63   ;;  %700 = vperm.xlu0 %10476, %v411_v0   ;;  %vm862_vm5 = vcmp.eq.s32.totalorder %v10741_v8, %v518_v1  ;;  %v431_v63 = vld [vmem:[%s10661_s7 + $0x320] sm:$0xff] }
  0xbe   : > { %v8327_v4 = vsel %vm861_vm4, 1.0, %v10545_v13  ;;  %v8328_v11 = vsel %vm862_vm5, 1.0, %v10545_v13 }
  0xbf   : > { %9660 = vmatmul.mubr.msk.f32.gmra.mxu0 %vm2131_vm0, %v8326_v3 }
  0xc0   : > { %v524_v9 = vpop.permute.xlu1 %523  ;;  %9662 = vmatprep.mubr.msk.f32.mxu0 %vm2131_vm0, %v8327_v4  ;;  %v521_v10 = vpop.permute.xlu0 %520  ;;  %v434_v4 = vld [vmem:[%s10661_s7 + $0x338] sm:$0xff] }
  0xc1   : > { %vm863_vm6 = vcmp.eq.s32.totalorder %v10741_v8, %v521_v10  ;;  %709 = vperm.xlu1 %10477, %v414_v6   ;;  %706 = vperm.xlu0 %10476, %v413_v7   ;;  %vm864_vm7 = vcmp.eq.s32.totalorder %v10741_v8, %v524_v9  ;;  %v433_v6 = vld [vmem:[%s10661_s7 + $0x330] sm:$0xff] }
  0xc2   : > { %v8329_v12 = vsel %vm863_vm6, 1.0, %v10545_v13  ;;  %v8330_v18 = vsel %vm864_vm7, 1.0, %v10545_v13 }
  0xc3   : > { %9663 = vmatmul.mubr.msk.f32.gmra.mxu0 %vm2131_vm0, %v8328_v11 }
  0xc4   : > { %v530_v16 = vpop.permute.xlu1 %529  ;;  %9665 = vmatprep.mubr.msk.f32.mxu0 %vm2131_vm0, %v8329_v12  ;;  %v527_v17 = vpop.permute.xlu0 %526  ;;  %v436_v12 = vld [vmem:[%s10661_s7 + $0x348] sm:$0xff] }
  0xc5   : > { %vm865_vm8 = vcmp.eq.s32.totalorder %v10741_v8, %v527_v17  ;;  %715 = vperm.xlu1 %10477, %v416_v14   ;;  %712 = vperm.xlu0 %10476, %v415_v15   ;;  %vm866_vm9 = vcmp.eq.s32.totalorder %v10741_v8, %v530_v16  ;;  %v435_v14 = vld [vmem:[%s10661_s7 + $0x340] sm:$0xff] }
  0xc6   : > { %v8331_v19 = vsel %vm865_vm8, 1.0, %v10545_v13  ;;  %v8332_v24 = vsel %vm866_vm9, 1.0, %v10545_v13 }
  0xc7   : > { %9666 = vmatmul.mubr.msk.f32.gmra.mxu0 %vm2131_vm0, %v8330_v18 }
  0xc8   : > { %v536_v22 = vpop.permute.xlu1 %535  ;;  %9668 = vmatprep.mubr.msk.f32.mxu0 %vm2131_vm0, %v8331_v19  ;;  %v533_v23 = vpop.permute.xlu0 %532  ;;  %v438_v19 = vld [vmem:[%s10661_s7 + $0x358] sm:$0xff] }
  0xc9   : > { %vm867_vm10 = vcmp.eq.s32.totalorder %v10741_v8, %v533_v23  ;;  %721 = vperm.xlu1 %10477, %v418_v20   ;;  %718 = vperm.xlu0 %10476, %v417_v21   ;;  %vm868_vm11 = vcmp.eq.s32.totalorder %v10741_v8, %v536_v22  ;;  %v437_v20 = vld [vmem:[%s10661_s7 + $0x350] sm:$0xff] }
  0xca   : > { %v8333_v25 = vsel %vm867_vm10, 1.0, %v10545_v13  ;;  %v8334_v30 = vsel %vm868_vm11, 1.0, %v10545_v13 }
  0xcb   : > { %9669 = vmatmul.mubr.msk.f32.gmra.mxu0 %vm2131_vm0, %v8332_v24 }
  0xcc   : > { %v542_v28 = vpop.permute.xlu1 %541  ;;  %9671 = vmatprep.mubr.msk.f32.mxu0 %vm2131_vm0, %v8333_v25  ;;  %v539_v29 = vpop.permute.xlu0 %538  ;;  %v440_v25 = vld [vmem:[%s10661_s7 + $0x368] sm:$0xff] }
  0xcd   : > { %vm869_vm12 = vcmp.eq.s32.totalorder %v10741_v8, %v539_v29  ;;  %727 = vperm.xlu1 %10477, %v420_v26   ;;  %724 = vperm.xlu0 %10476, %v419_v27   ;;  %vm870_vm13 = vcmp.eq.s32.totalorder %v10741_v8, %v542_v28  ;;  %v439_v26 = vld [vmem:[%s10661_s7 + $0x360] sm:$0xff] }
  0xce   : > { %v8335_v31 = vsel %vm869_vm12, 1.0, %v10545_v13  ;;  %v8336_v36 = vsel %vm870_vm13, 1.0, %v10545_v13 }
  0xcf   : > { %9672 = vmatmul.mubr.msk.f32.gmra.mxu0 %vm2131_vm0, %v8334_v30 }
  0xd0   : > { %v548_v34 = vpop.permute.xlu1 %547  ;;  %9674 = vmatprep.mubr.msk.f32.mxu0 %vm2131_vm0, %v8335_v31  ;;  %v545_v35 = vpop.permute.xlu0 %544  ;;  %v1228_v31 = vld [vmem:[%s10929_s13 + $0x8] sm:$0xff] }
  0xd1   : > { %vm871_vm14 = vcmp.eq.s32.totalorder %v10741_v8, %v545_v35  ;;  %733 = vperm.xlu1 %10477, %v422_v32   ;;  %730 = vperm.xlu0 %10476, %v421_v33   ;;  %vm872_vm15 = vcmp.eq.s32.totalorder %v10741_v8, %v548_v34  ;;  %v1227_v32 = vld [vmem:[%s10929_s13] sm:$0xff] }
  0xd2   : > { %v8337_v37 = vsel %vm871_vm14, 1.0, %v10545_v13  ;;  %v8338_v42 = vsel %vm872_vm15, 1.0, %v10545_v13 }
  0xd3   : > { %9675 = vmatmul.mubr.msk.f32.gmra.mxu0 %vm2131_vm0, %v8336_v36 }
  0xd4   : > { %v554_v40 = vpop.permute.xlu1 %553  ;;  %9677 = vmatprep.mubr.msk.f32.mxu0 %vm2131_vm0, %v8337_v37  ;;  %v551_v41 = vpop.permute.xlu0 %550  ;;  %v1230_v37 = vld [vmem:[%s10929_s13 + $0x18] sm:$0xff] }
  0xd5   : > { %vm873_vm1 = vcmp.eq.s32.totalorder %v10741_v8, %v551_v41  ;;  %739 = vperm.xlu1 %10477, %v424_v38   ;;  %736 = vperm.xlu0 %10476, %v423_v39   ;;  %vm874_vm2 = vcmp.eq.s32.totalorder %v10741_v8, %v554_v40  ;;  %v1229_v38 = vld [vmem:[%s10929_s13 + $0x10] sm:$0xff] }
  0xd6   : > { %v8339_v43 = vsel %vm873_vm1, 1.0, %v10545_v13  ;;  %v8340_v48 = vsel %vm874_vm2, 1.0, %v10545_v13 }
  0xd7   : > { %9678 = vmatmul.mubr.msk.f32.gmra.mxu0 %vm2131_vm0, %v8338_v42 }
  0xd8   : > { %v560_v46 = vpop.permute.xlu1 %559  ;;  %9680 = vmatprep.mubr.msk.f32.mxu0 %vm2131_vm0, %v8339_v43  ;;  %v557_v47 = vpop.permute.xlu0 %556  ;;  %v1232_v43 = vld [vmem:[%s10929_s13 + $0x28] sm:$0xff] }
  0xd9   : > { %vm875_vm3 = vcmp.eq.s32.totalorder %v10741_v8, %v557_v47  ;;  %745 = vperm.xlu1 %10477, %v426_v44   ;;  %742 = vperm.xlu0 %10476, %v425_v45   ;;  %vm876_vm4 = vcmp.eq.s32.totalorder %v10741_v8, %v560_v46  ;;  %v1231_v44 = vld [vmem:[%s10929_s13 + $0x20] sm:$0xff] }
  0xda   : > { %v8341_v49 = vsel %vm875_vm3, 1.0, %v10545_v13  ;;  %v8342_v54 = vsel %vm876_vm4, 1.0, %v10545_v13 }
  0xdb   : > { %9681 = vmatmul.mubr.msk.f32.gmra.mxu0 %vm2131_vm0, %v8340_v48 }
  0xdc   : > { %v566_v52 = vpop.permute.xlu1 %565  ;;  %9683 = vmatprep.mubr.msk.f32.mxu0 %vm2131_vm0, %v8341_v49  ;;  %v563_v53 = vpop.permute.xlu0 %562  ;;  %v1234_v49 = vld [vmem:[%s10929_s13 + $0x38] sm:$0xff] }
  0xdd   : > { %vm877_vm5 = vcmp.eq.s32.totalorder %v10741_v8, %v563_v53  ;;  %751 = vperm.xlu1 %10477, %v428_v50   ;;  %748 = vperm.xlu0 %10476, %v427_v51   ;;  %vm878_vm6 = vcmp.eq.s32.totalorder %v10741_v8, %v566_v52  ;;  %v1233_v50 = vld [vmem:[%s10929_s13 + $0x30] sm:$0xff] }
  0xde   : > { %v8343_v55 = vsel %vm877_vm5, 1.0, %v10545_v13  ;;  %v8344_v60 = vsel %vm878_vm6, 1.0, %v10545_v13 }
  0xdf   : > { %9684 = vmatmul.mubr.msk.f32.gmra.mxu0 %vm2131_vm0, %v8342_v54 }
  0xe0   : > { %v572_v58 = vpop.permute.xlu1 %571  ;;  %9686 = vmatprep.mubr.msk.f32.mxu0 %vm2131_vm0, %v8343_v55  ;;  %v569_v59 = vpop.permute.xlu0 %568  ;;  %v1236_v55 = vld [vmem:[%s10929_s13 + $0x48] sm:$0xff] }
  0xe1   : > { %vm879_vm7 = vcmp.eq.s32.totalorder %v10741_v8, %v569_v59  ;;  %757 = vperm.xlu1 %10477, %v430_v56   ;;  %754 = vperm.xlu0 %10476, %v429_v57   ;;  %vm880_vm8 = vcmp.eq.s32.totalorder %v10741_v8, %v572_v58  ;;  %v1235_v56 = vld [vmem:[%s10929_s13 + $0x40] sm:$0xff] }
  0xe2   : > { %v8345_v61 = vsel %vm879_vm7, 1.0, %v10545_v13  ;;  %v8346_v2 = vsel %vm880_vm8, 1.0, %v10545_v13 }
  0xe3   : > { %9687 = vmatmul.mubr.msk.f32.gmra.mxu0 %vm2131_vm0, %v8344_v60 }
  0xe4   : > { %v578_v0 = vpop.permute.xlu1 %577  ;;  %9689 = vmatprep.mubr.msk.f32.mxu0 %vm2131_vm0, %v8345_v61  ;;  %v575_v1 = vpop.permute.xlu0 %574  ;;  %v1238_v61 = vld [vmem:[%s10929_s13 + $0x58] sm:$0xff] }
  0xe5   : > { %vm881_vm9 = vcmp.eq.s32.totalorder %v10741_v8, %v575_v1  ;;  %763 = vperm.xlu1 %10477, %v432_v62   ;;  %760 = vperm.xlu0 %10476, %v431_v63   ;;  %vm882_vm10 = vcmp.eq.s32.totalorder %v10741_v8, %v578_v0  ;;  %v1237_v62 = vld [vmem:[%s10929_s13 + $0x50] sm:$0xff] }
  0xe6   : > { %v8347_v3 = vsel %vm881_vm9, 1.0, %v10545_v13  ;;  %v8348_v10 = vsel %vm882_vm10, 1.0, %v10545_v13 }
  0xe7   : > { %9690 = vmatmul.mubr.msk.f32.gmra.mxu0 %vm2131_vm0, %v8346_v2 }
  0xe8   : > { %v584_v7 = vpop.permute.xlu1 %583  ;;  %9692 = vmatprep.mubr.msk.f32.mxu0 %vm2131_vm0, %v8347_v3  ;;  %v581_v9 = vpop.permute.xlu0 %580  ;;  %v1240_v3 = vld [vmem:[%s10929_s13 + $0x68] sm:$0xff] }
  0xe9   : > { %vm883_vm11 = vcmp.eq.s32.totalorder %v10741_v8, %v581_v9  ;;  %769 = vperm.xlu1 %10477, %v434_v4   ;;  %766 = vperm.xlu0 %10476, %v433_v6   ;;  %vm884_vm12 = vcmp.eq.s32.totalorder %v10741_v8, %v584_v7  ;;  %v1239_v4 = vld [vmem:[%s10929_s13 + $0x60] sm:$0xff] }
  0xea   : > { %v8349_v11 = vsel %vm883_vm11, 1.0, %v10545_v13  ;;  %v8350_v17 = vsel %vm884_vm12, 1.0, %v10545_v13 }
  0xeb   : > { %9693 = vmatmul.mubr.msk.f32.gmra.mxu0 %vm2131_vm0, %v8348_v10 }
  0xec   : > { %v590_v15 = vpop.permute.xlu1 %589  ;;  %9695 = vmatprep.mubr.msk.f32.mxu0 %vm2131_vm0, %v8349_v11  ;;  %v587_v16 = vpop.permute.xlu0 %586  ;;  %v1242_v11 = vld [vmem:[%s10929_s13 + $0x78] sm:$0xff] }
  0xed   : > { %vm885_vm13 = vcmp.eq.s32.totalorder %v10741_v8, %v587_v16  ;;  %775 = vperm.xlu1 %10477, %v436_v12   ;;  %772 = vperm.xlu0 %10476, %v435_v14   ;;  %vm886_vm14 = vcmp.eq.s32.totalorder %v10741_v8, %v590_v15  ;;  %v1241_v12 = vld [vmem:[%s10929_s13 + $0x70] sm:$0xff] }
  0xee   : > { %v8351_v18 = vsel %vm885_vm13, 1.0, %v10545_v13  ;;  %v8352_v23 = vsel %vm886_vm14, 1.0, %v10545_v13 }
  0xef   : > { %9696 = vmatmul.mubr.msk.f32.gmra.mxu0 %vm2131_vm0, %v8350_v17 }
  0xf0   : > { %v596_v21 = vpop.permute.xlu1 %595  ;;  %9698 = vmatprep.mubr.msk.f32.mxu0 %vm2131_vm0, %v8351_v18  ;;  %v593_v22 = vpop.permute.xlu0 %592  ;;  %v1244_v18 = vld [vmem:[%s10929_s13 + $0x88] sm:$0xff] }
  0xf1   : > { %vm887_vm15 = vcmp.eq.s32.totalorder %v10741_v8, %v593_v22  ;;  %781 = vperm.xlu1 %10477, %v438_v19   ;;  %778 = vperm.xlu0 %10476, %v437_v20   ;;  %vm888_vm1 = vcmp.eq.s32.totalorder %v10741_v8, %v596_v21  ;;  %v1243_v19 = vld [vmem:[%s10929_s13 + $0x80] sm:$0xff]  ;;  %v1246_v22 = vld [vmem:[%s10929_s13 + $0x98] sm:$0xff] }
  0xf2   : > { %v8353_v24 = vsel %vm887_vm15, 1.0, %v10545_v13  ;;  %v8354_v29 = vsel %vm888_vm1, 1.0, %v10545_v13 }
  0xf3   : > { %9699 = vmatmul.mubr.msk.f32.gmra.mxu0 %vm2131_vm0, %v8352_v23 }
  0xf4   : > { %v602_v27 = vpop.permute.xlu1 %601  ;;  %9701 = vmatprep.mubr.msk.f32.mxu0 %vm2131_vm0, %v8353_v24  ;;  %v599_v28 = vpop.permute.xlu0 %598 }
  0xf5   : > { %vm889_vm2 = vcmp.eq.s32.totalorder %v10741_v8, %v599_v28  ;;  %787 = vperm.xlu1 %10477, %v440_v25   ;;  %784 = vperm.xlu0 %10476, %v439_v26   ;;  %vm890_vm3 = vcmp.eq.s32.totalorder %v10741_v8, %v602_v27  ;;  %v1245_v25 = vld [vmem:[%s10929_s13 + $0x90] sm:$0xff]  ;;  %v4317_v26 = vld [vmem:[%s13712_s4 + $0x18] sm:$0xff] }
  0xf6   : > { %v8355_v30 = vsel %vm889_vm2, 1.0, %v10545_v13  ;;  %v8356_v35 = vsel %vm890_vm3, 1.0, %v10545_v13  ;;  %v11017_v27 = vld [vmem:[%s13711_s3 + $0x18] sm:$0xff]  ;;  %10035 = vmatprep.subr.mxu0 %v4317_v26 }
  0xf7   : > { %9702 = vmatmul.mubr.msk.f32.gmra.mxu0 %vm2131_vm0, %v8354_v29  ;;  %10235 = vmatprep.subr.mxu1 %v11017_v27 }
  0xf8   : > { %v608_v33 = vpop.permute.xlu1 %607  ;;  %9704 = vmatprep.mubr.msk.f32.mxu0 %vm2131_vm0, %v8355_v30  ;;  %v605_v34 = vpop.permute.xlu0 %604  ;;  %10036 = vmatpush3.msra.mxu0 %v4317_v26  ;;  %v1265_v26 = vld [vmem:[%s10929_s13 + $0x130] sm:$0xff] }
  0xf9   : > { %vm891_vm4 = vcmp.eq.s32.totalorder %v10741_v8, %v605_v34  ;;  %1359 = vperm.xlu1 %10477, %v1228_v31   ;;  %1356 = vperm.xlu0 %10476, %v1227_v32   ;;  %vm892_vm5 = vcmp.eq.s32.totalorder %v10741_v8, %v608_v33  ;;  %v1248_v32 = vld [vmem:[%s10929_s13 + $0xa8] sm:$0xff]  ;;  %v1247_v33 = vld [vmem:[%s10929_s13 + $0xa0] sm:$0xff] }
  0xfa   : > { %v8357_v36 = vsel %vm891_vm4, 1.0, %v10545_v13  ;;  %v8358_v41 = vsel %vm892_vm5, 1.0, %v10545_v13 }
  0xfb   : > { %9705 = vmatmul.mubr.msk.f32.gmra.mxu0 %vm2131_vm0, %v8356_v35 }
  0xfc   : > { %v614_v39 = vpop.permute.xlu1 %613  ;;  %9707 = vmatprep.mubr.msk.f32.mxu0 %vm2131_vm0, %v8357_v36  ;;  %v611_v40 = vpop.permute.xlu0 %610 }
  0xfd   : > { %vm893_vm6 = vcmp.eq.s32.totalorder %v10741_v8, %v611_v40  ;;  %1365 = vperm.xlu1 %10477, %v1230_v37   ;;  %1362 = vperm.xlu0 %10476, %v1229_v38   ;;  %vm894_vm7 = vcmp.eq.s32.totalorder %v10741_v8, %v614_v39  ;;  %v1250_v38 = vld [vmem:[%s10929_s13 + $0xb8] sm:$0xff]  ;;  %v1249_v39 = vld [vmem:[%s10929_s13 + $0xb0] sm:$0xff] }
  0xfe   : > { %v8359_v42 = vsel %vm893_vm6, 1.0, %v10545_v13  ;;  %v8360_v47 = vsel %vm894_vm7, 1.0, %v10545_v13 }
  0xff   : > { %9708 = vmatmul.mubr.msk.f32.gmra.mxu0 %vm2131_vm0, %v8358_v41 }
 0x100   : > { %v620_v45 = vpop.permute.xlu1 %619  ;;  %9710 = vmatprep.mubr.msk.f32.mxu0 %vm2131_vm0, %v8359_v42  ;;  %v617_v46 = vpop.permute.xlu0 %616 }
 0x101   : > { %vm895_vm8 = vcmp.eq.s32.totalorder %v10741_v8, %v617_v46  ;;  %1371 = vperm.xlu1 %10477, %v1232_v43   ;;  %1368 = vperm.xlu0 %10476, %v1231_v44   ;;  %vm896_vm9 = vcmp.eq.s32.totalorder %v10741_v8, %v620_v45  ;;  %v1252_v44 = vld [vmem:[%s10929_s13 + $0xc8] sm:$0xff]  ;;  %v1251_v45 = vld [vmem:[%s10929_s13 + $0xc0] sm:$0xff] }
 0x102   : > { %v8361_v48 = vsel %vm895_vm8, 1.0, %v10545_v13  ;;  %v8362_v53 = vsel %vm896_vm9, 1.0, %v10545_v13 }
 0x103   : > { %9711 = vmatmul.mubr.msk.f32.gmra.mxu0 %vm2131_vm0, %v8360_v47 }
 0x104   : > { %v626_v51 = vpop.permute.xlu1 %625  ;;  %9713 = vmatprep.mubr.msk.f32.mxu0 %vm2131_vm0, %v8361_v48  ;;  %v623_v52 = vpop.permute.xlu0 %622 }
 0x105   : > { %vm897_vm10 = vcmp.eq.s32.totalorder %v10741_v8, %v623_v52  ;;  %1377 = vperm.xlu1 %10477, %v1234_v49   ;;  %1374 = vperm.xlu0 %10476, %v1233_v50   ;;  %vm898_vm11 = vcmp.eq.s32.totalorder %v10741_v8, %v626_v51  ;;  %v1254_v50 = vld [vmem:[%s10929_s13 + $0xd8] sm:$0xff]  ;;  %v1253_v51 = vld [vmem:[%s10929_s13 + $0xd0] sm:$0xff] }
 0x106   : > { %v8363_v54 = vsel %vm897_vm10, 1.0, %v10545_v13  ;;  %v8364_v59 = vsel %vm898_vm11, 1.0, %v10545_v13 }
 0x107   : > { %9714 = vmatmul.mubr.msk.f32.gmra.mxu0 %vm2131_vm0, %v8362_v53 }
 0x108   : > { %v632_v57 = vpop.permute.xlu1 %631  ;;  %9716 = vmatprep.mubr.msk.f32.mxu0 %vm2131_vm0, %v8363_v54  ;;  %v629_v58 = vpop.permute.xlu0 %628 }
 0x109   : > { %vm899_vm12 = vcmp.eq.s32.totalorder %v10741_v8, %v629_v58  ;;  %1383 = vperm.xlu1 %10477, %v1236_v55   ;;  %1380 = vperm.xlu0 %10476, %v1235_v56   ;;  %vm900_vm13 = vcmp.eq.s32.totalorder %v10741_v8, %v632_v57  ;;  %v1256_v56 = vld [vmem:[%s10929_s13 + $0xe8] sm:$0xff]  ;;  %v1255_v57 = vld [vmem:[%s10929_s13 + $0xe0] sm:$0xff] }
 0x10a   : > { %v8365_v60 = vsel %vm899_vm12, 1.0, %v10545_v13  ;;  %v8366_v1 = vsel %vm900_vm13, 1.0, %v10545_v13 }
 0x10b   : > { %9717 = vmatmul.mubr.msk.f32.gmra.mxu0 %vm2131_vm0, %v8364_v59 }
 0x10c   : > { %v638_v63 = vpop.permute.xlu1 %637  ;;  %9719 = vmatprep.mubr.msk.f32.mxu0 %vm2131_vm0, %v8365_v60  ;;  %v635_v0 = vpop.permute.xlu0 %634 }
 0x10d   : > { %vm901_vm14 = vcmp.eq.s32.totalorder %v10741_v8, %v635_v0  ;;  %1389 = vperm.xlu1 %10477, %v1238_v61   ;;  %1386 = vperm.xlu0 %10476, %v1237_v62   ;;  %vm902_vm15 = vcmp.eq.s32.totalorder %v10741_v8, %v638_v63  ;;  %v1258_v62 = vld [vmem:[%s10929_s13 + $0xf8] sm:$0xff]  ;;  %v1257_v63 = vld [vmem:[%s10929_s13 + $0xf0] sm:$0xff] }
 0x10e   : > { %v8367_v2 = vsel %vm901_vm14, 1.0, %v10545_v13  ;;  %v8368_v9 = vsel %vm902_vm15, 1.0, %v10545_v13 }
 0x10f   : > { %9720 = vmatmul.mubr.msk.f32.gmra.mxu0 %vm2131_vm0, %v8366_v1 }
 0x110   : > { %v644_v6 = vpop.permute.xlu1 %643  ;;  %9722 = vmatprep.mubr.msk.f32.mxu0 %vm2131_vm0, %v8367_v2  ;;  %v641_v7 = vpop.permute.xlu0 %640 }
 0x111   : > { %vm903_vm1 = vcmp.eq.s32.totalorder %v10741_v8, %v641_v7  ;;  %1395 = vperm.xlu1 %10477, %v1240_v3   ;;  %1392 = vperm.xlu0 %10476, %v1239_v4   ;;  %vm904_vm2 = vcmp.eq.s32.totalorder %v10741_v8, %v644_v6  ;;  %v1260_v4 = vld [vmem:[%s10929_s13 + $0x108] sm:$0xff]  ;;  %v1259_v6 = vld [vmem:[%s10929_s13 + $0x100] sm:$0xff] }
 0x112   : > { %v8369_v10 = vsel %vm903_vm1, 1.0, %v10545_v13  ;;  %v8370_v16 = vsel %vm904_vm2, 1.0, %v10545_v13 }
 0x113   : > { %9723 = vmatmul.mubr.msk.f32.gmra.mxu0 %vm2131_vm0, %v8368_v9 }
 0x114   : > { %v650_v14 = vpop.permute.xlu1 %649  ;;  %9725 = vmatprep.mubr.msk.f32.mxu0 %vm2131_vm0, %v8369_v10  ;;  %v647_v15 = vpop.permute.xlu0 %646 }
 0x115   : > { %vm905_vm3 = vcmp.eq.s32.totalorder %v10741_v8, %v647_v15  ;;  %1401 = vperm.xlu1 %10477, %v1242_v11   ;;  %1398 = vperm.xlu0 %10476, %v1241_v12   ;;  %vm906_vm4 = vcmp.eq.s32.totalorder %v10741_v8, %v650_v14  ;;  %v1262_v12 = vld [vmem:[%s10929_s13 + $0x118] sm:$0xff]  ;;  %v1261_v14 = vld [vmem:[%s10929_s13 + $0x110] sm:$0xff] }
 0x116   : > { %v8371_v17 = vsel %vm905_vm3, 1.0, %v10545_v13  ;;  %v8372_v23 = vsel %vm906_vm4, 1.0, %v10545_v13 }
 0x117   : > { %9726 = vmatmul.mubr.msk.f32.gmra.mxu0 %vm2131_vm0, %v8370_v16 }
 0x118   : > { %v656_v20 = vpop.permute.xlu1 %655  ;;  %9728 = vmatprep.mubr.msk.f32.mxu0 %vm2131_vm0, %v8371_v17  ;;  %v653_v21 = vpop.permute.xlu0 %652 }
 0x119   : > { %vm907_vm5 = vcmp.eq.s32.totalorder %v10741_v8, %v653_v21  ;;  %1407 = vperm.xlu1 %10477, %v1244_v18   ;;  %1404 = vperm.xlu0 %10476, %v1243_v19   ;;  %vm908_vm6 = vcmp.eq.s32.totalorder %v10741_v8, %v656_v20  ;;  %v1264_v19 = vld [vmem:[%s10929_s13 + $0x128] sm:$0xff]  ;;  %v1263_v20 = vld [vmem:[%s10929_s13 + $0x120] sm:$0xff] }
 0x11a   : > { %v8373_v24 = vsel %vm907_vm5, 1.0, %v10545_v13  ;;  %v8374_v30 = vsel %vm908_vm6, 1.0, %v10545_v13 }
 0x11b   : > { %9729 = vmatmul.mubr.msk.f32.gmra.mxu0 %vm2131_vm0, %v8372_v23 }
 0x11c   : > { %v662_v28 = vpop.permute.xlu1 %661  ;;  %9731 = vmatprep.mubr.msk.f32.mxu0 %vm2131_vm0, %v8373_v24  ;;  %v659_v29 = vpop.permute.xlu0 %658 }
 0x11d   : > { %vm909_vm7 = vcmp.eq.s32.totalorder %v10741_v8, %v659_v29  ;;  %1413 = vperm.xlu1 %10477, %v1246_v22   ;;  %1410 = vperm.xlu0 %10476, %v1245_v25   ;;  %vm910_vm8 = vcmp.eq.s32.totalorder %v10741_v8, %v662_v28  ;;  %v1266_v25 = vld [vmem:[%s10929_s13 + $0x138] sm:$0xff] }
 0x11e   : > { %v8375_v31 = vsel %vm909_vm7, 1.0, %v10545_v13  ;;  %v8376_v36 = vsel %vm910_vm8, 1.0, %v10545_v13 }
 0x11f   : > { %9732 = vmatmul.mubr.msk.f32.gmra.mxu0 %vm2131_vm0, %v8374_v30 }
 0x120   : > { %v668_v34 = vpop.permute.xlu1 %667  ;;  %9734 = vmatprep.mubr.msk.f32.mxu0 %vm2131_vm0, %v8375_v31  ;;  %v665_v35 = vpop.permute.xlu0 %664 }
 0x121   : > { %vm911_vm9 = vcmp.eq.s32.totalorder %v10741_v8, %v665_v35  ;;  %1419 = vperm.xlu1 %10477, %v1248_v32   ;;  %1416 = vperm.xlu0 %10476, %v1247_v33   ;;  %vm912_vm10 = vcmp.eq.s32.totalorder %v10741_v8, %v668_v34  ;;  %v1268_v32 = vld [vmem:[%s10929_s13 + $0x148] sm:$0xff]  ;;  %v1267_v33 = vld [vmem:[%s10929_s13 + $0x140] sm:$0xff] }
 0x122   : > { %v8377_v37 = vsel %vm911_vm9, 1.0, %v10545_v13  ;;  %v8378_v42 = vsel %vm912_vm10, 1.0, %v10545_v13 }
 0x123   : > { %9735 = vmatmul.mubr.msk.f32.gmra.mxu0 %vm2131_vm0, %v8376_v36 }
 0x124   : > { %v674_v40 = vpop.permute.xlu1 %673  ;;  %9737 = vmatprep.mubr.msk.f32.mxu0 %vm2131_vm0, %v8377_v37  ;;  %v671_v41 = vpop.permute.xlu0 %670 }
 0x125   : > { %vm913_vm11 = vcmp.eq.s32.totalorder %v10741_v8, %v671_v41  ;;  %1425 = vperm.xlu1 %10477, %v1250_v38   ;;  %1422 = vperm.xlu0 %10476, %v1249_v39   ;;  %vm914_vm12 = vcmp.eq.s32.totalorder %v10741_v8, %v674_v40  ;;  %v1270_v38 = vld [vmem:[%s10929_s13 + $0x158] sm:$0xff]  ;;  %v1269_v39 = vld [vmem:[%s10929_s13 + $0x150] sm:$0xff] }
 0x126   : > { %v8379_v43 = vsel %vm913_vm11, 1.0, %v10545_v13  ;;  %v8380_v48 = vsel %vm914_vm12, 1.0, %v10545_v13 }
 0x127   : > { %9738 = vmatmul.mubr.msk.f32.gmra.mxu0 %vm2131_vm0, %v8378_v42 }
 0x128   : > { %v680_v46 = vpop.permute.xlu1 %679  ;;  %9740 = vmatprep.mubr.msk.f32.mxu0 %vm2131_vm0, %v8379_v43  ;;  %v677_v47 = vpop.permute.xlu0 %676 }
 0x129   : > { %vm915_vm13 = vcmp.eq.s32.totalorder %v10741_v8, %v677_v47  ;;  %1431 = vperm.xlu1 %10477, %v1252_v44   ;;  %1428 = vperm.xlu0 %10476, %v1251_v45   ;;  %vm916_vm14 = vcmp.eq.s32.totalorder %v10741_v8, %v680_v46  ;;  %v1272_v44 = vld [vmem:[%s10929_s13 + $0x168] sm:$0xff]  ;;  %v1271_v45 = vld [vmem:[%s10929_s13 + $0x160] sm:$0xff] }
 0x12a   : > { %v8381_v49 = vsel %vm915_vm13, 1.0, %v10545_v13  ;;  %v8382_v54 = vsel %vm916_vm14, 1.0, %v10545_v13 }
 0x12b   : > { %9741 = vmatmul.mubr.msk.f32.gmra.mxu0 %vm2131_vm0, %v8380_v48 }
 0x12c   : > { %v686_v52 = vpop.permute.xlu1 %685  ;;  %9743 = vmatprep.mubr.msk.f32.mxu0 %vm2131_vm0, %v8381_v49  ;;  %v683_v53 = vpop.permute.xlu0 %682 }
 0x12d   : > { %vm917_vm15 = vcmp.eq.s32.totalorder %v10741_v8, %v683_v53  ;;  %1437 = vperm.xlu1 %10477, %v1254_v50   ;;  %1434 = vperm.xlu0 %10476, %v1253_v51   ;;  %vm918_vm1 = vcmp.eq.s32.totalorder %v10741_v8, %v686_v52  ;;  %v1274_v50 = vld [vmem:[%s10929_s13 + $0x178] sm:$0xff]  ;;  %v1273_v51 = vld [vmem:[%s10929_s13 + $0x170] sm:$0xff] }
 0x12e   : > { %v8383_v55 = vsel %vm917_vm15, 1.0, %v10545_v13  ;;  %v8384_v60 = vsel %vm918_vm1, 1.0, %v10545_v13 }
 0x12f   : > { %9744 = vmatmul.mubr.msk.f32.gmra.mxu0 %vm2131_vm0, %v8382_v54 }
 0x130   : > { %v692_v58 = vpop.permute.xlu1 %691  ;;  %9746 = vmatprep.mubr.msk.f32.mxu0 %vm2131_vm0, %v8383_v55  ;;  %v689_v59 = vpop.permute.xlu0 %688 }
 0x131   : > { %vm919_vm2 = vcmp.eq.s32.totalorder %v10741_v8, %v689_v59  ;;  %1443 = vperm.xlu1 %10477, %v1256_v56   ;;  %1440 = vperm.xlu0 %10476, %v1255_v57   ;;  %vm920_vm3 = vcmp.eq.s32.totalorder %v10741_v8, %v692_v58  ;;  %v1276_v56 = vld [vmem:[%s10929_s13 + $0x188] sm:$0xff]  ;;  %v1275_v57 = vld [vmem:[%s10929_s13 + $0x180] sm:$0xff] }
 0x132   : > { %v8385_v61 = vsel %vm919_vm2, 1.0, %v10545_v13  ;;  %v8386_v2 = vsel %vm920_vm3, 1.0, %v10545_v13 }
 0x133   : > { %9747 = vmatmul.mubr.msk.f32.gmra.mxu0 %vm2131_vm0, %v8384_v60 }
 0x134   : > { %v698_v0 = vpop.permute.xlu1 %697  ;;  %9749 = vmatprep.mubr.msk.f32.mxu0 %vm2131_vm0, %v8385_v61  ;;  %v695_v1 = vpop.permute.xlu0 %694 }
 0x135   : > { %vm921_vm4 = vcmp.eq.s32.totalorder %v10741_v8, %v695_v1  ;;  %1449 = vperm.xlu1 %10477, %v1258_v62   ;;  %1446 = vperm.xlu0 %10476, %v1257_v63   ;;  %vm922_vm5 = vcmp.eq.s32.totalorder %v10741_v8, %v698_v0  ;;  %v1278_v62 = vld [vmem:[%s10929_s13 + $0x198] sm:$0xff]  ;;  %v1277_v63 = vld [vmem:[%s10929_s13 + $0x190] sm:$0xff] }
 0x136   : > { %v8387_v3 = vsel %vm921_vm4, 1.0, %v10545_v13  ;;  %v8388_v10 = vsel %vm922_vm5, 1.0, %v10545_v13  ;;  %v4316_v0 = vld [vmem:[%s13712_s4 + $0x10] sm:$0xff] }
 0x137   : > { %9750 = vmatmul.mubr.msk.f32.gmra.mxu0 %vm2131_vm0, %v8386_v2  ;;  %10037 = vmatprep.subr.mxu0 %v4316_v0 }
 0x138   : > { %v704_v7 = vpop.permute.xlu1 %703  ;;  %9752 = vmatprep.mubr.msk.f32.mxu0 %vm2131_vm0, %v8387_v3  ;;  %v701_v9 = vpop.permute.xlu0 %700  ;;  %10038 = vmatpush3.msra.mxu0 %v4316_v0 }
 0x139   : > { %vm923_vm6 = vcmp.eq.s32.totalorder %v10741_v8, %v701_v9  ;;  %1455 = vperm.xlu1 %10477, %v1260_v4   ;;  %1452 = vperm.xlu0 %10476, %v1259_v6   ;;  %vm924_vm7 = vcmp.eq.s32.totalorder %v10741_v8, %v704_v7  ;;  %v1280_v6 = vld [vmem:[%s10929_s13 + $0x1a8] sm:$0xff]  ;;  %v1279_v7 = vld [vmem:[%s10929_s13 + $0x1a0] sm:$0xff] }
 0x13a   : > { %v8389_v11 = vsel %vm923_vm6, 1.0, %v10545_v13  ;;  %v8390_v17 = vsel %vm924_vm7, 1.0, %v10545_v13 }
 0x13b   : > { %9753 = vmatmul.mubr.msk.f32.gmra.mxu0 %vm2131_vm0, %v8388_v10 }
 0x13c   : > { %v710_v15 = vpop.permute.xlu1 %709  ;;  %9755 = vmatprep.mubr.msk.f32.mxu0 %vm2131_vm0, %v8389_v11  ;;  %v707_v16 = vpop.permute.xlu0 %706 }
 0x13d   : > { %vm925_vm8 = vcmp.eq.s32.totalorder %v10741_v8, %v707_v16  ;;  %1461 = vperm.xlu1 %10477, %v1262_v12   ;;  %1458 = vperm.xlu0 %10476, %v1261_v14   ;;  %vm926_vm9 = vcmp.eq.s32.totalorder %v10741_v8, %v710_v15  ;;  %v1282_v14 = vld [vmem:[%s10929_s13 + $0x1b8] sm:$0xff]  ;;  %v1281_v15 = vld [vmem:[%s10929_s13 + $0x1b0] sm:$0xff] }
 0x13e   : > { %v8391_v18 = vsel %vm925_vm8, 1.0, %v10545_v13  ;;  %v8392_v23 = vsel %vm926_vm9, 1.0, %v10545_v13 }
 0x13f   : > { %9756 = vmatmul.mubr.msk.f32.gmra.mxu0 %vm2131_vm0, %v8390_v17 }
 0x140   : > { %v716_v21 = vpop.permute.xlu1 %715  ;;  %9758 = vmatprep.mubr.msk.f32.mxu0 %vm2131_vm0, %v8391_v18  ;;  %v713_v22 = vpop.permute.xlu0 %712 }
 0x141   : > { %vm927_vm10 = vcmp.eq.s32.totalorder %v10741_v8, %v713_v22  ;;  %1467 = vperm.xlu1 %10477, %v1264_v19   ;;  %1464 = vperm.xlu0 %10476, %v1263_v20   ;;  %vm928_vm11 = vcmp.eq.s32.totalorder %v10741_v8, %v716_v21  ;;  %v1284_v20 = vld [vmem:[%s10929_s13 + $0x1c8] sm:$0xff]  ;;  %v1283_v21 = vld [vmem:[%s10929_s13 + $0x1c0] sm:$0xff] }
 0x142   : > { %v8393_v24 = vsel %vm927_vm10, 1.0, %v10545_v13  ;;  %v8394_v30 = vsel %vm928_vm11, 1.0, %v10545_v13 }
 0x143   : > { %9759 = vmatmul.mubr.msk.f32.gmra.mxu0 %vm2131_vm0, %v8392_v23 }
 0x144   : > { %v722_v28 = vpop.permute.xlu1 %721  ;;  %9761 = vmatprep.mubr.msk.f32.mxu0 %vm2131_vm0, %v8393_v24  ;;  %v719_v29 = vpop.permute.xlu0 %718 }
 0x145   : > { %vm929_vm12 = vcmp.eq.s32.totalorder %v10741_v8, %v719_v29  ;;  %1473 = vperm.xlu1 %10477, %v1266_v25   ;;  %1470 = vperm.xlu0 %10476, %v1265_v26   ;;  %vm930_vm13 = vcmp.eq.s32.totalorder %v10741_v8, %v722_v28  ;;  %v1286_v26 = vld [vmem:[%s10929_s13 + $0x1d8] sm:$0xff]  ;;  %v1285_v28 = vld [vmem:[%s10929_s13 + $0x1d0] sm:$0xff] }
 0x146   : > { %v8395_v31 = vsel %vm929_vm12, 1.0, %v10545_v13  ;;  %v8396_v36 = vsel %vm930_vm13, 1.0, %v10545_v13 }
 0x147   : > { %9762 = vmatmul.mubr.msk.f32.gmra.mxu0 %vm2131_vm0, %v8394_v30 }
 0x148   : > { %v728_v34 = vpop.permute.xlu1 %727  ;;  %9764 = vmatprep.mubr.msk.f32.mxu0 %vm2131_vm0, %v8395_v31  ;;  %v725_v35 = vpop.permute.xlu0 %724 }
 0x149   : > { %vm931_vm14 = vcmp.eq.s32.totalorder %v10741_v8, %v725_v35  ;;  %1479 = vperm.xlu1 %10477, %v1268_v32   ;;  %1476 = vperm.xlu0 %10476, %v1267_v33   ;;  %vm932_vm15 = vcmp.eq.s32.totalorder %v10741_v8, %v728_v34  ;;  %v1288_v33 = vld [vmem:[%s10929_s13 + $0x1e8] sm:$0xff]  ;;  %v1287_v34 = vld [vmem:[%s10929_s13 + $0x1e0] sm:$0xff] }
 0x14a   : > { %v8397_v37 = vsel %vm931_vm14, 1.0, %v10545_v13  ;;  %v8398_v42 = vsel %vm932_vm15, 1.0, %v10545_v13 }
 0x14b   : > { %9765 = vmatmul.mubr.msk.f32.gmra.mxu0 %vm2131_vm0, %v8396_v36 }
 0x14c   : > { %v734_v40 = vpop.permute.xlu1 %733  ;;  %9767 = vmatprep.mubr.msk.f32.mxu0 %vm2131_vm0, %v8397_v37  ;;  %v731_v41 = vpop.permute.xlu0 %730 }
 0x14d   : > { %vm933_vm1 = vcmp.eq.s32.totalorder %v10741_v8, %v731_v41  ;;  %1485 = vperm.xlu1 %10477, %v1270_v38   ;;  %1482 = vperm.xlu0 %10476, %v1269_v39   ;;  %vm934_vm2 = vcmp.eq.s32.totalorder %v10741_v8, %v734_v40  ;;  %v1290_v40 = vld [vmem:[%s10929_s13 + $0x1f8] sm:$0xff]  ;;  %v1289_v41 = vld [vmem:[%s10929_s13 + $0x1f0] sm:$0xff] }
 0x14e   : > { %v8399_v43 = vsel %vm933_vm1, 1.0, %v10545_v13  ;;  %v8400_v48 = vsel %vm934_vm2, 1.0, %v10545_v13 }
 0x14f   : > { %9768 = vmatmul.mubr.msk.f32.gmra.mxu0 %vm2131_vm0, %v8398_v42 }
 0x150   : > { %v740_v46 = vpop.permute.xlu1 %739  ;;  %9770 = vmatprep.mubr.msk.f32.mxu0 %vm2131_vm0, %v8399_v43  ;;  %v737_v47 = vpop.permute.xlu0 %736 }
 0x151   : > { %vm935_vm3 = vcmp.eq.s32.totalorder %v10741_v8, %v737_v47  ;;  %1491 = vperm.xlu1 %10477, %v1272_v44   ;;  %1488 = vperm.xlu0 %10476, %v1271_v45   ;;  %vm936_vm4 = vcmp.eq.s32.totalorder %v10741_v8, %v740_v46 }
 0x152   : > { %v8401_v49 = vsel %vm935_vm3, 1.0, %v10545_v13  ;;  %v8402_v54 = vsel %vm936_vm4, 1.0, %v10545_v13 }
 0x153   : > { %9771 = vmatmul.mubr.msk.f32.gmra.mxu0 %vm2131_vm0, %v8400_v48  ;;  %v1292_v48 = vld [vmem:[%s10929_s13 + $0x208] sm:$0xff] }
 0x154   : > { %v746_v52 = vpop.permute.xlu1 %745  ;;  %9773 = vmatprep.mubr.msk.f32.mxu0 %vm2131_vm0, %v8401_v49  ;;  %v743_v53 = vpop.permute.xlu0 %742  ;;  %v1291_v49 = vld [vmem:[%s10929_s13 + $0x200] sm:$0xff] }
 0x155   : > { %vm937_vm5 = vcmp.eq.s32.totalorder %v10741_v8, %v743_v53  ;;  %1497 = vperm.xlu1 %10477, %v1274_v50   ;;  %1494 = vperm.xlu0 %10476, %v1273_v51   ;;  %vm938_vm6 = vcmp.eq.s32.totalorder %v10741_v8, %v746_v52  ;;  %v4312_v52 = vld [vmem:[%s13711_s3 + $0x10] sm:$0xff] }
 0x156   : > { %v8403_v55 = vsel %vm937_vm5, 1.0, %v10545_v13  ;;  %v8404_v60 = vsel %vm938_vm6, 1.0, %v10545_v13 }
 0x157   : > { %9774 = vmatmul.mubr.msk.f32.gmra.mxu0 %vm2131_vm0, %v8402_v54 }
 0x158   : > { %v752_v58 = vpop.permute.xlu1 %751  ;;  %9776 = vmatprep.mubr.msk.f32.mxu0 %vm2131_vm0, %v8403_v55  ;;  %v749_v59 = vpop.permute.xlu0 %748 }
 0x159   : > { %vm939_vm7 = vcmp.eq.s32.totalorder %v10741_v8, %v749_v59  ;;  %1503 = vperm.xlu1 %10477, %v1276_v56   ;;  %1500 = vperm.xlu0 %10476, %v1275_v57   ;;  %vm940_vm8 = vcmp.eq.s32.totalorder %v10741_v8, %v752_v58  ;;  %v1294_v56 = vld [vmem:[%s10929_s13 + $0x218] sm:$0xff]  ;;  %v1293_v57 = vld [vmem:[%s10929_s13 + $0x210] sm:$0xff] }
 0x15a   : > { %v8405_v61 = vsel %vm939_vm7, 1.0, %v10545_v13  ;;  %v8406_v3 = vsel %vm940_vm8, 1.0, %v10545_v13 }
 0x15b   : > { %9777 = vmatmul.mubr.msk.f32.gmra.mxu0 %vm2131_vm0, %v8404_v60 }
 0x15c   : > { %v758_v1 = vpop.permute.xlu1 %757  ;;  %9779 = vmatprep.mubr.msk.f32.mxu0 %vm2131_vm0, %v8405_v61  ;;  %v755_v2 = vpop.permute.xlu0 %754 }
 0x15d   : > { %vm941_vm9 = vcmp.eq.s32.totalorder %v10741_v8, %v755_v2  ;;  %1509 = vperm.xlu1 %10477, %v1278_v62   ;;  %1506 = vperm.xlu0 %10476, %v1277_v63   ;;  %vm942_vm10 = vcmp.eq.s32.totalorder %v10741_v8, %v758_v1  ;;  %v1296_v62 = vld [vmem:[%s10929_s13 + $0x228] sm:$0xff]  ;;  %v1295_v63 = vld [vmem:[%s10929_s13 + $0x220] sm:$0xff] }
 0x15e   : > { %v8407_v4 = vsel %vm941_vm9, 1.0, %v10545_v13  ;;  %v8408_v11 = vsel %vm942_vm10, 1.0, %v10545_v13 }
 0x15f   : > { %9780 = vmatmul.mubr.msk.f32.gmra.mxu0 %vm2131_vm0, %v8406_v3  ;;  %v11195_v37 = vpop.f32.mrf.mxu0 }
 0x160   : > { %v764_v9 = vpop.permute.xlu1 %763  ;;  %9782 = vmatprep.mubr.msk.f32.mxu0 %vm2131_vm0, %v8407_v4  ;;  %v761_v10 = vpop.permute.xlu0 %760 }
 0x161   : > { %vm943_vm11 = vcmp.eq.s32.totalorder %v10741_v8, %v761_v10  ;;  %1515 = vperm.xlu1 %10477, %v1280_v6   ;;  %1512 = vperm.xlu0 %10476, %v1279_v7   ;;  %vm944_vm12 = vcmp.eq.s32.totalorder %v10741_v8, %v764_v9  ;;  %v11206_v44 = vpop.f32.mrf.mxu0  ;;  %v1298_v6 = vld [vmem:[%s10929_s13 + $0x238] sm:$0xff]  ;;  %v1297_v7 = vld [vmem:[%s10929_s13 + $0x230] sm:$0xff] }
 0x162   : > { %v8409_v12 = vsel %vm943_vm11, 1.0, %v10545_v13  ;;  %v8410_v18 = vsel %vm944_vm12, 1.0, %v10545_v13 }
 0x163   : > { %9783 = vmatmul.mubr.msk.f32.gmra.mxu0 %vm2131_vm0, %v8408_v11  ;;  %v11221_v53 = vpop.f32.mrf.mxu0 }
 0x164   : > { %v770_v16 = vpop.permute.xlu1 %769  ;;  %9785 = vmatprep.mubr.msk.f32.mxu0 %vm2131_vm0, %v8409_v12  ;;  %v767_v17 = vpop.permute.xlu0 %766 }
 0x165   : > { %vm945_vm13 = vcmp.eq.s32.totalorder %v10741_v8, %v767_v17  ;;  %1521 = vperm.xlu1 %10477, %v1282_v14   ;;  %1518 = vperm.xlu0 %10476, %v1281_v15   ;;  %vm946_vm14 = vcmp.eq.s32.totalorder %v10741_v8, %v770_v16  ;;  %v11232_v60 = vpop.f32.mrf.mxu0  ;;  %v1300_v15 = vld [vmem:[%s10929_s13 + $0x248] sm:$0xff]  ;;  %v1299_v16 = vld [vmem:[%s10929_s13 + $0x240] sm:$0xff] }
 0x166   : > { %v8411_v19 = vsel %vm945_vm13, 1.0, %v10545_v13  ;;  %v8412_v24 = vsel %vm946_vm14, 1.0, %v10545_v13 }
 0x167   : > { %9786 = vmatmul.mubr.msk.f32.gmra.mxu0 %vm2131_vm0, %v8410_v18  ;;  %v11242_v2 = vpop.f32.mrf.mxu0 }
 0x168   : > { %v776_v22 = vpop.permute.xlu1 %775  ;;  %9788 = vmatprep.mubr.msk.f32.mxu0 %vm2131_vm0, %v8411_v19  ;;  %v773_v23 = vpop.permute.xlu0 %772 }
 0x169   : > { %vm947_vm15 = vcmp.eq.s32.totalorder %v10741_v8, %v773_v23  ;;  %1527 = vperm.xlu1 %10477, %v1284_v20   ;;  %1524 = vperm.xlu0 %10476, %v1283_v21   ;;  %vm948_vm1 = vcmp.eq.s32.totalorder %v10741_v8, %v776_v22  ;;  %v11252_v11 = vpop.f32.mrf.mxu0  ;;  %v1302_v22 = vld [vmem:[%s10929_s13 + $0x258] sm:$0xff]  ;;  %v1301_v23 = vld [vmem:[%s10929_s13 + $0x250] sm:$0xff] }
 0x16a   : > { %v8413_v25 = vsel %vm947_vm15, 1.0, %v10545_v13  ;;  %v8414_v31 = vsel %vm948_vm1, 1.0, %v10545_v13 }
 0x16b   : > { %9789 = vmatmul.mubr.msk.f32.gmra.mxu0 %vm2131_vm0, %v8412_v24  ;;  %v11262_v19 = vpop.f32.mrf.mxu0 }
 0x16c   : > { %v782_v29 = vpop.permute.xlu1 %781  ;;  %9791 = vmatprep.mubr.msk.f32.mxu0 %vm2131_vm0, %v8413_v25  ;;  %v779_v30 = vpop.permute.xlu0 %778 }
 0x16d   : > { %vm949_vm2 = vcmp.eq.s32.totalorder %v10741_v8, %v779_v30  ;;  %1533 = vperm.xlu1 %10477, %v1286_v26   ;;  %1530 = vperm.xlu0 %10476, %v1285_v28   ;;  %vm950_vm3 = vcmp.eq.s32.totalorder %v10741_v8, %v782_v29  ;;  %v11272_v26 = vpop.f32.mrf.mxu0  ;;  %v1304_v30 = vld [vmem:[%s10929_s13 + $0x268] sm:$0xff] }
 0x16e   : > { %v8415_v32 = vsel %vm949_vm2, 1.0, %v10545_v13  ;;  %v8416_v38 = vsel %vm950_vm3, 1.0, %v10545_v13 }
 0x16f   : > { %9792 = vmatmul.mubr.msk.f32.gmra.mxu0 %vm2131_vm0, %v8414_v31  ;;  %v1303_v31 = vld [vmem:[%s10929_s13 + $0x260] sm:$0xff] }
 0x170   : > { %v788_v35 = vpop.permute.xlu1 %787  ;;  %9794 = vmatprep.mubr.msk.f32.mxu0 %vm2131_vm0, %v8415_v32  ;;  %v785_v36 = vpop.permute.xlu0 %784 }
 0x171   : > { %vm951_vm4 = vcmp.eq.s32.totalorder %v10741_v8, %v785_v36  ;;  %1539 = vperm.xlu1 %10477, %v1288_v33   ;;  %1536 = vperm.xlu0 %10476, %v1287_v34   ;;  %vm952_vm5 = vcmp.eq.s32.totalorder %v10741_v8, %v788_v35  ;;  %v11282_v34 = vpop.f32.mrf.mxu0 }
 0x172   : > { %v8417_v39 = vsel %vm951_vm4, 1.0, %v10545_v13  ;;  %v8418_v45 = vsel %vm952_vm5, 1.0, %v10545_v13 }
 0x173   : > { %9795 = vmatmul.mubr.msk.f32.gmra.mxu0 %vm2131_vm0, %v8416_v38  ;;  %v1306_v38 = vld [vmem:[%s10929_s13 + $0x278] sm:$0xff] }
 0x174   : > { %v1360_v42 = vpop.permute.xlu1 %1359  ;;  %9797 = vmatprep.mubr.msk.f32.mxu0 %vm2131_vm0, %v8417_v39  ;;  %v1357_v43 = vpop.permute.xlu0 %1356  ;;  %v1305_v39 = vld [vmem:[%s10929_s13 + $0x270] sm:$0xff] }
 0x175   : > { %vm1740_vm6 = vcmp.eq.s32.totalorder %v10741_v8, %v1360_v42  ;;  %1545 = vperm.xlu1 %10477, %v1290_v40   ;;  %1542 = vperm.xlu0 %10476, %v1289_v41   ;;  %vm1739_vm7 = vcmp.eq.s32.totalorder %v10741_v8, %v1357_v43  ;;  %v11292_v42 = vpop.f32.mrf.mxu0 }
 0x176   : > { %v8438_v46 = vsel %vm1740_vm6, 1.0, %v10545_v13  ;;  %v8437_v47 = vsel %vm1739_vm7, 1.0, %v10545_v13 }
 0x177   : > { %9798 = vmatmul.mubr.msk.f32.gmra.mxu0 %vm2131_vm0, %v8418_v45  ;;  %9843 = vmatprep.mubr.msk.f32.mxu1 %vm2131_vm0, %v8437_v47  ;;  %v1307_v47 = vld [vmem:[%s10929_s13 + $0x280] sm:$0xff] }
 0x178   : > { %v1366_v50 = vpop.permute.xlu1 %1365  ;;  %9844 = vmatmul.mubr.msk.f32.vlgmr.msra.gmra.mxu1 %vm2131_vm0, %v8438_v46  ;;  %v1363_v51 = vpop.permute.xlu0 %1362  ;;  %v1308_v46 = vld [vmem:[%s10929_s13 + $0x288] sm:$0xff] }
 0x179   : > { %vm1742_vm8 = vcmp.eq.s32.totalorder %v10741_v8, %v1366_v50  ;;  %vm1741_vm9 = vcmp.eq.s32.totalorder %v10741_v8, %v1363_v51  ;;  %1551 = vperm.xlu1 %10477, %v1292_v48   ;;  %1548 = vperm.xlu0 %10476, %v1291_v49   ;;  %v1310_v50 = vld [vmem:[%s10929_s13 + $0x298] sm:$0xff]  ;;  %v11303_v51 = vpop.f32.mrf.mxu0 }
 0x17a   : > { %v8440_v54 = vsel %vm1742_vm8, 1.0, %v10545_v13  ;;  %v8439_v55 = vsel %vm1741_vm9, 1.0, %v10545_v13  ;;  %10236 = vmatpush3.msra.mxu1 %v11017_v27 }
 0x17b   : > { %9846 = vmatprep.mubr.msk.f32.mxu1 %vm2131_vm0, %v8439_v55  ;;  %10237 = vmatprep.subr.mxu1 %v4312_v52  ;;  %v1309_v55 = vld [vmem:[%s10929_s13 + $0x290] sm:$0xff] }
 0x17c   : > { %v1372_v58 = vpop.permute.xlu1 %1371  ;;  %9847 = vmatmul.mubr.msk.f32.gmra.mxu1 %vm2131_vm0, %v8440_v54  ;;  %v1369_v59 = vpop.permute.xlu0 %1368 }
 0x17d   : > { %vm1744_vm10 = vcmp.eq.s32.totalorder %v10741_v8, %v1372_v58  ;;  %vm1743_vm11 = vcmp.eq.s32.totalorder %v10741_v8, %v1369_v59  ;;  %1557 = vperm.xlu1 %10477, %v1294_v56   ;;  %1554 = vperm.xlu0 %10476, %v1293_v57   ;;  %v4315_v56 = vld [vmem:[%s13712_s4 + $0x8] sm:$0xff] }
 0x17e   : > { %v8442_v61 = vsel %vm1744_vm10, 1.0, %v10545_v13  ;;  %v8441_v27 = vsel %vm1743_vm11, 1.0, %v10545_v13  ;;  %10238 = vmatpush3.msra.mxu1 %v4312_v52  ;;  %v4311_v57 = vld [vmem:[%s13711_s3 + $0x8] sm:$0xff]  ;;  %10039 = vmatprep.subr.mxu0 %v4315_v56 }
 0x17f   : > { %9849 = vmatprep.mubr.msk.f32.mxu1 %vm2131_vm0, %v8441_v27  ;;  %10239 = vmatprep.subr.mxu1 %v4311_v57 }
 0x180   : > { %v1378_v0 = vpop.permute.xlu1 %1377  ;;  %9850 = vmatmul.mubr.msk.f32.gmra.mxu1 %vm2131_vm0, %v8442_v61  ;;  %v1375_v1 = vpop.permute.xlu0 %1374  ;;  %10040 = vmatpush3.msra.mxu0 %v4315_v56  ;;  %v1323_v56 = vld [vmem:[%s10929_s13 + $0x300] sm:$0xff] }
 0x181   : > { %vm1746_vm12 = vcmp.eq.s32.totalorder %v10741_v8, %v1378_v0  ;;  %vm1745_vm13 = vcmp.eq.s32.totalorder %v10741_v8, %v1375_v1  ;;  %1563 = vperm.xlu1 %10477, %v1296_v62   ;;  %1560 = vperm.xlu0 %10476, %v1295_v63   ;;  %v11318_v61 = vpop.f32.mrf.mxu0  ;;  %v1312_v63 = vld [vmem:[%s10929_s13 + $0x2a8] sm:$0xff]  ;;  %v1311_v0 = vld [vmem:[%s10929_s13 + $0x2a0] sm:$0xff] }
 0x182   : > { %v8444_v3 = vsel %vm1746_vm12, 1.0, %v10545_v13  ;;  %v8443_v4 = vsel %vm1745_vm13, 1.0, %v10545_v13  ;;  %10240 = vmatpush3.msra.mxu1 %v4311_v57 }
 0x183   : > { %9852 = vmatprep.mubr.msk.f32.mxu1 %vm2131_vm0, %v8443_v4  ;;  %v11328_v4 = vpop.f32.mrf.mxu0 }
 0x184   : > { %v1384_v9 = vpop.permute.xlu1 %1383  ;;  %9853 = vmatmul.mubr.msk.f32.gmra.mxu1 %vm2131_vm0, %v8444_v3  ;;  %v1381_v10 = vpop.permute.xlu0 %1380 }
 0x185   : > { %vm1748_vm14 = vcmp.eq.s32.totalorder %v10741_v8, %v1384_v9  ;;  %vm1747_vm15 = vcmp.eq.s32.totalorder %v10741_v8, %v1381_v10  ;;  %1569 = vperm.xlu1 %10477, %v1298_v6   ;;  %1566 = vperm.xlu0 %10476, %v1297_v7   ;;  %v1314_v9 = vld [vmem:[%s10929_s13 + $0x2b8] sm:$0xff]  ;;  %v1313_v10 = vld [vmem:[%s10929_s13 + $0x2b0] sm:$0xff] }
 0x186   : > { %v8446_v12 = vsel %vm1748_vm14, 1.0, %v10545_v13  ;;  %v8445_v14 = vsel %vm1747_vm15, 1.0, %v10545_v13 }
 0x187   : > { %9855 = vmatprep.mubr.msk.f32.mxu1 %vm2131_vm0, %v8445_v14 }
 0x188   : > { %v1390_v17 = vpop.permute.xlu1 %1389  ;;  %9856 = vmatmul.mubr.msk.f32.gmra.mxu1 %vm2131_vm0, %v8446_v12  ;;  %v1387_v18 = vpop.permute.xlu0 %1386 }
 0x189   : > { %vm1750_vm1 = vcmp.eq.s32.totalorder %v10741_v8, %v1390_v17  ;;  %vm1749_vm2 = vcmp.eq.s32.totalorder %v10741_v8, %v1387_v18  ;;  %1575 = vperm.xlu1 %10477, %v1300_v15   ;;  %1572 = vperm.xlu0 %10476, %v1299_v16   ;;  %v11338_v15 = vpop.f32.mrf.mxu0  ;;  %v1316_v18 = vld [vmem:[%s10929_s13 + $0x2c8] sm:$0xff] }
 0x18a   : > { %v8448_v20 = vsel %vm1750_vm1, 1.0, %v10545_v13  ;;  %v8447_v21 = vsel %vm1749_vm2, 1.0, %v10545_v13 }
 0x18b   : > { %9858 = vmatprep.mubr.msk.f32.mxu1 %vm2131_vm0, %v8447_v21 }
 0x18c   : > { %v1396_v24 = vpop.permute.xlu1 %1395  ;;  %9859 = vmatmul.mubr.msk.f32.gmra.mxu1 %vm2131_vm0, %v8448_v20  ;;  %v1393_v25 = vpop.permute.xlu0 %1392  ;;  %v1315_v20 = vld [vmem:[%s10929_s13 + $0x2c0] sm:$0xff] }
 0x18d   : > { %vm1752_vm3 = vcmp.eq.s32.totalorder %v10741_v8, %v1396_v24  ;;  %vm1751_vm4 = vcmp.eq.s32.totalorder %v10741_v8, %v1393_v25  ;;  %1581 = vperm.xlu1 %10477, %v1302_v22   ;;  %1578 = vperm.xlu0 %10476, %v1301_v23   ;;  %v11348_v23 = vpop.f32.mrf.mxu0 }
 0x18e   : > { %v8450_v28 = vsel %vm1752_vm3, 1.0, %v10545_v13  ;;  %v8449_v29 = vsel %vm1751_vm4, 1.0, %v10545_v13 }
 0x18f   : > { %9861 = vmatprep.mubr.msk.f32.mxu1 %vm2131_vm0, %v8449_v29  ;;  %v1317_v29 = vld [vmem:[%s10929_s13 + $0x2d0] sm:$0xff] }
 0x190   : > { %v1402_v32 = vpop.permute.xlu1 %1401  ;;  %9862 = vmatmul.mubr.msk.f32.gmra.mxu1 %vm2131_vm0, %v8450_v28  ;;  %v1399_v33 = vpop.permute.xlu0 %1398  ;;  %v1318_v28 = vld [vmem:[%s10929_s13 + $0x2d8] sm:$0xff] }
 0x191   : > { %vm1754_vm5 = vcmp.eq.s32.totalorder %v10741_v8, %v1402_v32  ;;  %vm1753_vm6 = vcmp.eq.s32.totalorder %v10741_v8, %v1399_v33  ;;  %1587 = vperm.xlu1 %10477, %v1304_v30   ;;  %1584 = vperm.xlu0 %10476, %v1303_v31   ;;  %v11358_v32 = vpop.f32.mrf.mxu0 }
 0x192   : > { %v8452_v35 = vsel %vm1754_vm5, 1.0, %v10545_v13  ;;  %v8451_v36 = vsel %vm1753_vm6, 1.0, %v10545_v13 }
 0x193   : > { %9864 = vmatprep.mubr.msk.f32.mxu1 %vm2131_vm0, %v8451_v36  ;;  %v1320_v36 = vld [vmem:[%s10929_s13 + $0x2e8] sm:$0xff] }
 0x194   : > { %v1408_v40 = vpop.permute.xlu1 %1407  ;;  %9865 = vmatmul.mubr.msk.f32.gmra.mxu1 %vm2131_vm0, %v8452_v35  ;;  %v1405_v41 = vpop.permute.xlu0 %1404 }
 0x195   : > { %vm1756_vm7 = vcmp.eq.s32.totalorder %v10741_v8, %v1408_v40  ;;  %vm1755_vm8 = vcmp.eq.s32.totalorder %v10741_v8, %v1405_v41  ;;  %1593 = vperm.xlu1 %10477, %v1306_v38   ;;  %1590 = vperm.xlu0 %10476, %v1305_v39   ;;  %v1319_v38 = vld [vmem:[%s10929_s13 + $0x2e0] sm:$0xff]  ;;  %v11368_v41 = vpop.f32.mrf.mxu0 }
 0x196   : > { %v8454_v43 = vsel %vm1756_vm7, 1.0, %v10545_v13  ;;  %v8453_v45 = vsel %vm1755_vm8, 1.0, %v10545_v13 }
 0x197   : > { %9867 = vmatprep.mubr.msk.f32.mxu1 %vm2131_vm0, %v8453_v45 }
 0x198   : > { %v1414_v48 = vpop.permute.xlu1 %1413  ;;  %9868 = vmatmul.mubr.msk.f32.gmra.mxu1 %vm2131_vm0, %v8454_v43  ;;  %v1411_v49 = vpop.permute.xlu0 %1410 }
 0x199   : > { %vm1758_vm9 = vcmp.eq.s32.totalorder %v10741_v8, %v1414_v48  ;;  %vm1757_vm10 = vcmp.eq.s32.totalorder %v10741_v8, %v1411_v49  ;;  %1599 = vperm.xlu1 %10477, %v1308_v46   ;;  %1596 = vperm.xlu0 %10476, %v1307_v47   ;;  %v1322_v46 = vld [vmem:[%s10929_s13 + $0x2f8] sm:$0xff]  ;;  %v1321_v47 = vld [vmem:[%s10929_s13 + $0x2f0] sm:$0xff] }
 0x19a   : > { %v8456_v52 = vsel %vm1758_vm9, 1.0, %v10545_v13  ;;  %v8455_v54 = vsel %vm1757_vm10, 1.0, %v10545_v13 }
 0x19b   : > { %9870 = vmatprep.mubr.msk.f32.mxu1 %vm2131_vm0, %v8455_v54 }
 0x19c   : > { %v1420_v58 = vpop.permute.xlu1 %1419  ;;  %9871 = vmatmul.mubr.msk.f32.gmra.mxu1 %vm2131_vm0, %v8456_v52  ;;  %v1417_v59 = vpop.permute.xlu0 %1416 }
 0x19d   : > { %vm1760_vm11 = vcmp.eq.s32.totalorder %v10741_v8, %v1420_v58  ;;  %vm1759_vm12 = vcmp.eq.s32.totalorder %v10741_v8, %v1417_v59  ;;  %1605 = vperm.xlu1 %10477, %v1310_v50   ;;  %1602 = vperm.xlu0 %10476, %v1309_v55   ;;  %v11378_v50 = vpop.f32.mrf.mxu0  ;;  %v1324_v55 = vld [vmem:[%s10929_s13 + $0x308] sm:$0xff] }
 0x19e   : > { %v8458_v27 = vsel %vm1760_vm11, 1.0, %v10545_v13  ;;  %v8457_v62 = vsel %vm1759_vm12, 1.0, %v10545_v13 }
 0x19f   : > { %9873 = vmatprep.mubr.msk.f32.mxu1 %vm2131_vm0, %v8457_v62  ;;  %v11388_v59 = vpop.f32.mrf.mxu0 }
 0x1a0   : > { %v1426_v1 = vpop.permute.xlu1 %1425  ;;  %9874 = vmatmul.mubr.msk.f32.gmra.mxu1 %vm2131_vm0, %v8458_v27  ;;  %v1423_v3 = vpop.permute.xlu0 %1422 }
 0x1a1   : > { %vm1762_vm13 = vcmp.eq.s32.totalorder %v10741_v8, %v1426_v1  ;;  %vm1761_vm14 = vcmp.eq.s32.totalorder %v10741_v8, %v1423_v3  ;;  %1611 = vperm.xlu1 %10477, %v1312_v63   ;;  %1608 = vperm.xlu0 %10476, %v1311_v0   ;;  %v1326_v63 = vld [vmem:[%s10929_s13 + $0x318] sm:$0xff]  ;;  %v1325_v0 = vld [vmem:[%s10929_s13 + $0x310] sm:$0xff] }
 0x1a2   : > { %v8460_v6 = vsel %vm1762_vm13, 1.0, %v10545_v13  ;;  %v8459_v7 = vsel %vm1761_vm14, 1.0, %v10545_v13 }
 0x1a3   : > { %9876 = vmatprep.mubr.msk.f32.mxu1 %vm2131_vm0, %v8459_v7 }
 0x1a4   : > { %v1432_v12 = vpop.permute.xlu1 %1431  ;;  %9877 = vmatmul.mubr.msk.f32.gmra.mxu1 %vm2131_vm0, %v8460_v6  ;;  %v1429_v14 = vpop.permute.xlu0 %1428 }
 0x1a5   : > { %vm1764_vm15 = vcmp.eq.s32.totalorder %v10741_v8, %v1432_v12  ;;  %vm1763_vm1 = vcmp.eq.s32.totalorder %v10741_v8, %v1429_v14  ;;  %1617 = vperm.xlu1 %10477, %v1314_v9   ;;  %1614 = vperm.xlu0 %10476, %v1313_v10   ;;  %v11398_v6 = vpop.f32.mrf.mxu0  ;;  %v1328_v10 = vld [vmem:[%s10929_s13 + $0x328] sm:$0xff]  ;;  %v1327_v12 = vld [vmem:[%s10929_s13 + $0x320] sm:$0xff] }
 0x1a6   : > { %v8462_v16 = vsel %vm1764_vm15, 1.0, %v10545_v13  ;;  %v8461_v17 = vsel %vm1763_vm1, 1.0, %v10545_v13 }
 0x1a7   : > { %9879 = vmatprep.mubr.msk.f32.mxu1 %vm2131_vm0, %v8461_v17  ;;  %v11408_v17 = vpop.f32.mrf.mxu0 }
 0x1a8   : > { %v1438_v21 = vpop.permute.xlu1 %1437  ;;  %9880 = vmatmul.mubr.msk.f32.gmra.mxu1 %vm2131_vm0, %v8462_v16  ;;  %v1435_v22 = vpop.permute.xlu0 %1434 }
 0x1a9   : > { %vm1766_vm2 = vcmp.eq.s32.totalorder %v10741_v8, %v1438_v21  ;;  %vm1765_vm3 = vcmp.eq.s32.totalorder %v10741_v8, %v1435_v22  ;;  %1623 = vperm.xlu1 %10477, %v1316_v18   ;;  %1620 = vperm.xlu0 %10476, %v1315_v20   ;;  %v1330_v21 = vld [vmem:[%s10929_s13 + $0x338] sm:$0xff]  ;;  %v1329_v22 = vld [vmem:[%s10929_s13 + $0x330] sm:$0xff] }
 0x1aa   : > { %v8464_v24 = vsel %vm1766_vm2, 1.0, %v10545_v13  ;;  %v8463_v25 = vsel %vm1765_vm3, 1.0, %v10545_v13 }
 0x1ab   : > { %9882 = vmatprep.mubr.msk.f32.mxu1 %vm2131_vm0, %v8463_v25 }
 0x1ac   : > { %v1444_v30 = vpop.permute.xlu1 %1443  ;;  %9883 = vmatmul.mubr.msk.f32.gmra.mxu1 %vm2131_vm0, %v8464_v24  ;;  %v1441_v31 = vpop.permute.xlu0 %1440 }
 0x1ad   : > { %vm1768_vm4 = vcmp.eq.s32.totalorder %v10741_v8, %v1444_v30  ;;  %vm1767_vm5 = vcmp.eq.s32.totalorder %v10741_v8, %v1441_v31  ;;  %1629 = vperm.xlu1 %10477, %v1318_v28   ;;  %1626 = vperm.xlu0 %10476, %v1317_v29   ;;  %v11418_v28 = vpop.f32.mrf.mxu0  ;;  %v1332_v31 = vld [vmem:[%s10929_s13 + $0x348] sm:$0xff] }
 0x1ae   : > { %v8466_v33 = vsel %vm1768_vm4, 1.0, %v10545_v13  ;;  %v8465_v35 = vsel %vm1767_vm5, 1.0, %v10545_v13 }
 0x1af   : > { %9885 = vmatprep.mubr.msk.f32.mxu1 %vm2131_vm0, %v8465_v35 }
 0x1b0   : > { %v1450_v39 = vpop.permute.xlu1 %1449  ;;  %9886 = vmatmul.mubr.msk.f32.gmra.mxu1 %vm2131_vm0, %v8466_v33  ;;  %v1447_v40 = vpop.permute.xlu0 %1446  ;;  %v1331_v33 = vld [vmem:[%s10929_s13 + $0x340] sm:$0xff] }
 0x1b1   : > { %vm1770_vm6 = vcmp.eq.s32.totalorder %v10741_v8, %v1450_v39  ;;  %vm1769_vm7 = vcmp.eq.s32.totalorder %v10741_v8, %v1447_v40  ;;  %1635 = vperm.xlu1 %10477, %v1320_v36   ;;  %1632 = vperm.xlu0 %10476, %v1319_v38   ;;  %v11428_v38 = vpop.f32.mrf.mxu0 }
 0x1b2   : > { %v8468_v43 = vsel %vm1770_vm6, 1.0, %v10545_v13  ;;  %v8467_v45 = vsel %vm1769_vm7, 1.0, %v10545_v13 }
 0x1b3   : > { %9888 = vmatprep.mubr.msk.f32.mxu1 %vm2131_vm0, %v8467_v45  ;;  %v1333_v45 = vld [vmem:[%s10929_s13 + $0x350] sm:$0xff] }
 0x1b4   : > { %v1456_v48 = vpop.permute.xlu1 %1455  ;;  %9889 = vmatmul.mubr.msk.f32.gmra.mxu1 %vm2131_vm0, %v8468_v43  ;;  %v1453_v49 = vpop.permute.xlu0 %1452  ;;  %v1334_v43 = vld [vmem:[%s10929_s13 + $0x358] sm:$0xff] }
 0x1b5   : > { %vm1772_vm8 = vcmp.eq.s32.totalorder %v10741_v8, %v1456_v48  ;;  %vm1771_vm9 = vcmp.eq.s32.totalorder %v10741_v8, %v1453_v49  ;;  %1641 = vperm.xlu1 %10477, %v1322_v46   ;;  %1638 = vperm.xlu0 %10476, %v1321_v47   ;;  %v11438_v48 = vpop.f32.mrf.mxu0 }
 0x1b6   : > { %v8470_v52 = vsel %vm1772_vm8, 1.0, %v10545_v13  ;;  %v8469_v54 = vsel %vm1771_vm9, 1.0, %v10545_v13 }
 0x1b7   : > { %9891 = vmatprep.mubr.msk.f32.mxu1 %vm2131_vm0, %v8469_v54  ;;  %v1336_v54 = vld [vmem:[%s10929_s13 + $0x368] sm:$0xff] }
 0x1b8   : > { %v1462_v57 = vpop.permute.xlu1 %1461  ;;  %9892 = vmatmul.mubr.msk.f32.gmra.mxu1 %vm2131_vm0, %v8470_v52  ;;  %v1459_v58 = vpop.permute.xlu0 %1458 }
 0x1b9   : > { %vm1774_vm10 = vcmp.eq.s32.totalorder %v10741_v8, %v1462_v57  ;;  %vm1773_vm11 = vcmp.eq.s32.totalorder %v10741_v8, %v1459_v58  ;;  %1647 = vperm.xlu1 %10477, %v1324_v55   ;;  %1644 = vperm.xlu0 %10476, %v1323_v56   ;;  %v1335_v55 = vld [vmem:[%s10929_s13 + $0x360] sm:$0xff]  ;;  %v11448_v58 = vpop.f32.mrf.mxu0 }
 0x1ba   : > { %v8472_v27 = vsel %vm1774_vm10, 1.0, %v10545_v13  ;;  %v8471_v62 = vsel %vm1773_vm11, 1.0, %v10545_v13 }
 0x1bb   : > { %9894 = vmatprep.mubr.msk.f32.mxu1 %vm2131_vm0, %v8471_v62 }
 0x1bc   : > { %v1468_v1 = vpop.permute.xlu1 %1467  ;;  %9895 = vmatmul.mubr.msk.f32.gmra.mxu1 %vm2131_vm0, %v8472_v27  ;;  %v1465_v3 = vpop.permute.xlu0 %1464 }
 0x1bd   : > { %vm1776_vm12 = vcmp.eq.s32.totalorder %v10741_v8, %v1468_v1  ;;  %vm1775_vm13 = vcmp.eq.s32.totalorder %v10741_v8, %v1465_v3  ;;  %1653 = vperm.xlu1 %10477, %v1326_v63   ;;  %1650 = vperm.xlu0 %10476, %v1325_v0   ;;  %v1337_v63 = vld [vmem:[%s10929_s13 + $0x370] sm:$0xff] }
 0x1be   : > { %v8474_v7 = vsel %vm1776_vm12, 1.0, %v10545_v13  ;;  %v8473_v9 = vsel %vm1775_vm13, 1.0, %v10545_v13  ;;  %v441_v0 = vld [vmem:[%s10661_s7 + $0x370] sm:$0xff] }
 0x1bf   : > { %9897 = vmatprep.mubr.msk.f32.mxu1 %vm2131_vm0, %v8473_v9 }
 0x1c0   : > { %v1474_v14 = vpop.permute.xlu1 %1473  ;;  %9898 = vmatmul.mubr.msk.f32.gmra.mxu1 %vm2131_vm0, %v8474_v7  ;;  %v1471_v16 = vpop.permute.xlu0 %1470 }
 0x1c1   : > { %vm1778_vm14 = vcmp.eq.s32.totalorder %v10741_v8, %v1474_v14  ;;  %vm1777_vm15 = vcmp.eq.s32.totalorder %v10741_v8, %v1471_v16  ;;  %1659 = vperm.xlu1 %10477, %v1328_v10   ;;  %1656 = vperm.xlu0 %10476, %v1327_v12   ;;  %v11458_v7 = vpop.f32.mrf.mxu0  ;;  %v1338_v12 = vld [vmem:[%s10929_s13 + $0x378] sm:$0xff] }
 0x1c2   : > { %v8476_v18 = vsel %vm1778_vm14, 1.0, %v10545_v13  ;;  %v8475_v20 = vsel %vm1777_vm15, 1.0, %v10545_v13  ;;  %v442_v14 = vld [vmem:[%s10661_s7 + $0x378] sm:$0xff] }
 0x1c3   : > { %9900 = vmatprep.mubr.msk.f32.mxu1 %vm2131_vm0, %v8475_v20  ;;  %v11468_v20 = vpop.f32.mrf.mxu0 }
 0x1c4   : > { %v1480_v24 = vpop.permute.xlu1 %1479  ;;  %9901 = vmatmul.mubr.msk.f32.gmra.mxu1 %vm2131_vm0, %v8476_v18  ;;  %v1477_v25 = vpop.permute.xlu0 %1476  ;;  %13725 = vst [vmem:[#allocation7_spill] sm:$0xff] %v11468_v20 }
 0x1c5   : > { %vm1780_vm1 = vcmp.eq.s32.totalorder %v10741_v8, %v1480_v24  ;;  %vm1779_vm2 = vcmp.eq.s32.totalorder %v10741_v8, %v1477_v25  ;;  %1665 = vperm.xlu1 %10477, %v1330_v21   ;;  %1662 = vperm.xlu0 %10476, %v1329_v22   ;;  %v1339_v24 = vld [vmem:[%s10929_s13 + $0x380] sm:$0xff] }
 0x1c6   : > { %v8478_v29 = vsel %vm1780_vm1, 1.0, %v10545_v13  ;;  %v8477_v30 = vsel %vm1779_vm2, 1.0, %v10545_v13  ;;  %v443_v25 = vld [vmem:[%s10661_s7 + $0x380] sm:$0xff] }
 0x1c7   : > { %9903 = vmatprep.mubr.msk.f32.mxu1 %vm2131_vm0, %v8477_v30  ;;  %v4310_v30 = vld [vmem:[%s13711_s3] sm:$0xff] }
 0x1c8   : > { %v1486_v35 = vpop.permute.xlu1 %1485  ;;  %9904 = vmatmul.mubr.msk.f32.gmra.mxu1 %vm2131_vm0, %v8478_v29  ;;  %v1483_v36 = vpop.permute.xlu0 %1482  ;;  %v4314_v29 = vld [vmem:[%s13712_s4] sm:$0xff]  ;;  %10241 = vmatprep.subr.mxu1 %v4310_v30 }
 0x1c9   : > { %vm1782_vm3 = vcmp.eq.s32.totalorder %v10741_v8, %v1486_v35  ;;  %vm1781_vm4 = vcmp.eq.s32.totalorder %v10741_v8, %v1483_v36  ;;  %1671 = vperm.xlu1 %10477, %v1332_v31   ;;  %1668 = vperm.xlu0 %10476, %v1331_v33   ;;  %v11484_v35 = vpop.f32.mrf.mxu0 }
 0x1ca   : > { %v8480_v39 = vsel %vm1782_vm3, 1.0, %v10545_v13  ;;  %v8479_v40 = vsel %vm1781_vm4, 1.0, %v10545_v13  ;;  %10041 = vmatprep.subr.mxu0 %v4314_v29  ;;  %10242 = vmatpush3.msra.mxu1 %v4310_v30  ;;  %v1344_v30 = vld [vmem:[%s10929_s13 + $0x3a8] sm:$0xff] }
 0x1cb   : > { %9906 = vmatprep.mubr.msk.f32.mxu1 %vm2131_vm0, %v8479_v40  ;;  %v1340_v40 = vld [vmem:[%s10929_s13 + $0x388] sm:$0xff]  ;;  %10042 = vmatpush3.msra.mxu0 %v4314_v29 }
 0x1cc   : > { %v1492_v46 = vpop.permute.xlu1 %1491  ;;  %9907 = vmatmul.mubr.msk.f32.gmra.mxu1 %vm2131_vm0, %v8480_v39  ;;  %v1489_v47 = vpop.permute.xlu0 %1488 }
 0x1cd   : > { %vm1784_vm5 = vcmp.eq.s32.totalorder %v10741_v8, %v1492_v46  ;;  %vm1783_vm6 = vcmp.eq.s32.totalorder %v10741_v8, %v1489_v47  ;;  %1677 = vperm.xlu1 %10477, %v1334_v43   ;;  %1674 = vperm.xlu0 %10476, %v1333_v45   ;;  %v444_v43 = vld [vmem:[%s10661_s7 + $0x388] sm:$0xff]  ;;  %v11494_v47 = vpop.f32.mrf.mxu0 }
 0x1ce   : > { %v8482_v49 = vsel %vm1784_vm5, 1.0, %v10545_v13  ;;  %v8481_v52 = vsel %vm1783_vm6, 1.0, %v10545_v13  ;;  %13726 = vst [vmem:[#allocation8_spill] sm:$0xff] %v11494_v47 }
 0x1cf   : > { %9909 = vmatprep.mubr.msk.f32.mxu1 %vm2131_vm0, %v8481_v52 }
 0x1d0   : > { %v1498_v56 = vpop.permute.xlu1 %1497  ;;  %9910 = vmatmul.mubr.msk.f32.gmra.mxu1 %vm2131_vm0, %v8482_v49  ;;  %v1495_v57 = vpop.permute.xlu0 %1494 }
 0x1d1   : > { %vm1786_vm7 = vcmp.eq.s32.totalorder %v10741_v8, %v1498_v56  ;;  %vm1785_vm8 = vcmp.eq.s32.totalorder %v10741_v8, %v1495_v57  ;;  %1683 = vperm.xlu1 %10477, %v1336_v54   ;;  %1680 = vperm.xlu0 %10476, %v1335_v55   ;;  %v1341_v54 = vld [vmem:[%s10929_s13 + $0x390] sm:$0xff] }
 0x1d2   : > { %v8484_v27 = vsel %vm1786_vm7, 1.0, %v10545_v13  ;;  %v8483_v62 = vsel %vm1785_vm8, 1.0, %v10545_v13  ;;  %v445_v55 = vld [vmem:[%s10661_s7 + $0x390] sm:$0xff] }
 0x1d3   : > { %9912 = vmatprep.mubr.msk.f32.mxu1 %vm2131_vm0, %v8483_v62 }
 0x1d4   : > { %v1504_v1 = vpop.permute.xlu1 %1503  ;;  %9913 = vmatmul.mubr.msk.f32.gmra.mxu1 %vm2131_vm0, %v8484_v27  ;;  %v1501_v3 = vpop.permute.xlu0 %1500 }
 0x1d5   : > { %vm1788_vm9 = vcmp.eq.s32.totalorder %v10741_v8, %v1504_v1  ;;  %vm1787_vm10 = vcmp.eq.s32.totalorder %v10741_v8, %v1501_v3  ;;  %1686 = vperm.xlu1 %10477, %v1337_v63   ;;  %790 = vperm.xlu0 %10476, %v441_v0   ;;  %v11504_v27 = vpop.f32.mrf.mxu0  ;;  %v1342_v0 = vld [vmem:[%s10929_s13 + $0x398] sm:$0xff] }
 0x1d6   : > { %v8486_v9 = vsel %vm1788_vm9, 1.0, %v10545_v13  ;;  %v8485_v10 = vsel %vm1787_vm10, 1.0, %v10545_v13  ;;  %13727 = vst [vmem:[#allocation9_spill] sm:$0xff] %v11504_v27  ;;  %v446_v1 = vld [vmem:[%s10661_s7 + $0x398] sm:$0xff] }
 0x1d7   : > { %9915 = vmatprep.mubr.msk.f32.mxu1 %vm2131_vm0, %v8485_v10  ;;  %v11514_v10 = vpop.f32.mrf.mxu0 }
 0x1d8   : > { %v1510_v16 = vpop.permute.xlu1 %1509  ;;  %9916 = vmatmul.mubr.msk.f32.gmra.mxu1 %vm2131_vm0, %v8486_v9  ;;  %v1507_v18 = vpop.permute.xlu0 %1506  ;;  %13728 = vst [vmem:[#allocation10_spill] sm:$0xff] %v11514_v10 }
 0x1d9   : > { %vm1790_vm11 = vcmp.eq.s32.totalorder %v10741_v8, %v1510_v16  ;;  %vm1789_vm12 = vcmp.eq.s32.totalorder %v10741_v8, %v1507_v18  ;;  %1689 = vperm.xlu1 %10477, %v1338_v12   ;;  %793 = vperm.xlu0 %10476, %v442_v14   ;;  %v1343_v16 = vld [vmem:[%s10929_s13 + $0x3a0] sm:$0xff] }
 0x1da   : > { %v8488_v21 = vsel %vm1790_vm11, 1.0, %v10545_v13  ;;  %v8487_v22 = vsel %vm1789_vm12, 1.0, %v10545_v13  ;;  %v447_v18 = vld [vmem:[%s10661_s7 + $0x3a0] sm:$0xff] }
 0x1db   : > { %9918 = vmatprep.mubr.msk.f32.mxu1 %vm2131_vm0, %v8487_v22 }
 0x1dc   : > { %v1516_v31 = vpop.permute.xlu1 %1515  ;;  %9919 = vmatmul.mubr.msk.f32.gmra.mxu1 %vm2131_vm0, %v8488_v21  ;;  %v1513_v33 = vpop.permute.xlu0 %1512 }
 0x1dd   : > { %vm1792_vm13 = vcmp.eq.s32.totalorder %v10741_v8, %v1516_v31  ;;  %vm1791_vm14 = vcmp.eq.s32.totalorder %v10741_v8, %v1513_v33  ;;  %1692 = vperm.xlu1 %10477, %v1339_v24   ;;  %796 = vperm.xlu0 %10476, %v443_v25   ;;  %v11524_v24 = vpop.f32.mrf.mxu0  ;;  %v448_v31 = vld [vmem:[%s10661_s7 + $0x3a8] sm:$0xff] }
 0x1de   : > { %v8490_v36 = vsel %vm1792_vm13, 1.0, %v10545_v13  ;;  %v8489_v39 = vsel %vm1791_vm14, 1.0, %v10545_v13  ;;  %13729 = vst [vmem:[#allocation11_spill] sm:$0xff] %v11524_v24 }
 0x1df   : > { %9921 = vmatprep.mubr.msk.f32.mxu1 %vm2131_vm0, %v8489_v39  ;;  %v11534_v39 = vpop.f32.mrf.mxu0 }
 0x1e0   : > { %v1522_v45 = vpop.permute.xlu1 %1521  ;;  %9922 = vmatmul.mubr.msk.f32.gmra.mxu1 %vm2131_vm0, %v8490_v36  ;;  %v1519_v46 = vpop.permute.xlu0 %1518  ;;  %13730 = vst [vmem:[#allocation12_spill] sm:$0xff] %v11534_v39 }
 0x1e1   : > { %vm1794_vm15 = vcmp.eq.s32.totalorder %v10741_v8, %v1522_v45  ;;  %vm1793_vm1 = vcmp.eq.s32.totalorder %v10741_v8, %v1519_v46  ;;  %1695 = vperm.xlu1 %10477, %v1340_v40   ;;  %799 = vperm.xlu0 %10476, %v444_v43   ;;  %v1345_v45 = vld [vmem:[%s10929_s13 + $0x3b0] sm:$0xff] }
 0x1e2   : > { %v8492_v49 = vsel %vm1794_vm15, 1.0, %v10545_v13  ;;  %v8491_v52 = vsel %vm1793_vm1, 1.0, %v10545_v13  ;;  %v449_v46 = vld [vmem:[%s10661_s7 + $0x3b0] sm:$0xff] }
 0x1e3   : > { %9924 = vmatprep.mubr.msk.f32.mxu1 %vm2131_vm0, %v8491_v52 }
 0x1e4   : > { %v1528_v56 = vpop.permute.xlu1 %1527  ;;  %9925 = vmatmul.mubr.msk.f32.gmra.mxu1 %vm2131_vm0, %v8492_v49  ;;  %v1525_v57 = vpop.permute.xlu0 %1524 }
 0x1e5   : > { %vm1796_vm2 = vcmp.eq.s32.totalorder %v10741_v8, %v1528_v56  ;;  %vm1795_vm3 = vcmp.eq.s32.totalorder %v10741_v8, %v1525_v57  ;;  %1698 = vperm.xlu1 %10477, %v1341_v54   ;;  %802 = vperm.xlu0 %10476, %v445_v55   ;;  %v11544_v54 = vpop.f32.mrf.mxu0  ;;  %v1346_v57 = vld [vmem:[%s10929_s13 + $0x3b8] sm:$0xff] }
 0x1e6   : > { %v8494_v62 = vsel %vm1796_vm2, 1.0, %v10545_v13  ;;  %v8493_v63 = vsel %vm1795_vm3, 1.0, %v10545_v13  ;;  %13731 = vst [vmem:[#allocation13_spill] sm:$0xff] %v11544_v54 }
 0x1e7   : > { %9927 = vmatprep.mubr.msk.f32.mxu1 %vm2131_vm0, %v8493_v63 }
 0x1e8   : > { %v1534_v3 = vpop.permute.xlu1 %1533  ;;  %9928 = vmatmul.mubr.msk.f32.gmra.mxu1 %vm2131_vm0, %v8494_v62  ;;  %v1531_v9 = vpop.permute.xlu0 %1530  ;;  %v450_v62 = vld [vmem:[%s10661_s7 + $0x3b8] sm:$0xff] }
 0x1e9   : > { %vm1798_vm4 = vcmp.eq.s32.totalorder %v10741_v8, %v1534_v3  ;;  %vm1797_vm5 = vcmp.eq.s32.totalorder %v10741_v8, %v1531_v9  ;;  %1701 = vperm.xlu1 %10477, %v1342_v0   ;;  %805 = vperm.xlu0 %10476, %v446_v1   ;;  %v11554_v1 = vpop.f32.mrf.mxu0 }
 0x1ea   : > { %v8496_v12 = vsel %vm1798_vm4, 1.0, %v10545_v13  ;;  %v8495_v14 = vsel %vm1797_vm5, 1.0, %v10545_v13  ;;  %13732 = vst [vmem:[#allocation14_spill] sm:$0xff] %v11554_v1 }
 0x1eb   : > { %9930 = vmatprep.mubr.msk.f32.mxu1 %vm2131_vm0, %v8495_v14  ;;  %v451_v14 = vld [vmem:[%s10661_s7 + $0x3c0] sm:$0xff] }
 0x1ec   : > { %v1540_v21 = vpop.permute.xlu1 %1539  ;;  %9931 = vmatmul.mubr.msk.f32.gmra.mxu1 %vm2131_vm0, %v8496_v12  ;;  %v1537_v22 = vpop.permute.xlu0 %1536  ;;  %v1347_v12 = vld [vmem:[%s10929_s13 + $0x3c0] sm:$0xff] }
 0x1ed   : > { %vm1800_vm6 = vcmp.eq.s32.totalorder %v10741_v8, %v1540_v21  ;;  %vm1799_vm7 = vcmp.eq.s32.totalorder %v10741_v8, %v1537_v22  ;;  %1704 = vperm.xlu1 %10477, %v1343_v16   ;;  %808 = vperm.xlu0 %10476, %v447_v18   ;;  %v11564_v21 = vpop.f32.mrf.mxu0 }
 0x1ee   : > { %v8498_v25 = vsel %vm1800_vm6, 1.0, %v10545_v13  ;;  %v8497_v29 = vsel %vm1799_vm7, 1.0, %v10545_v13  ;;  %13733 = vst [vmem:[#allocation15_spill] sm:$0xff] %v11564_v21 }
 0x1ef   : > { %9933 = vmatprep.mubr.msk.f32.mxu1 %vm2131_vm0, %v8497_v29  ;;  %v1348_v29 = vld [vmem:[%s10929_s13 + $0x3c8] sm:$0xff] }
 0x1f0   : > { %v1546_v33 = vpop.permute.xlu1 %1545  ;;  %9934 = vmatmul.mubr.msk.f32.gmra.mxu1 %vm2131_vm0, %v8498_v25  ;;  %v1543_v36 = vpop.permute.xlu0 %1542 }
 0x1f1   : > { %vm1802_vm8 = vcmp.eq.s32.totalorder %v10741_v8, %v1546_v33  ;;  %vm1801_vm9 = vcmp.eq.s32.totalorder %v10741_v8, %v1543_v36  ;;  %1707 = vperm.xlu1 %10477, %v1344_v30   ;;  %811 = vperm.xlu0 %10476, %v448_v31   ;;  %v452_v30 = vld [vmem:[%s10661_s7 + $0x3c8] sm:$0xff]  ;;  %v11574_v36 = vpop.f32.mrf.mxu0 }
 0x1f2   : > { %v8500_v40 = vsel %vm1802_vm8, 1.0, %v10545_v13  ;;  %v8499_v43 = vsel %vm1801_vm9, 1.0, %v10545_v13  ;;  %13734 = vst [vmem:[#allocation16_spill] sm:$0xff] %v11574_v36 }
 0x1f3   : > { %9936 = vmatprep.mubr.msk.f32.mxu1 %vm2131_vm0, %v8499_v43 }
 0x1f4   : > { %v1552_v49 = vpop.permute.xlu1 %1551  ;;  %9937 = vmatmul.mubr.msk.f32.gmra.mxu1 %vm2131_vm0, %v8500_v40  ;;  %v1549_v52 = vpop.permute.xlu0 %1548 }
 0x1f5   : > { %vm1804_vm10 = vcmp.eq.s32.totalorder %v10741_v8, %v1552_v49  ;;  %vm1803_vm11 = vcmp.eq.s32.totalorder %v10741_v8, %v1549_v52  ;;  %1710 = vperm.xlu1 %10477, %v1345_v45   ;;  %814 = vperm.xlu0 %10476, %v449_v46   ;;  %v1349_v45 = vld [vmem:[%s10929_s13 + $0x3d0] sm:$0xff] }
 0x1f6   : > { %v8502_v55 = vsel %vm1804_vm10, 1.0, %v10545_v13  ;;  %v8501_v56 = vsel %vm1803_vm11, 1.0, %v10545_v13  ;;  %v453_v46 = vld [vmem:[%s10661_s7 + $0x3d0] sm:$0xff] }
 0x1f7   : > { %9939 = vmatprep.mubr.msk.f32.mxu1 %vm2131_vm0, %v8501_v56 }
 0x1f8   : > { %v1558_v63 = vpop.permute.xlu1 %1557  ;;  %9940 = vmatmul.mubr.msk.f32.gmra.mxu1 %vm2131_vm0, %v8502_v55  ;;  %v1555_v0 = vpop.permute.xlu0 %1554 }
 0x1f9   : > { %vm1806_vm12 = vcmp.eq.s32.totalorder %v10741_v8, %v1558_v63  ;;  %vm1805_vm13 = vcmp.eq.s32.totalorder %v10741_v8, %v1555_v0  ;;  %1713 = vperm.xlu1 %10477, %v1346_v57   ;;  %817 = vperm.xlu0 %10476, %v450_v62   ;;  %v11584_v55 = vpop.f32.mrf.mxu0  ;;  %v1350_v62 = vld [vmem:[%s10929_s13 + $0x3d8] sm:$0xff] }
 0x1fa   : > { %v8504_v3 = vsel %vm1806_vm12, 1.0, %v10545_v13  ;;  %v8503_v9 = vsel %vm1805_vm13, 1.0, %v10545_v13  ;;  %13735 = vst [vmem:[#allocation17_spill] sm:$0xff] %v11584_v55  ;;  %v454_v63 = vld [vmem:[%s10661_s7 + $0x3d8] sm:$0xff] }
 0x1fb   : > { %9942 = vmatprep.mubr.msk.f32.mxu1 %vm2131_vm0, %v8503_v9  ;;  %v11594_v9 = vpop.f32.mrf.mxu0 }
 0x1fc   : > { %v1564_v16 = vpop.permute.xlu1 %1563  ;;  %9943 = vmatmul.mubr.msk.f32.gmra.mxu1 %vm2131_vm0, %v8504_v3  ;;  %v1561_v18 = vpop.permute.xlu0 %1560  ;;  %13736 = vst [vmem:[#allocation18_spill] sm:$0xff] %v11594_v9 }
 0x1fd   : > { %vm1808_vm14 = vcmp.eq.s32.totalorder %v10741_v8, %v1564_v16  ;;  %vm1807_vm15 = vcmp.eq.s32.totalorder %v10741_v8, %v1561_v18  ;;  %1716 = vperm.xlu1 %10477, %v1347_v12   ;;  %820 = vperm.xlu0 %10476, %v451_v14   ;;  %v1351_v16 = vld [vmem:[%s10929_s13 + $0x3e0] sm:$0xff] }
 0x1fe   : > { %v8506_v22 = vsel %vm1808_vm14, 1.0, %v10545_v13  ;;  %v8505_v25 = vsel %vm1807_vm15, 1.0, %v10545_v13  ;;  %v455_v18 = vld [vmem:[%s10661_s7 + $0x3e0] sm:$0xff] }
 0x1ff   : > { %9945 = vmatprep.mubr.msk.f32.mxu1 %vm2131_vm0, %v8505_v25 }
 0x200   : > { %v1570_v31 = vpop.permute.xlu1 %1569  ;;  %9946 = vmatmul.mubr.msk.f32.gmra.mxu1 %vm2131_vm0, %v8506_v22  ;;  %v1567_v33 = vpop.permute.xlu0 %1566 }
 0x201   : > { %vm1810_vm1 = vcmp.eq.s32.totalorder %v10741_v8, %v1570_v31  ;;  %vm1809_vm2 = vcmp.eq.s32.totalorder %v10741_v8, %v1567_v33  ;;  %1719 = vperm.xlu1 %10477, %v1348_v29   ;;  %823 = vperm.xlu0 %10476, %v452_v30   ;;  %v11604_v29 = vpop.f32.mrf.mxu0  ;;  %v1352_v33 = vld [vmem:[%s10929_s13 + $0x3e8] sm:$0xff] }
 0x202   : > { %v8508_v40 = vsel %vm1810_vm1, 1.0, %v10545_v13  ;;  %v8507_v43 = vsel %vm1809_vm2, 1.0, %v10545_v13  ;;  %13737 = vst [vmem:[#allocation19_spill] sm:$0xff] %v11604_v29 }
 0x203   : > { %9948 = vmatprep.mubr.msk.f32.mxu1 %vm2131_vm0, %v8507_v43 }
 0x204   : > { %v1576_v49 = vpop.permute.xlu1 %1575  ;;  %9949 = vmatmul.mubr.msk.f32.gmra.mxu1 %vm2131_vm0, %v8508_v40  ;;  %v1573_v52 = vpop.permute.xlu0 %1572  ;;  %v456_v40 = vld [vmem:[%s10661_s7 + $0x3e8] sm:$0xff] }
 0x205   : > { %vm1812_vm3 = vcmp.eq.s32.totalorder %v10741_v8, %v1576_v49  ;;  %vm1811_vm4 = vcmp.eq.s32.totalorder %v10741_v8, %v1573_v52  ;;  %1722 = vperm.xlu1 %10477, %v1349_v45   ;;  %826 = vperm.xlu0 %10476, %v453_v46   ;;  %v11614_v46 = vpop.f32.mrf.mxu0 }
 0x206   : > { %v8510_v56 = vsel %vm1812_vm3, 1.0, %v10545_v13  ;;  %v8509_v57 = vsel %vm1811_vm4, 1.0, %v10545_v13  ;;  %13738 = vst [vmem:[#allocation20_spill] sm:$0xff] %v11614_v46 }
 0x207   : > { %9951 = vmatprep.mubr.msk.f32.mxu1 %vm2131_vm0, %v8509_v57  ;;  %v457_v57 = vld [vmem:[%s10661_s7 + $0x3f0] sm:$0xff] }
 0x208   : > { %v1582_v0 = vpop.permute.xlu1 %1581  ;;  %9952 = vmatmul.mubr.msk.f32.gmra.mxu1 %vm2131_vm0, %v8510_v56  ;;  %v1579_v3 = vpop.permute.xlu0 %1578  ;;  %v1353_v56 = vld [vmem:[%s10929_s13 + $0x3f0] sm:$0xff] }
 0x209   : > { %vm1814_vm5 = vcmp.eq.s32.totalorder %v10741_v8, %v1582_v0  ;;  %vm1813_vm6 = vcmp.eq.s32.totalorder %v10741_v8, %v1579_v3  ;;  %1725 = vperm.xlu1 %10477, %v1350_v62   ;;  %829 = vperm.xlu0 %10476, %v454_v63   ;;  %v11624_v0 = vpop.f32.mrf.mxu0 }
 0x20a   : > { %v8512_v12 = vsel %vm1814_vm5, 1.0, %v10545_v13  ;;  %v8511_v14 = vsel %vm1813_vm6, 1.0, %v10545_v13  ;;  %13739 = vst [vmem:[#allocation21_spill] sm:$0xff] %v11624_v0 }
 0x20b   : > { %9954 = vmatprep.mubr.msk.f32.mxu1 %vm2131_vm0, %v8511_v14  ;;  %v1354_v14 = vld [vmem:[%s10929_s13 + $0x3f8] sm:$0xff] }
 0x20c   : > { %v1588_v22 = vpop.permute.xlu1 %1587  ;;  %9955 = vmatmul.mubr.msk.f32.gmra.mxu1 %vm2131_vm0, %v8512_v12  ;;  %v1585_v25 = vpop.permute.xlu0 %1584 }
 0x20d   : > { %vm1816_vm7 = vcmp.eq.s32.totalorder %v10741_v8, %v1588_v22  ;;  %vm1815_vm8 = vcmp.eq.s32.totalorder %v10741_v8, %v1585_v25  ;;  %1728 = vperm.xlu1 %10477, %v1351_v16   ;;  %832 = vperm.xlu0 %10476, %v455_v18   ;;  %v458_v16 = vld [vmem:[%s10661_s7 + $0x3f8] sm:$0xff]  ;;  %v11634_v25 = vpop.f32.mrf.mxu0  ;;  %s13644_s7 = sshll.u32 %s314_s19, 3 }
 0x20e   : > { %v8514_v30 = vsel %vm1816_vm7, 1.0, %v10545_v13  ;;  %v8513_v31 = vsel %vm1815_vm8, 1.0, %v10545_v13  ;;  %13740 = vst [vmem:[#allocation22_spill] sm:$0xff] %v11634_v25  ;;  %s316_s13 = scalar_lea.vmem [#allocation3], %s13644_s7 }
 0x20f   : > { %9957 = vmatprep.mubr.msk.f32.mxu1 %vm2131_vm0, %v8513_v31  ;;  %s8229_s20 = sshll.u32 %s316_s13, 4  ;;  %s8230_s20 = int_to_ptr.vmem [resolvable:$true] %s8229_s20 }
 0x210   : > { %v1594_v43 = vpop.permute.xlu1 %1593  ;;  %9958 = vmatmul.mubr.msk.f32.gmra.mxu1 %vm2131_vm0, %v8514_v30  ;;  %v1591_v45 = vpop.permute.xlu0 %1590  ;;  %s10482_s27 = scalar_lea.vmem %s8230_s20, 128 }
 0x211   : > { %vm1818_vm9 = vcmp.eq.s32.totalorder %v10741_v8, %v1594_v43  ;;  %vm1817_vm10 = vcmp.eq.s32.totalorder %v10741_v8, %v1591_v45  ;;  %1731 = vperm.xlu1 %10477, %v1352_v33   ;;  %835 = vperm.xlu0 %10476, %v456_v40   ;;  %v11642_v43 = vpop.f32.mrf.mxu0  ;;  %p10483_p11 = scmp.ne.s32.totalorder %s8230_s20, %s10482_s27 }
 0x212   : > { %v8516_v49 = vsel %vm1818_vm9, 1.0, %v10545_v13  ;;  %v8515_v52 = vsel %vm1817_vm10, 1.0, %v10545_v13  ;;  %13741 = vst [vmem:[#allocation23_spill] sm:$0xff] %v11642_v43 }
 0x213   : > { %9960 = vmatprep.mubr.msk.f32.mxu1 %vm2131_vm0, %v8515_v52  ;;  %p10484_p12 = pnand %p10483_p11, %p10630_p5 }
 0x214   : > { %v1600_v62 = vpop.permute.xlu1 %1599  ;;  %9961 = vmatmul.mubr.msk.f32.gmra.mxu1 %vm2131_vm0, %v8516_v49  ;;  %v1597_v63 = vpop.permute.xlu0 %1596 }
 0x215   : > { %vm1820_vm11 = vcmp.eq.s32.totalorder %v10741_v8, %v1600_v62  ;;  %vm1819_vm12 = vcmp.eq.s32.totalorder %v10741_v8, %v1597_v63  ;;  %1734 = vperm.xlu1 %10477, %v1353_v56   ;;  %838 = vperm.xlu0 %10476, %v457_v57   ;;  %v11650_v57 = vpop.f32.mrf.mxu0  ;;  %p10485_p13 = pneg %p10484_p12 }
 0x216   : > { %v8518_v3 = vsel %vm1820_vm11, 1.0, %v10545_v13  ;;  %v8517_v12 = vsel %vm1819_vm12, 1.0, %v10545_v13  ;;  %13742 = vst [vmem:[#allocation24_spill] sm:$0xff] %v11650_v57 }
 0x217   : > { %9963 = vmatprep.mubr.msk.f32.mxu1 %vm2131_vm0, %v8517_v12 }
 0x218   : > { %v1606_v18 = vpop.permute.xlu1 %1605  ;;  %9964 = vmatmul.mubr.msk.f32.gmra.mxu1 %vm2131_vm0, %v8518_v3  ;;  %v1603_v22 = vpop.permute.xlu0 %1602 }
 0x219   : > { %vm1822_vm13 = vcmp.eq.s32.totalorder %v10741_v8, %v1606_v18  ;;  %vm1821_vm14 = vcmp.eq.s32.totalorder %v10741_v8, %v1603_v22  ;;  %1737 = vperm.xlu1 %10477, %v1354_v14   ;;  %841 = vperm.xlu0 %10476, %v458_v16   ;;  %v11658_v14 = vpop.f32.mrf.mxu0 }
 0x21a   : > { %v8520_v30 = vsel %vm1822_vm13, 1.0, %v10545_v13  ;;  %v8519_v31 = vsel %vm1821_vm14, 1.0, %v10545_v13  ;;  %13743 = vst [vmem:[#allocation25_spill] sm:$0xff] %v11658_v14 }
 0x21b   : > { %9966 = vmatprep.mubr.msk.f32.mxu1 %vm2131_vm0, %v8519_v31  ;;  %v11666_v31 = vpop.f32.mrf.mxu0 }
 0x21c   : > { %v1612_v33 = vpop.permute.xlu1 %1611  ;;  %9967 = vmatmul.mubr.msk.f32.gmra.mxu1 %vm2131_vm0, %v8520_v30  ;;  %v1609_v40 = vpop.permute.xlu0 %1608  ;;  %13744 = vst [vmem:[#allocation26_spill] sm:$0xff] %v11666_v31 }
 0x21d   : > { %vm1824_vm15 = vcmp.eq.s32.totalorder %v10741_v8, %v1612_v33  ;;  %vm1823_vm1 = vcmp.eq.s32.totalorder %v10741_v8, %v1609_v40 }
 0x21e   : > { %v8522_v45 = vsel %vm1824_vm15, 1.0, %v10545_v13  ;;  %v8521_v49 = vsel %vm1823_vm1, 1.0, %v10545_v13 }
 0x21f   : > { %9969 = vmatprep.mubr.msk.f32.mxu1 %vm2131_vm0, %v8521_v49 }
 0x220   : > { %v1618_v52 = vpop.permute.xlu1 %1617  ;;  %9970 = vmatmul.mubr.msk.f32.gmra.mxu1 %vm2131_vm0, %v8522_v45  ;;  %v1615_v56 = vpop.permute.xlu0 %1614 }
 0x221   : > { %vm1826_vm2 = vcmp.eq.s32.totalorder %v10741_v8, %v1618_v52  ;;  %vm1825_vm3 = vcmp.eq.s32.totalorder %v10741_v8, %v1615_v56  ;;  %v11674_v52 = vpop.f32.mrf.mxu0 }
 0x222   : > { %v8524_v62 = vsel %vm1826_vm2, 1.0, %v10545_v13  ;;  %v8523_v63 = vsel %vm1825_vm3, 1.0, %v10545_v13  ;;  %13745 = vst [vmem:[#allocation27_spill] sm:$0xff] %v11674_v52 }
 0x223   : > { %9972 = vmatprep.mubr.msk.f32.mxu1 %vm2131_vm0, %v8523_v63 }
 0x224   : > { %v1624_v3 = vpop.permute.xlu1 %1623  ;;  %9973 = vmatmul.mubr.msk.f32.gmra.mxu1 %vm2131_vm0, %v8524_v62  ;;  %v1621_v12 = vpop.permute.xlu0 %1620 }
 0x225   : > { %vm1828_vm4 = vcmp.eq.s32.totalorder %v10741_v8, %v1624_v3  ;;  %vm1827_vm5 = vcmp.eq.s32.totalorder %v10741_v8, %v1621_v12  ;;  %v11682_v12 = vpop.f32.mrf.mxu0 }
 0x226   : > { %v8526_v16 = vsel %vm1828_vm4, 1.0, %v10545_v13  ;;  %v8525_v18 = vsel %vm1827_vm5, 1.0, %v10545_v13  ;;  %13746 = vst [vmem:[#allocation28_spill] sm:$0xff] %v11682_v12 }
 0x227   : > { %9975 = vmatprep.mubr.msk.f32.mxu1 %vm2131_vm0, %v8525_v18 }
 0x228   : > { %v1630_v22 = vpop.permute.xlu1 %1629  ;;  %9976 = vmatmul.mubr.msk.f32.gmra.mxu1 %vm2131_vm0, %v8526_v16  ;;  %v1627_v30 = vpop.permute.xlu0 %1626 }
 0x229   : > { %vm1830_vm6 = vcmp.eq.s32.totalorder %v10741_v8, %v1630_v22  ;;  %vm1829_vm7 = vcmp.eq.s32.totalorder %v10741_v8, %v1627_v30 }
 0x22a   : > { %v8528_v33 = vsel %vm1830_vm6, 1.0, %v10545_v13  ;;  %v8527_v40 = vsel %vm1829_vm7, 1.0, %v10545_v13 }
 0x22b   : > { %9978 = vmatprep.mubr.msk.f32.mxu1 %vm2131_vm0, %v8527_v40 }
 0x22c   : > { %v1636_v45 = vpop.permute.xlu1 %1635  ;;  %9979 = vmatmul.mubr.msk.f32.gmra.mxu1 %vm2131_vm0, %v8528_v33  ;;  %v1633_v49 = vpop.permute.xlu0 %1632 }
 0x22d   : > { %vm1832_vm8 = vcmp.eq.s32.totalorder %v10741_v8, %v1636_v45  ;;  %vm1831_vm9 = vcmp.eq.s32.totalorder %v10741_v8, %v1633_v49  ;;  %v11690_v33 = vpop.f32.mrf.mxu0 }
 0x22e   : > { %v8530_v56 = vsel %vm1832_vm8, 1.0, %v10545_v13  ;;  %v8529_v62 = vsel %vm1831_vm9, 1.0, %v10545_v13  ;;  %13747 = vst [vmem:[#allocation29_spill] sm:$0xff] %v11690_v33 }
 0x22f   : > { %9981 = vmatprep.mubr.msk.f32.mxu1 %vm2131_vm0, %v8529_v62 }
 0x230   : > { %v1642_v63 = vpop.permute.xlu1 %1641  ;;  %9982 = vmatmul.mubr.msk.f32.gmra.mxu1 %vm2131_vm0, %v8530_v56  ;;  %v1639_v3 = vpop.permute.xlu0 %1638 }
 0x231   : > { %vm1834_vm10 = vcmp.eq.s32.totalorder %v10741_v8, %v1642_v63  ;;  %vm1833_vm11 = vcmp.eq.s32.totalorder %v10741_v8, %v1639_v3  ;;  %v11699_v63 = vpop.f32.mrf.mxu0 }
 0x232   : > { %v8532_v16 = vsel %vm1834_vm10, 1.0, %v10545_v13  ;;  %v8531_v18 = vsel %vm1833_vm11, 1.0, %v10545_v13  ;;  %13748 = vst [vmem:[#allocation30_spill] sm:$0xff] %v11699_v63 }
 0x233   : > { %9984 = vmatprep.mubr.msk.f32.mxu1 %vm2131_vm0, %v8531_v18 }
 0x234   : > { %v1648_v22 = vpop.permute.xlu1 %1647  ;;  %9985 = vmatmul.mubr.msk.f32.gmra.mxu1 %vm2131_vm0, %v8532_v16  ;;  %v1645_v30 = vpop.permute.xlu0 %1644 }
 0x235   : > { %vm1836_vm12 = vcmp.eq.s32.totalorder %v10741_v8, %v1648_v22  ;;  %vm1835_vm13 = vcmp.eq.s32.totalorder %v10741_v8, %v1645_v30 }
 0x236   : > { %v8534_v40 = vsel %vm1836_vm12, 1.0, %v10545_v13  ;;  %v8533_v45 = vsel %vm1835_vm13, 1.0, %v10545_v13 }
 0x237   : > { %9987 = vmatprep.mubr.msk.f32.mxu1 %vm2131_vm0, %v8533_v45  ;;  %v11711_v45 = vpop.f32.mrf.mxu0 }
 0x238   : > { %v1654_v49 = vpop.permute.xlu1 %1653  ;;  %v11695_v56 = vpop.f32.mrf.mxu1  ;;  %9988 = vmatmul.mubr.msk.f32.gmra.mxu1 %vm2131_vm0, %v8534_v40  ;;  %13749 = vst [vmem:[#allocation31_spill] sm:$0xff] %v11711_v45 }
 0x239   : > { %vm1838_vm14 = vcmp.eq.s32.totalorder %v10741_v8, %v1654_v49  ;;  %v1651_v62 = vpop.permute.xlu0 %1650 }
 0x23a   : > { %v8536_v3 = vsel %vm1838_vm14, 1.0, %v10545_v13  ;;  %vm1837_vm15 = vcmp.eq.s32.totalorder %v10741_v8, %v1651_v62  ;;  %v11703_v16 = vpop.f32.mrf.mxu1 }
 0x23b   : > { %v8535_v18 = vsel %vm1837_vm15, 1.0, %v10545_v13 }
 0x23c   : > { %9990 = vmatprep.mubr.msk.f32.mxu1 %vm2131_vm0, %v8535_v18  ;;  %v1660_v22 = vpop.permute.xlu1 %1659  ;;  %v11707_v30 = vpop.f32.mrf.mxu1 }
 0x23d   : > { %vm1840_vm1 = vcmp.eq.s32.totalorder %v10741_v8, %v1660_v22  ;;  %9991 = vmatmul.mubr.msk.f32.gmra.mxu1 %vm2131_vm0, %v8536_v3  ;;  %v1657_v40 = vpop.permute.xlu0 %1656  ;;  %v11723_v22 = vpop.f32.mrf.mxu0 }
 0x23e   : > { %v8538_v49 = vsel %vm1840_vm1, 1.0, %v10545_v13  ;;  %vm1839_vm2 = vcmp.eq.s32.totalorder %v10741_v8, %v1657_v40  ;;  %v11715_v62 = vpop.f32.mrf.mxu1  ;;  %13750 = vst [vmem:[#allocation32_spill] sm:$0xff] %v11723_v22 }
 0x23f   : > { %v8537_v5 = vsel %vm1839_vm2, 1.0, %v10545_v13 }
 0x240   : > { %9993 = vmatprep.mubr.msk.f32.mxu1 %vm2131_vm0, %v8537_v5  ;;  %v1666_v18 = vpop.permute.xlu1 %1665  ;;  %v11719_v63 = vpop.f32.mrf.mxu1 }
 0x241   : > { %vm1842_vm3 = vcmp.eq.s32.totalorder %v10741_v8, %v1666_v18  ;;  %9994 = vmatmul.mubr.msk.f32.gmra.mxu1 %vm2131_vm0, %v8538_v49  ;;  %v1663_v3 = vpop.permute.xlu0 %1662  ;;  %v11735_v18 = vpop.f32.mrf.mxu0 }
 0x242   : > { %v8540_v45 = vsel %vm1842_vm3, 1.0, %v10545_v13  ;;  %vm1841_vm4 = vcmp.eq.s32.totalorder %v10741_v8, %v1663_v3  ;;  %v11727_v40 = vpop.f32.mrf.mxu1  ;;  %13751 = vst [vmem:[#allocation33_spill] sm:$0xff] %v11735_v18 }
 0x243   : > { %v8539_v12 = vsel %vm1841_vm4, 1.0, %v10545_v13 }
 0x244   : > { %9996 = vmatprep.mubr.msk.f32.mxu1 %vm2131_vm0, %v8539_v12  ;;  %v1672_v5 = vpop.permute.xlu1 %1671  ;;  %v11731_v33 = vpop.f32.mrf.mxu1 }
 0x245   : > { %vm1844_vm5 = vcmp.eq.s32.totalorder %v10741_v8, %v1672_v5  ;;  %9997 = vmatmul.mubr.msk.f32.gmra.mxu1 %vm2131_vm0, %v8540_v45  ;;  %v1669_v49 = vpop.permute.xlu0 %1668  ;;  %v11747_v5 = vpop.f32.mrf.mxu0 }
 0x246   : > { %v8542_v22 = vsel %vm1844_vm5, 1.0, %v10545_v13  ;;  %vm1843_vm6 = vcmp.eq.s32.totalorder %v10741_v8, %v1669_v49  ;;  %v11739_v3 = vpop.f32.mrf.mxu1  ;;  %13752 = vst [vmem:[#allocation34_spill] sm:$0xff] %v11747_v5 }
 0x247   : > { %v8541_v31 = vsel %vm1843_vm6, 1.0, %v10545_v13 }
 0x248   : > { %9999 = vmatprep.mubr.msk.f32.mxu1 %vm2131_vm0, %v8541_v31  ;;  %v1678_v12 = vpop.permute.xlu1 %1677  ;;  %v11743_v52 = vpop.f32.mrf.mxu1 }
 0x249   : > { %vm1846_vm7 = vcmp.eq.s32.totalorder %v10741_v8, %v1678_v12  ;;  %10000 = vmatmul.mubr.msk.f32.gmra.mxu1 %vm2131_vm0, %v8542_v22  ;;  %v1675_v45 = vpop.permute.xlu0 %1674  ;;  %v11759_v12 = vpop.f32.mrf.mxu0 }
 0x24a   : > { %v8544_v18 = vsel %vm1846_vm7, 1.0, %v10545_v13  ;;  %vm1845_vm8 = vcmp.eq.s32.totalorder %v10741_v8, %v1675_v45  ;;  %v11751_v49 = vpop.f32.mrf.mxu1  ;;  %13753 = vst [vmem:[#allocation35_spill] sm:$0xff] %v11759_v12 }
 0x24b   : > { %v8543_v57 = vsel %vm1845_vm8, 1.0, %v10545_v13 }
 0x24c   : > { %10002 = vmatprep.mubr.msk.f32.mxu1 %vm2131_vm0, %v8543_v57  ;;  %v1684_v31 = vpop.permute.xlu1 %1683  ;;  %v11755_v14 = vpop.f32.mrf.mxu1 }
 0x24d   : > { %vm1848_vm9 = vcmp.eq.s32.totalorder %v10741_v8, %v1684_v31  ;;  %10003 = vmatmul.mubr.msk.f32.gmra.mxu1 %vm2131_vm0, %v8544_v18  ;;  %v1681_v22 = vpop.permute.xlu0 %1680  ;;  %v11771_v31 = vpop.f32.mrf.mxu0 }
 0x24e   : > { %v8546_v5 = vsel %vm1848_vm9, 1.0, %v10545_v13  ;;  %vm1847_vm10 = vcmp.eq.s32.totalorder %v10741_v8, %v1681_v22  ;;  %v11763_v45 = vpop.f32.mrf.mxu1  ;;  %13754 = vst [vmem:[#allocation36_spill] sm:$0xff] %v11771_v31 }
 0x24f   : > { %v8545_v25 = vsel %vm1847_vm10, 1.0, %v10545_v13 }
 0x250   : > { %10005 = vmatprep.mubr.msk.f32.mxu1 %vm2131_vm0, %v8545_v25  ;;  %v1687_v57 = vpop.permute.xlu1 %1686  ;;  %v11767_v43 = vpop.f32.mrf.mxu1 }
 0x251   : > { %vm1849_vm11 = vcmp.eq.s32.totalorder %v10741_v8, %v1687_v57  ;;  %10006 = vmatmul.mubr.msk.f32.gmra.mxu1 %vm2131_vm0, %v8546_v5  ;;  %v791_v18 = vpop.permute.xlu0 %790  ;;  %v11783_v57 = vpop.f32.mrf.mxu0 }
 0x252   : > { %v8547_v12 = vsel %vm1849_vm11, 1.0, %v10545_v13  ;;  %vm953_vm12 = vcmp.eq.s32.totalorder %v10741_v8, %v791_v18  ;;  %v11775_v22 = vpop.f32.mrf.mxu1  ;;  %13755 = vst [vmem:[#allocation37_spill] sm:$0xff] %v11783_v57 }
 0x253   : > { %v8419_v46 = vsel %vm953_vm12, 1.0, %v10545_v13  ;;  %10008 = vmatprep.mubr.msk.f32.mxu1 %vm2131_vm0, %v8547_v12  ;;  %v11795_v29 = vpop.f32.mrf.mxu0 }
 0x254   : > { %9800 = vmatprep.mubr.msk.f32.mxu0 %vm2131_vm0, %v8419_v46  ;;  %v1690_v25 = vpop.permute.xlu1 %1689  ;;  %v11780_v0 = vpop.f32.mrf.mxu1  ;;  %13756 = vst [vmem:[#allocation38_spill] sm:$0xff] %v11795_v29 }
 0x255   : > { %vm1850_vm13 = vcmp.eq.s32.totalorder %v10741_v8, %v1690_v25  ;;  %v794_v5 = vpop.permute.xlu0 %793  ;;  %v11807_v55 = vpop.f32.mrf.mxu0 }
 0x256   : > { %v8548_v31 = vsel %vm1850_vm13, 1.0, %v10545_v13  ;;  %vm954_vm14 = vcmp.eq.s32.totalorder %v10741_v8, %v794_v5  ;;  %v11787_v18 = vpop.f32.mrf.mxu1  ;;  %13757 = vst [vmem:[#allocation39_spill] sm:$0xff] %v11807_v55 }
 0x257   : > { %v8420_v9 = vsel %vm954_vm14, 1.0, %v10545_v13  ;;  %10009 = vmatmul.mubr.msk.f32.gmra.mxu1 %vm2131_vm0, %v8548_v31  ;;  %v11819_v21 = vpop.f32.mrf.mxu0 }
 0x258   : > { %9801 = vmatmul.mubr.msk.f32.gmra.mxu0 %vm2131_vm0, %v8420_v9  ;;  %v1693_v46 = vpop.permute.xlu1 %1692  ;;  %v11792_v12 = vpop.f32.mrf.mxu1  ;;  %13758 = vst [vmem:[#allocation40_spill] sm:$0xff] %v11819_v21 }
 0x259   : > { %vm1851_vm15 = vcmp.eq.s32.totalorder %v10741_v8, %v1693_v46  ;;  %v797_v25 = vpop.permute.xlu0 %796  ;;  %v11831_v54 = vpop.f32.mrf.mxu0 }
 0x25a   : > { %v8549_v57 = vsel %vm1851_vm15, 1.0, %v10545_v13  ;;  %vm955_vm1 = vcmp.eq.s32.totalorder %v10741_v8, %v797_v25  ;;  %v11799_v5 = vpop.f32.mrf.mxu1  ;;  %13759 = vst [vmem:[#allocation41_spill] sm:$0xff] %v11831_v54 }
 0x25b   : > { %v8421_v36 = vsel %vm955_vm1, 1.0, %v10545_v13  ;;  %10011 = vmatprep.mubr.msk.f32.mxu1 %vm2131_vm0, %v8549_v57  ;;  %v11843_v24 = vpop.f32.mrf.mxu0 }
 0x25c   : > { %9803 = vmatprep.mubr.msk.f32.mxu0 %vm2131_vm0, %v8421_v36  ;;  %v1696_v9 = vpop.permute.xlu1 %1695  ;;  %v11804_v31 = vpop.f32.mrf.mxu1  ;;  %13760 = vst [vmem:[#allocation42_spill] sm:$0xff] %v11843_v24 }
 0x25d   : > { %vm1852_vm2 = vcmp.eq.s32.totalorder %v10741_v8, %v1696_v9  ;;  %v800_v46 = vpop.permute.xlu0 %799  ;;  %v11855_v27 = vpop.f32.mrf.mxu0 }
 0x25e   : > { %v8550_v29 = vsel %vm1852_vm2, 1.0, %v10545_v13  ;;  %vm956_vm3 = vcmp.eq.s32.totalorder %v10741_v8, %v800_v46  ;;  %v11811_v25 = vpop.f32.mrf.mxu1  ;;  %13762 = vst [vmem:[#allocation44_spill] sm:$0xff] %v11855_v27 }
 0x25f   : > { %v8422_v1 = vsel %vm956_vm3, 1.0, %v10545_v13  ;;  %10012 = vmatmul.mubr.msk.f32.gmra.mxu1 %vm2131_vm0, %v8550_v29 }
 0x260   : > { %9804 = vmatmul.mubr.msk.f32.gmra.mxu0 %vm2131_vm0, %v8422_v1  ;;  %v1699_v36 = vpop.permute.xlu1 %1698  ;;  %v11816_v57 = vpop.f32.mrf.mxu1 }
 0x261   : > { %vm1853_vm4 = vcmp.eq.s32.totalorder %v10741_v8, %v1699_v36  ;;  %v803_v9 = vpop.permute.xlu0 %802 }
 0x262   : > { %v8551_v55 = vsel %vm1853_vm4, 1.0, %v10545_v13  ;;  %vm957_vm5 = vcmp.eq.s32.totalorder %v10741_v8, %v803_v9  ;;  %v11823_v46 = vpop.f32.mrf.mxu1 }
 0x263   : > { %v8423_v39 = vsel %vm957_vm5, 1.0, %v10545_v13  ;;  %10014 = vmatprep.mubr.msk.f32.mxu1 %vm2131_vm0, %v8551_v55 }
 0x264   : > { %9806 = vmatprep.mubr.msk.f32.mxu0 %vm2131_vm0, %v8423_v39  ;;  %v1702_v1 = vpop.permute.xlu1 %1701  ;;  %v11828_v29 = vpop.f32.mrf.mxu1 }
 0x265   : > { %vm1854_vm6 = vcmp.eq.s32.totalorder %v10741_v8, %v1702_v1  ;;  %v806_v36 = vpop.permute.xlu0 %805 }
 0x266   : > { %v8552_v21 = vsel %vm1854_vm6, 1.0, %v10545_v13  ;;  %vm958_vm7 = vcmp.eq.s32.totalorder %v10741_v8, %v806_v36  ;;  %v11835_v9 = vpop.f32.mrf.mxu1 }
 0x267   : > { %v8424_v10 = vsel %vm958_vm7, 1.0, %v10545_v13  ;;  %10015 = vmatmul.mubr.msk.f32.gmra.mxu1 %vm2131_vm0, %v8552_v21 }
 0x268   : > { %9807 = vmatmul.mubr.msk.f32.gmra.mxu0 %vm2131_vm0, %v8424_v10  ;;  %v1705_v39 = vpop.permute.xlu1 %1704  ;;  %v11840_v55 = vpop.f32.mrf.mxu1 }
 0x269   : > { %vm1855_vm8 = vcmp.eq.s32.totalorder %v10741_v8, %v1705_v39  ;;  %v809_v1 = vpop.permute.xlu0 %808 }
 0x26a   : > { %v8553_v54 = vsel %vm1855_vm8, 1.0, %v10545_v13  ;;  %vm959_vm9 = vcmp.eq.s32.totalorder %v10741_v8, %v809_v1  ;;  %v11847_v36 = vpop.f32.mrf.mxu1 }
 0x26b   : > { %v8425_v47 = vsel %vm959_vm9, 1.0, %v10545_v13  ;;  %10017 = vmatprep.mubr.msk.f32.mxu1 %vm2131_vm0, %v8553_v54 }
 0x26c   : > { %9809 = vmatprep.mubr.msk.f32.mxu0 %vm2131_vm0, %v8425_v47  ;;  %v1708_v10 = vpop.permute.xlu1 %1707  ;;  %v11852_v21 = vpop.f32.mrf.mxu1 }
 0x26d   : > { %13761 = vst [vmem:[#allocation43_spill] sm:$0xff] %v11852_v21  ;;  %vm1856_vm10 = vcmp.eq.s32.totalorder %v10741_v8, %v1708_v10  ;;  %v812_v39 = vpop.permute.xlu0 %811  ;;  %v11867_v21 = vpop.f32.mrf.mxu0 }
 0x26e   : > { %v8554_v24 = vsel %vm1856_vm10, 1.0, %v10545_v13  ;;  %vm960_vm11 = vcmp.eq.s32.totalorder %v10741_v8, %v812_v39  ;;  %v11859_v1 = vpop.f32.mrf.mxu1  ;;  %13765 = vst [vmem:[#allocation47_spill] sm:$0xff] %v11867_v21 }
 0x26f   : > { %13763 = vst [vmem:[#allocation45_spill] sm:$0xff] %v11859_v1  ;;  %v8426_v20 = vsel %vm960_vm11, 1.0, %v10545_v13  ;;  %10018 = vmatmul.mubr.msk.f32.gmra.mxu1 %vm2131_vm0, %v8554_v24 }
 0x270   : > { %9810 = vmatmul.mubr.msk.f32.gmra.mxu0 %vm2131_vm0, %v8426_v20  ;;  %v1711_v47 = vpop.permute.xlu1 %1710  ;;  %v11864_v54 = vpop.f32.mrf.mxu1 }
 0x271   : > { %13764 = vst [vmem:[#allocation46_spill] sm:$0xff] %v11864_v54  ;;  %vm1857_vm12 = vcmp.eq.s32.totalorder %v10741_v8, %v1711_v47  ;;  %v815_v10 = vpop.permute.xlu0 %814  ;;  %v11879_v54 = vpop.f32.mrf.mxu0 }
 0x272   : > { %v8555_v27 = vsel %vm1857_vm12, 1.0, %v10545_v13  ;;  %vm961_vm13 = vcmp.eq.s32.totalorder %v10741_v8, %v815_v10  ;;  %v11871_v39 = vpop.f32.mrf.mxu1  ;;  %13768 = vst [vmem:[#allocation50_spill] sm:$0xff] %v11879_v54 }
 0x273   : > { %13766 = vst [vmem:[#allocation48_spill] sm:$0xff] %v11871_v39  ;;  %v8427_v1 = vsel %vm961_vm13, 1.0, %v10545_v13  ;;  %10020 = vmatprep.mubr.msk.f32.mxu1 %vm2131_vm0, %v8555_v27 }
 0x274   : > { %9812 = vmatprep.mubr.msk.f32.mxu0 %vm2131_vm0, %v8427_v1  ;;  %v1714_v20 = vpop.permute.xlu1 %1713  ;;  %v11876_v24 = vpop.f32.mrf.mxu1 }
 0x275   : > { %13767 = vst [vmem:[#allocation49_spill] sm:$0xff] %v11876_v24  ;;  %vm1858_vm14 = vcmp.eq.s32.totalorder %v10741_v8, %v1714_v20  ;;  %v818_v47 = vpop.permute.xlu0 %817  ;;  %v11891_v24 = vpop.f32.mrf.mxu0 }
 0x276   : > { %v8556_v21 = vsel %vm1858_vm14, 1.0, %v10545_v13  ;;  %vm962_vm15 = vcmp.eq.s32.totalorder %v10741_v8, %v818_v47  ;;  %v11883_v10 = vpop.f32.mrf.mxu1  ;;  %13771 = vst [vmem:[#allocation53_spill] sm:$0xff] %v11891_v24 }
 0x277   : > { %13769 = vst [vmem:[#allocation51_spill] sm:$0xff] %v11883_v10  ;;  %v8428_v39 = vsel %vm962_vm15, 1.0, %v10545_v13  ;;  %10021 = vmatmul.mubr.msk.f32.gmra.mxu1 %vm2131_vm0, %v8556_v21 }
 0x278   : > { %9813 = vmatmul.mubr.msk.f32.gmra.mxu0 %vm2131_vm0, %v8428_v39  ;;  %v1717_v27 = vpop.permute.xlu1 %1716  ;;  %v11888_v1 = vpop.f32.mrf.mxu1 }
 0x279   : > { %13770 = vst [vmem:[#allocation52_spill] sm:$0xff] %v11888_v1  ;;  %vm1859_vm1 = vcmp.eq.s32.totalorder %v10741_v8, %v1717_v27  ;;  %v821_v20 = vpop.permute.xlu0 %820  ;;  %v11903_v1 = vpop.f32.mrf.mxu0 }
 0x27a   : > { %v8557_v54 = vsel %vm1859_vm1, 1.0, %v10545_v13  ;;  %vm963_vm2 = vcmp.eq.s32.totalorder %v10741_v8, %v821_v20  ;;  %v11895_v47 = vpop.f32.mrf.mxu1  ;;  %13774 = vst [vmem:[#allocation56_spill] sm:$0xff] %v11903_v1  ;;  %vm4318_vm1 = vcmask 261120  }
 0x27b   : > { %13772 = vst [vmem:[#allocation54_spill] sm:$0xff] %v11895_v47  ;;  %v8429_v10 = vsel %vm963_vm2, 1.0, %v10545_v13  ;;  %10023 = vmatprep.mubr.msk.f32.mxu1 %vm2131_vm0, %v8557_v54 }
 0x27c   : > { %9815 = vmatprep.mubr.msk.f32.mxu0 %vm2131_vm0, %v8429_v10  ;;  %v1720_v21 = vpop.permute.xlu1 %1719  ;;  %v11900_v39 = vpop.f32.mrf.mxu1 }
 0x27d   : > { %13773 = vst [vmem:[#allocation55_spill] sm:$0xff] %v11900_v39  ;;  %vm1860_vm3 = vcmp.eq.s32.totalorder %v10741_v8, %v1720_v21  ;;  %v824_v27 = vpop.permute.xlu0 %823  ;;  %v11915_v39 = vpop.f32.mrf.mxu0 }
 0x27e   : > { %v8558_v24 = vsel %vm1860_vm3, 1.0, %v10545_v13  ;;  %vm964_vm4 = vcmp.eq.s32.totalorder %v10741_v8, %v824_v27  ;;  %v11907_v20 = vpop.f32.mrf.mxu1  ;;  %13777 = vst [vmem:[#allocation59_spill] sm:$0xff] %v11915_v39  ;;  %vm7553_vm3 = vcmask 195712  }
 0x27f   : > { %13775 = vst [vmem:[#allocation57_spill] sm:$0xff] %v11907_v20  ;;  %v8430_v47 = vsel %vm964_vm4, 1.0, %v10545_v13  ;;  %10024 = vmatmul.mubr.msk.f32.gmra.mxu1 %vm2131_vm0, %v8558_v24  ;;  %vm7560_vm4 = vcmask 261312  }
 0x280   : > { %9816 = vmatmul.mubr.msk.f32.gmra.mxu0 %vm2131_vm0, %v8430_v47  ;;  %v1723_v54 = vpop.permute.xlu1 %1722  ;;  %v11912_v10 = vpop.f32.mrf.mxu1 }
 0x281   : > { %13776 = vst [vmem:[#allocation58_spill] sm:$0xff] %v11912_v10  ;;  %vm1861_vm5 = vcmp.eq.s32.totalorder %v10741_v8, %v1723_v54  ;;  %v827_v21 = vpop.permute.xlu0 %826  ;;  %v11927_v10 = vpop.f32.mrf.mxu0 }
 0x282   : > { %v8559_v1 = vsel %vm1861_vm5, 1.0, %v10545_v13  ;;  %vm965_vm6 = vcmp.eq.s32.totalorder %v10741_v8, %v827_v21  ;;  %v11919_v27 = vpop.f32.mrf.mxu1  ;;  %13780 = vst [vmem:[#allocation62_spill] sm:$0xff] %v11927_v10  ;;  %vm7567_vm5 = vcmask 326912  }
 0x283   : > { %13778 = vst [vmem:[#allocation60_spill] sm:$0xff] %v11919_v27  ;;  %v8431_v20 = vsel %vm965_vm6, 1.0, %v10545_v13  ;;  %10026 = vmatprep.mubr.msk.f32.mxu1 %vm2131_vm0, %v8559_v1  ;;  %vm7574_vm6 = vcmask 392512  }
 0x284   : > { %9818 = vmatprep.mubr.msk.f32.mxu0 %vm2131_vm0, %v8431_v20  ;;  %v1726_v24 = vpop.permute.xlu1 %1725  ;;  %v11924_v47 = vpop.f32.mrf.mxu1 }
 0x285   : > { %13779 = vst [vmem:[#allocation61_spill] sm:$0xff] %v11924_v47  ;;  %vm1862_vm7 = vcmp.eq.s32.totalorder %v10741_v8, %v1726_v24  ;;  %v830_v54 = vpop.permute.xlu0 %829  ;;  %v11939_v47 = vpop.f32.mrf.mxu0 }
 0x286   : > { %v8560_v39 = vsel %vm1862_vm7, 1.0, %v10545_v13  ;;  %vm966_vm8 = vcmp.eq.s32.totalorder %v10741_v8, %v830_v54  ;;  %v11931_v21 = vpop.f32.mrf.mxu1  ;;  %13783 = vst [vmem:[#allocation65_spill] sm:$0xff] %v11939_v47  ;;  %vm7581_vm7 = vcmask 458112  }
 0x287   : > { %13781 = vst [vmem:[#allocation63_spill] sm:$0xff] %v11931_v21  ;;  %v8432_v27 = vsel %vm966_vm8, 1.0, %v10545_v13  ;;  %10027 = vmatmul.mubr.msk.f32.gmra.mxu1 %vm2131_vm0, %v8560_v39  ;;  %vm7588_vm8 = vcmask 523712  }
 0x288   : > { %9819 = vmatmul.mubr.msk.f32.gmra.mxu0 %vm2131_vm0, %v8432_v27  ;;  %v1729_v1 = vpop.permute.xlu1 %1728  ;;  %v11936_v20 = vpop.f32.mrf.mxu1 }
 0x289   : > { %13782 = vst [vmem:[#allocation64_spill] sm:$0xff] %v11936_v20  ;;  %vm1863_vm9 = vcmp.eq.s32.totalorder %v10741_v8, %v1729_v1  ;;  %v833_v24 = vpop.permute.xlu0 %832  ;;  %v11951_v20 = vpop.f32.mrf.mxu0 }
 0x28a   : > { %v8561_v10 = vsel %vm1863_vm9, 1.0, %v10545_v13  ;;  %vm967_vm10 = vcmp.eq.s32.totalorder %v10741_v8, %v833_v24  ;;  %v11943_v54 = vpop.f32.mrf.mxu1  ;;  %13786 = vst [vmem:[#allocation68_spill] sm:$0xff] %v11951_v20  ;;  %vm7595_vm9 = vcmask 589312  }
 0x28b   : > { %13784 = vst [vmem:[#allocation66_spill] sm:$0xff] %v11943_v54  ;;  %v8433_v21 = vsel %vm967_vm10, 1.0, %v10545_v13  ;;  %10029 = vmatprep.mubr.msk.f32.mxu1 %vm2131_vm0, %v8561_v10  ;;  %vm13721_vm10 = vcmask 654912  }
 0x28c   : > { %9821 = vmatprep.mubr.msk.f32.mxu0 %vm2131_vm0, %v8433_v21  ;;  %v1732_v39 = vpop.permute.xlu1 %1731  ;;  %v11948_v27 = vpop.f32.mrf.mxu1 }
 0x28d   : > { %13785 = vst [vmem:[#allocation67_spill] sm:$0xff] %v11948_v27  ;;  %vm1864_vm11 = vcmp.eq.s32.totalorder %v10741_v8, %v1732_v39  ;;  %v836_v1 = vpop.permute.xlu0 %835  ;;  %v11963_v27 = vpop.f32.mrf.mxu0 }
 0x28e   : > { %v8562_v47 = vsel %vm1864_vm11, 1.0, %v10545_v13  ;;  %vm968_vm12 = vcmp.eq.s32.totalorder %v10741_v8, %v836_v1  ;;  %v11955_v24 = vpop.f32.mrf.mxu1  ;;  %13789 = vst [vmem:[#allocation71_spill] sm:$0xff] %v11963_v27  ;;  %vm13720_vm11 = vcmask 720512  }
 0x28f   : > { %13787 = vst [vmem:[#allocation69_spill] sm:$0xff] %v11955_v24  ;;  %v8434_v54 = vsel %vm968_vm12, 1.0, %v10545_v13  ;;  %10030 = vmatmul.mubr.msk.f32.gmra.mxu1 %vm2131_vm0, %v8562_v47  ;;  %v11975_v27 = vpop.f32.mrf.mxu0  ;;  %vm7616_vm12 = vcmask 786112  }
 0x290   : > { %9822 = vmatmul.mubr.msk.f32.gmra.mxu0 %vm2131_vm0, %v8434_v54  ;;  %v1735_v10 = vpop.permute.xlu1 %1734  ;;  %v11960_v21 = vpop.f32.mrf.mxu1 }
 0x291   : > { %13788 = vst [vmem:[#allocation70_spill] sm:$0xff] %v11960_v21  ;;  %vm1865_vm13 = vcmp.eq.s32.totalorder %v10741_v8, %v1735_v10  ;;  %v839_v39 = vpop.permute.xlu0 %838 }
 0x292   : > { %v8563_v20 = vsel %vm1865_vm13, 1.0, %v10545_v13  ;;  %vm969_vm14 = vcmp.eq.s32.totalorder %v10741_v8, %v839_v39  ;;  %v11967_v1 = vpop.f32.mrf.mxu1  ;;  %vm7623_vm13 = vcmask 851712  }
 0x293   : > { %13790 = vst [vmem:[#allocation72_spill] sm:$0xff] %v11967_v1  ;;  %v8435_v24 = vsel %vm969_vm14, 1.0, %v10545_v13  ;;  %10032 = vmatprep.mubr.msk.f32.mxu1 %vm2131_vm0, %v8563_v20  ;;  %vm7630_vm14 = vcmask 917312  }
 0x294   : > { %9824 = vmatprep.mubr.msk.f32.mxu0 %vm2131_vm0, %v8435_v24  ;;  %v1738_v47 = vpop.permute.xlu1 %1737  ;;  %v11972_v54 = vpop.f32.mrf.mxu1 }
 0x295   : > { %vm1866_vm15 = vcmp.eq.s32.totalorder %v10741_v8, %v1738_v47  ;;  %v842_v10 = vpop.permute.xlu0 %841  ;;  %v11990_v24 = vpop.f32.mrf.mxu0 }
 0x296   : > { %v8564_v21 = vsel %vm1866_vm15, 1.0, %v10545_v13  ;;  %vm970_vm2 = vcmp.eq.s32.totalorder %v10741_v8, %v842_v10  ;;  %v11979_v39 = vpop.f32.mrf.mxu1  ;;  %v13816_v8 = vld [vmem:[#allocation60_spill] sm:$0xff]  ;;  %vm7637_vm15 = vcmask 982912  }
 0x297   : > { %v8436_v1 = vsel %vm970_vm2, 1.0, %v10545_v13  ;;  %10033 = vmatmul.mubr.msk.f32.gmra.mxu1 %vm2131_vm0, %v8564_v21  ;;  %v13803_v21 = vld [vmem:[#allocation10_spill] sm:$0xff]  ;;  %vm7644_vm2 = vcmask 1048512  }
 0x298   : > { %9825 = vmatmul.mubr.msk.f32.gmra.mxu0 %vm2131_vm0, %v8436_v1  ;;  %v11984_v20 = vpop.f32.mrf.mxu1  ;;  %10243 = vmatprep.mubr.msk.f32.mxu1 %vm4318_vm1, %v11206_v44  ;;  %v12004_v44 = vpop.f32.mrf.mxu0  ;;  %v13804_v1 = vld [vmem:[#allocation49_spill] sm:$0xff]  ;;  %vm7546_vm0 = vcmask 130112  }
 0x299   : > { %10043 = vmatprep.mubr.msk.f32.mxu0 %vm4318_vm1, %v11703_v16 }
 0x29a   : > { %v11992_v47 = vpop.f32.mrf.mxu1 }
 0x29b   : > { %10244 = vmatmul.mubr.msk.f32.vlgmr.msra.gmra.mxu1 %vm4318_vm1, %v11195_v37 }
 0x29c   : > { %10044 = vmatmul.mubr.msk.f32.vlgmr.msra.gmra.mxu0 %vm4318_vm1, %v11695_v56  ;;  %v11998_v13 = vpop.f32.mrf.mxu1  ;;  %10246 = vmatprep.mubr.msk.f32.mxu1 %vm4318_vm1, %v11232_v60  ;;  %v12018_v60 = vpop.f32.mrf.mxu0 }
 0x29d   : > { %10046 = vmatprep.mubr.msk.f32.mxu0 %vm4318_vm1, %v11715_v62 }
 0x29e   : > { %v12006_v16 = vpop.f32.mrf.mxu1 }
 0x29f   : > { %10247 = vmatmul.mubr.msk.f32.gmra.mxu1 %vm4318_vm1, %v11221_v53 }
 0x2a0   : > { %10047 = vmatmul.mubr.msk.f32.gmra.mxu0 %vm4318_vm1, %v11707_v30  ;;  %v12012_v37 = vpop.f32.mrf.mxu1  ;;  %10249 = vmatprep.mubr.msk.f32.mxu1 %vm4318_vm1, %v11252_v11  ;;  %v12032_v11 = vpop.f32.mrf.mxu0 }
 0x2a1   : > { %10049 = vmatprep.mubr.msk.f32.mxu0 %vm4318_vm1, %v11727_v40 }
 0x2a2   : > { %v12020_v56 = vpop.f32.mrf.mxu1 }
 0x2a3   : > { %10250 = vmatmul.mubr.msk.f32.gmra.mxu1 %vm4318_vm1, %v11242_v2 }
 0x2a4   : > { %10050 = vmatmul.mubr.msk.f32.gmra.mxu0 %vm4318_vm1, %v11719_v63  ;;  %v12026_v53 = vpop.f32.mrf.mxu1  ;;  %10252 = vmatprep.mubr.msk.f32.mxu1 %vm4318_vm1, %v11272_v26  ;;  %v12046_v26 = vpop.f32.mrf.mxu0 }
 0x2a5   : > { %10052 = vmatprep.mubr.msk.f32.mxu0 %vm4318_vm1, %v11739_v3 }
 0x2a6   : > { %v12034_v30 = vpop.f32.mrf.mxu1 }
 0x2a7   : > { %10253 = vmatmul.mubr.msk.f32.gmra.mxu1 %vm4318_vm1, %v11262_v19 }
 0x2a8   : > { %10053 = vmatmul.mubr.msk.f32.gmra.mxu0 %vm4318_vm1, %v11731_v33  ;;  %v12040_v2 = vpop.f32.mrf.mxu1  ;;  %10255 = vmatprep.mubr.msk.f32.mxu1 %vm4318_vm1, %v11292_v42  ;;  %v12060_v42 = vpop.f32.mrf.mxu0 }
 0x2a9   : > { %10055 = vmatprep.mubr.msk.f32.mxu0 %vm4318_vm1, %v11751_v49  ;;  %v13792_v49 = vld [vmem:[#allocation45_spill] sm:$0xff] }
 0x2aa   : > { %v12048_v63 = vpop.f32.mrf.mxu1 }
 0x2ab   : > { %10256 = vmatmul.mubr.msk.f32.gmra.mxu1 %vm4318_vm1, %v11282_v34 }
 0x2ac   : > { %10056 = vmatmul.mubr.msk.f32.gmra.mxu0 %vm4318_vm1, %v11743_v52  ;;  %v12054_v19 = vpop.f32.mrf.mxu1  ;;  %10258 = vmatprep.mubr.msk.f32.mxu1 %vm4318_vm1, %v11318_v61  ;;  %v12074_v61 = vpop.f32.mrf.mxu0 }
 0x2ad   : > { %10058 = vmatprep.mubr.msk.f32.mxu0 %vm4318_vm1, %v11763_v45 }
 0x2ae   : > { %v12062_v33 = vpop.f32.mrf.mxu1 }
 0x2af   : > { %10259 = vmatmul.mubr.msk.f32.gmra.mxu1 %vm4318_vm1, %v11303_v51 }
 0x2b0   : > { %10059 = vmatmul.mubr.msk.f32.gmra.mxu0 %vm4318_vm1, %v11755_v14  ;;  %v12068_v34 = vpop.f32.mrf.mxu1  ;;  %10261 = vmatprep.mubr.msk.f32.mxu1 %vm4318_vm1, %v11338_v15  ;;  %v12088_v15 = vpop.f32.mrf.mxu0 }
 0x2b1   : > { %10061 = vmatprep.mubr.msk.f32.mxu0 %vm4318_vm1, %v11775_v22  ;;  %v13793_v22 = vld [vmem:[#allocation7_spill] sm:$0xff] }
 0x2b2   : > { %v12076_v52 = vpop.f32.mrf.mxu1 }
 0x2b3   : > { %10262 = vmatmul.mubr.msk.f32.gmra.mxu1 %vm4318_vm1, %v11328_v4 }
 0x2b4   : > { %10062 = vmatmul.mubr.msk.f32.gmra.mxu0 %vm4318_vm1, %v11767_v43  ;;  %v12082_v51 = vpop.f32.mrf.mxu1  ;;  %10264 = vmatprep.mubr.msk.f32.mxu1 %vm4318_vm1, %v11358_v32  ;;  %v12102_v32 = vpop.f32.mrf.mxu0 }
 0x2b5   : > { %10064 = vmatprep.mubr.msk.f32.mxu0 %vm4318_vm1, %v11787_v18  ;;  %v13794_v18 = vld [vmem:[#allocation43_spill] sm:$0xff] }
 0x2b6   : > { %v12090_v14 = vpop.f32.mrf.mxu1 }
 0x2b7   : > { %10265 = vmatmul.mubr.msk.f32.gmra.mxu1 %vm4318_vm1, %v11348_v23 }
 0x2b8   : > { %10065 = vmatmul.mubr.msk.f32.gmra.mxu0 %vm4318_vm1, %v11780_v0  ;;  %v12096_v4 = vpop.f32.mrf.mxu1  ;;  %10267 = vmatprep.mubr.msk.f32.mxu1 %vm4318_vm1, %v11378_v50  ;;  %v12116_v50 = vpop.f32.mrf.mxu0 }
 0x2b9   : > { %10067 = vmatprep.mubr.msk.f32.mxu0 %vm4318_vm1, %v11799_v5  ;;  %v13796_v5 = vld [vmem:[#allocation48_spill] sm:$0xff] }
 0x2ba   : > { %v12104_v43 = vpop.f32.mrf.mxu1 }
 0x2bb   : > { %10268 = vmatmul.mubr.msk.f32.gmra.mxu1 %vm4318_vm1, %v11368_v41 }
 0x2bc   : > { %10068 = vmatmul.mubr.msk.f32.gmra.mxu0 %vm4318_vm1, %v11792_v12  ;;  %v12110_v23 = vpop.f32.mrf.mxu1  ;;  %10270 = vmatprep.mubr.msk.f32.mxu1 %vm4318_vm1, %v11398_v6  ;;  %v12130_v6 = vpop.f32.mrf.mxu0  ;;  %v13795_v12 = vld [vmem:[#allocation9_spill] sm:$0xff] }
 0x2bd   : > { %10070 = vmatprep.mubr.msk.f32.mxu0 %vm4318_vm1, %v11811_v25  ;;  %v13798_v25 = vld [vmem:[#allocation8_spill] sm:$0xff] }
 0x2be   : > { %v12118_v0 = vpop.f32.mrf.mxu1 }
 0x2bf   : > { %10271 = vmatmul.mubr.msk.f32.gmra.mxu1 %vm4318_vm1, %v11388_v59 }
 0x2c0   : > { %10071 = vmatmul.mubr.msk.f32.gmra.mxu0 %vm4318_vm1, %v11804_v31  ;;  %v12124_v41 = vpop.f32.mrf.mxu1  ;;  %10273 = vmatprep.mubr.msk.f32.mxu1 %vm4318_vm1, %v11418_v28  ;;  %v12144_v28 = vpop.f32.mrf.mxu0 }
 0x2c1   : > { %10073 = vmatprep.mubr.msk.f32.mxu0 %vm4318_vm1, %v11823_v46 }
 0x2c2   : > { %v12132_v62 = vpop.f32.mrf.mxu1 }
 0x2c3   : > { %10274 = vmatmul.mubr.msk.f32.gmra.mxu1 %vm4318_vm1, %v11408_v17 }
 0x2c4   : > { %10074 = vmatmul.mubr.msk.f32.gmra.mxu0 %vm4318_vm1, %v11816_v57  ;;  %v12138_v59 = vpop.f32.mrf.mxu1  ;;  %10276 = vmatprep.mubr.msk.f32.mxu1 %vm4318_vm1, %v11438_v48  ;;  %v12158_v48 = vpop.f32.mrf.mxu0  ;;  %v13799_v57 = vld [vmem:[#allocation46_spill] sm:$0xff] }
 0x2c5   : > { %10076 = vmatprep.mubr.msk.f32.mxu0 %vm4318_vm1, %v11835_v9  ;;  %13791 = vst [vmem:[#allocation73_spill] sm:$0xff] %v12158_v48  ;;  %v13801_v9 = vld [vmem:[#allocation51_spill] sm:$0xff]  ;;  %v13832_v48 = vld [vmem:[#allocation64_spill] sm:$0xff] }
 0x2c6   : > { %v12146_v40 = vpop.f32.mrf.mxu1 }
 0x2c7   : > { %10277 = vmatmul.mubr.msk.f32.gmra.mxu1 %vm4318_vm1, %v11428_v38 }
 0x2c8   : > { %10077 = vmatmul.mubr.msk.f32.gmra.mxu0 %vm4318_vm1, %v11828_v29  ;;  %v12152_v17 = vpop.f32.mrf.mxu1  ;;  %10279 = vmatprep.mubr.msk.f32.mxu1 %vm4318_vm1, %v11458_v7  ;;  %v12172_v7 = vpop.f32.mrf.mxu0  ;;  %v13800_v29 = vld [vmem:[#allocation11_spill] sm:$0xff] }
 0x2c9   : > { %10079 = vmatprep.mubr.msk.f32.mxu0 %vm4318_vm1, %v11847_v36 }
 0x2ca   : > { %v12160_v3 = vpop.f32.mrf.mxu1 }
 0x2cb   : > { %10280 = vmatmul.mubr.msk.f32.gmra.mxu1 %vm4318_vm1, %v11448_v58 }
 0x2cc   : > { %10080 = vmatmul.mubr.msk.f32.gmra.mxu0 %vm4318_vm1, %v11840_v55  ;;  %v12166_v38 = vpop.f32.mrf.mxu1  ;;  %10282 = vmatprep.mubr.msk.f32.mxu1 %vm4318_vm1, %v11484_v35  ;;  %v12186_v35 = vpop.f32.mrf.mxu0 }
 0x2cd   : > { %10082 = vmatprep.mubr.msk.f32.mxu0 %vm4318_vm1, %v13792_v49  ;;  %13797 = vst [vmem:[#allocation45_spill] sm:$0xff] %v12186_v35  ;;  %v13805_v49 = vld [vmem:[#allocation13_spill] sm:$0xff]  ;;  %v13822_v35 = vld [vmem:[#allocation63_spill] sm:$0xff] }
 0x2ce   : > { %v12174_v45 = vpop.f32.mrf.mxu1  ;;  %v12200_v55 = vpop.f32.mrf.mxu0 }
 0x2cf   : > { %10283 = vmatmul.mubr.msk.f32.gmra.mxu1 %vm4318_vm1, %v13793_v22  ;;  %13802 = vst [vmem:[#allocation7_spill] sm:$0xff] %v12200_v55  ;;  %v13806_v22 = vld [vmem:[#allocation54_spill] sm:$0xff]  ;;  %v13825_v55 = vld [vmem:[#allocation61_spill] sm:$0xff] }
 0x2d0   : > { %10083 = vmatmul.mubr.msk.f32.gmra.mxu0 %vm4318_vm1, %v13794_v18  ;;  %v12180_v58 = vpop.f32.mrf.mxu1  ;;  %10285 = vmatprep.mubr.msk.f32.mxu1 %vm4318_vm1, %v13795_v12  ;;  %v12214_v18 = vpop.f32.mrf.mxu0 }
 0x2d1   : > { %10085 = vmatprep.mubr.msk.f32.mxu0 %vm4318_vm1, %v13796_v5  ;;  %13807 = vst [vmem:[#allocation43_spill] sm:$0xff] %v12214_v18  ;;  %v13808_v5 = vld [vmem:[#allocation12_spill] sm:$0xff] }
 0x2d2   : > { %v12188_v31 = vpop.f32.mrf.mxu1  ;;  %v13818_v18 = vld [vmem:[#allocation16_spill] sm:$0xff] }
 0x2d3   : > { %10286 = vmatmul.mubr.msk.f32.gmra.mxu1 %vm4318_vm1, %v13798_v25  ;;  %v13809_v25 = vld [vmem:[#allocation52_spill] sm:$0xff] }
 0x2d4   : > { %10086 = vmatmul.mubr.msk.f32.gmra.mxu0 %vm4318_vm1, %v13799_v57  ;;  %v12194_v46 = vpop.f32.mrf.mxu1  ;;  %10288 = vmatprep.mubr.msk.f32.mxu1 %vm4318_vm1, %v13800_v29  ;;  %v13810_v29 = vld [vmem:[#allocation15_spill] sm:$0xff] }
 0x2d5   : > { %10088 = vmatprep.mubr.msk.f32.mxu0 %vm4318_vm1, %v13801_v9  ;;  %v13811_v9 = vld [vmem:[#allocation57_spill] sm:$0xff] }
 0x2d6   : > { %v12202_v36 = vpop.f32.mrf.mxu1 }
 0x2d7   : > { %10289 = vmatmul.mubr.msk.f32.gmra.mxu1 %vm4318_vm1, %v13803_v21  ;;  %v12228_v21 = vpop.f32.mrf.mxu0 }
 0x2d8   : > { %10089 = vmatmul.mubr.msk.f32.gmra.mxu0 %vm4318_vm1, %v13804_v1  ;;  %v12208_v10 = vpop.f32.mrf.mxu1  ;;  %10291 = vmatprep.mubr.msk.f32.mxu1 %vm4318_vm1, %v13805_v49  ;;  %13812 = vst [vmem:[#allocation9_spill] sm:$0xff] %v12228_v21  ;;  %v13813_v49 = vld [vmem:[#allocation14_spill] sm:$0xff] }
 0x2d9   : > { %10091 = vmatprep.mubr.msk.f32.mxu0 %vm4318_vm1, %v13806_v22  ;;  %v13814_v22 = vld [vmem:[#allocation55_spill] sm:$0xff]  ;;  %v13819_v21 = vld [vmem:[#allocation58_spill] sm:$0xff] }
 0x2da   : > { %v12216_v12 = vpop.f32.mrf.mxu1 }
 0x2db   : > { %10292 = vmatmul.mubr.msk.f32.gmra.mxu1 %vm4318_vm1, %v13808_v5 }
 0x2dc   : > { %10092 = vmatmul.mubr.msk.f32.gmra.mxu0 %vm4318_vm1, %v13809_v25  ;;  %v12222_v57 = vpop.f32.mrf.mxu1  ;;  %10294 = vmatprep.mubr.msk.f32.mxu1 %vm4318_vm1, %v13810_v29  ;;  %v13815_v25 = vld [vmem:[#allocation17_spill] sm:$0xff]  ;;  %v12242_v29 = vpop.f32.mrf.mxu0 }
 0x2dd   : > { %10094 = vmatprep.mubr.msk.f32.mxu0 %vm4318_vm1, %v13811_v9  ;;  %13817 = vst [vmem:[#allocation48_spill] sm:$0xff] %v12242_v29  ;;  %v13824_v29 = vld [vmem:[#allocation18_spill] sm:$0xff] }
 0x2de   : > { %v12230_v1 = vpop.f32.mrf.mxu1 }
 0x2df   : > { %10295 = vmatmul.mubr.msk.f32.gmra.mxu1 %vm4318_vm1, %v13813_v49 }
 0x2e0   : > { %10095 = vmatmul.mubr.msk.f32.gmra.mxu0 %vm4318_vm1, %v13814_v22  ;;  %v12236_v5 = vpop.f32.mrf.mxu1  ;;  %10297 = vmatprep.mubr.msk.f32.mxu1 %vm4318_vm1, %v13815_v25  ;;  %v13821_v22 = vld [vmem:[#allocation19_spill] sm:$0xff]  ;;  %v12256_v25 = vpop.f32.mrf.mxu0 }
 0x2e1   : > { %10097 = vmatprep.mubr.msk.f32.mxu0 %vm4318_vm1, %v13816_v8  ;;  %13823 = vst [vmem:[#allocation46_spill] sm:$0xff] %v12256_v25  ;;  %v13831_v25 = vld [vmem:[#allocation20_spill] sm:$0xff] }
 0x2e2   : > { %v12244_v9 = vpop.f32.mrf.mxu1 }
 0x2e3   : > { %10298 = vmatmul.mubr.msk.f32.gmra.mxu1 %vm4318_vm1, %v13818_v18 }
 0x2e4   : > { %10098 = vmatmul.mubr.msk.f32.gmra.mxu0 %vm4318_vm1, %v13819_v21  ;;  %v12250_v49 = vpop.f32.mrf.mxu1  ;;  %10300 = vmatprep.mubr.msk.f32.mxu1 %vm4318_vm1, %v13821_v22  ;;  %v13827_v21 = vld [vmem:[#allocation21_spill] sm:$0xff]  ;;  %v12270_v22 = vpop.f32.mrf.mxu0 }
 0x2e5   : > { %13820 = vst [vmem:[#allocation8_spill] sm:$0xff] %v12250_v49  ;;  %10100 = vmatprep.mubr.msk.f32.mxu0 %vm4318_vm1, %v13822_v35  ;;  %v13828_v49 = vld [vmem:[#allocation66_spill] sm:$0xff]  ;;  %13829 = vst [vmem:[#allocation51_spill] sm:$0xff] %v12270_v22 }
 0x2e6   : > { %v12258_v8 = vpop.f32.mrf.mxu1  ;;  %v13838_v22 = vld [vmem:[#allocation22_spill] sm:$0xff] }
 0x2e7   : > { %10301 = vmatmul.mubr.msk.f32.gmra.mxu1 %vm4318_vm1, %v13824_v29 }
 0x2e8   : > { %10101 = vmatmul.mubr.msk.f32.gmra.mxu0 %vm4318_vm1, %v13825_v55  ;;  %v12264_v18 = vpop.f32.mrf.mxu1  ;;  %10303 = vmatprep.mubr.msk.f32.mxu1 %vm4318_vm1, %v13827_v21  ;;  %v13834_v55 = vld [vmem:[#allocation23_spill] sm:$0xff]  ;;  %v12284_v21 = vpop.f32.mrf.mxu0 }
 0x2e9   : > { %13826 = vst [vmem:[#allocation11_spill] sm:$0xff] %v12264_v18  ;;  %10103 = vmatprep.mubr.msk.f32.mxu0 %vm4318_vm1, %v13828_v49  ;;  %v13835_v18 = vld [vmem:[#allocation69_spill] sm:$0xff]  ;;  %13836 = vst [vmem:[#allocation13_spill] sm:$0xff] %v12284_v21  ;;  %v13843_v21 = vld [vmem:[#allocation24_spill] sm:$0xff] }
 0x2ea   : > { %v12272_v35 = vpop.f32.mrf.mxu1 }
 0x2eb   : > { %13830 = vst [vmem:[#allocation10_spill] sm:$0xff] %v12272_v35  ;;  %10304 = vmatmul.mubr.msk.f32.gmra.mxu1 %vm4318_vm1, %v13831_v25  ;;  %v13839_v35 = vld [vmem:[#allocation67_spill] sm:$0xff] }
 0x2ec   : > { %10104 = vmatmul.mubr.msk.f32.gmra.mxu0 %vm4318_vm1, %v13832_v48  ;;  %v12278_v29 = vpop.f32.mrf.mxu1  ;;  %10306 = vmatprep.mubr.msk.f32.mxu1 %vm4318_vm1, %v13834_v55  ;;  %v13840_v48 = vld [vmem:[#allocation25_spill] sm:$0xff]  ;;  %v12298_v55 = vpop.f32.mrf.mxu0 }
 0x2ed   : > { %13833 = vst [vmem:[#allocation49_spill] sm:$0xff] %v12278_v29  ;;  %10106 = vmatprep.mubr.msk.f32.mxu0 %vm4318_vm1, %v13835_v18  ;;  %v13841_v29 = vld [vmem:[#allocation72_spill] sm:$0xff]  ;;  %13842 = vst [vmem:[#allocation12_spill] sm:$0xff] %v12298_v55  ;;  %v13847_v55 = vld [vmem:[#allocation26_spill] sm:$0xff] }
 0x2ee   : > { %v12286_v49 = vpop.f32.mrf.mxu1 }
 0x2ef   : > { %13837 = vst [vmem:[#allocation54_spill] sm:$0xff] %v12286_v49  ;;  %10307 = vmatmul.mubr.msk.f32.gmra.mxu1 %vm4318_vm1, %v13838_v22  ;;  %v13844_v49 = vld [vmem:[#allocation70_spill] sm:$0xff] }
 0x2f0   : > { %10107 = vmatmul.mubr.msk.f32.gmra.mxu0 %vm4318_vm1, %v13839_v35  ;;  %v12292_v25 = vpop.f32.mrf.mxu1  ;;  %10309 = vmatprep.mubr.msk.f32.mxu1 %vm4318_vm1, %v13840_v48  ;;  %v13845_v35 = vld [vmem:[#allocation27_spill] sm:$0xff]  ;;  %v12312_v48 = vpop.f32.mrf.mxu0 }
 0x2f1   : > { %10109 = vmatprep.mubr.msk.f32.mxu0 %vm4318_vm1, %v13841_v29  ;;  %13846 = vst [vmem:[#allocation52_spill] sm:$0xff] %v12312_v48  ;;  %v13850_v48 = vld [vmem:[#allocation28_spill] sm:$0xff] }
 0x2f2   : > { %v12300_v18 = vpop.f32.mrf.mxu1 }
 0x2f3   : > { %10310 = vmatmul.mubr.msk.f32.gmra.mxu1 %vm4318_vm1, %v13843_v21 }
 0x2f4   : > { %10110 = vmatmul.mubr.msk.f32.gmra.mxu0 %vm4318_vm1, %v13844_v49  ;;  %v12306_v22 = vpop.f32.mrf.mxu1  ;;  %10312 = vmatprep.mubr.msk.f32.mxu1 %vm4318_vm1, %v13845_v35  ;;  %v13848_v49 = vld [vmem:[#allocation29_spill] sm:$0xff]  ;;  %v12326_v35 = vpop.f32.mrf.mxu0 }
 0x2f5   : > { %10112 = vmatprep.mubr.msk.f32.mxu0 %vm4318_vm1, %v11979_v39  ;;  %13849 = vst [vmem:[#allocation15_spill] sm:$0xff] %v12326_v35  ;;  %v13852_v35 = vld [vmem:[#allocation30_spill] sm:$0xff] }
 0x2f6   : > { %v12314_v29 = vpop.f32.mrf.mxu1 }
 0x2f7   : > { %10313 = vmatmul.mubr.msk.f32.gmra.mxu1 %vm4318_vm1, %v13847_v55  ;;  %v13851_v55 = vld [vmem:[#allocation31_spill] sm:$0xff] }
 0x2f8   : > { %10113 = vmatmul.mubr.msk.f32.gmra.mxu0 %vm4318_vm1, %v11972_v54  ;;  %v12320_v21 = vpop.f32.mrf.mxu1  ;;  %10315 = vmatprep.mubr.msk.f32.mxu1 %vm4318_vm1, %v13848_v49  ;;  %v12340_v49 = vpop.f32.mrf.mxu0 }
 0x2f9   : > { %10115 = vmatprep.mubr.msk.f32.mxu0 %vm4318_vm1, %v11992_v47 }
 0x2fa   : > { %v12328_v39 = vpop.f32.mrf.mxu1 }
 0x2fb   : > { %10316 = vmatmul.mubr.msk.f32.gmra.mxu1 %vm4318_vm1, %v13850_v48  ;;  %v13853_v48 = vld [vmem:[#allocation33_spill] sm:$0xff] }
 0x2fc   : > { %10116 = vmatmul.mubr.msk.f32.gmra.mxu0 %vm4318_vm1, %v11984_v20  ;;  %10318 = vmatprep.mubr.msk.f32.mxu1 %vm4318_vm1, %v13851_v55  ;;  %v12354_v55 = vpop.f32.mrf.mxu0 }
 0x2fd   : > { %v12336_v54 = vpop.f32.mrf.mxu1  ;;  %10118 = vmatprep.mubr.msk.f32.mxu0 %vm4318_vm1, %v12006_v16  ;;  %v13855_v16 = vld [vmem:[#allocation32_spill] sm:$0xff] }
 0x2ff   : > { %v12342_v47 = vpop.f32.mrf.mxu1  ;;  %10319 = vmatmul.mubr.msk.f32.gmra.mxu1 %vm4318_vm1, %v13852_v35  ;;  %v13856_v35 = vld [vmem:[#allocation35_spill] sm:$0xff] }
 0x300   : > { %10119 = vmatmul.mubr.msk.f32.gmra.mxu0 %vm4318_vm1, %v11998_v13  ;;  %10321 = vmatprep.mubr.msk.f32.mxu1 %vm4318_vm1, %v13853_v48  ;;  %v12366_v48 = vpop.f32.mrf.mxu0 }
 0x301   : > { %v12350_v20 = vpop.f32.mrf.mxu1  ;;  %10121 = vmatprep.mubr.msk.f32.mxu0 %vm4318_vm1, %v12020_v56  ;;  %v13858_v56 = vld [vmem:[#allocation37_spill] sm:$0xff] }
 0x302   : > { %13854 = vst [vmem:[#allocation57_spill] sm:$0xff] %v12350_v20  ;;  %v13857_v20 = vld [vmem:[#allocation34_spill] sm:$0xff] }
 0x303   : > { %10322 = vmatmul.mubr.msk.f32.gmra.mxu1 %vm4318_vm1, %v13855_v16  ;;  %v12362_v13 = vpop.f32.mrf.mxu1  ;;  %v12378_v16 = vpop.f32.mrf.mxu0 }
 0x304   : > { %10122 = vmatmul.mubr.msk.f32.gmra.mxu0 %vm4318_vm1, %v12012_v37  ;;  %10324 = vmatprep.mubr.msk.f32.mxu1 %vm4318_vm1, %v13856_v35  ;;  %v13859_v35 = vld [vmem:[#allocation36_spill] sm:$0xff] }
 0x305   : > { %10124 = vmatprep.mubr.msk.f32.mxu0 %vm4318_vm1, %v12034_v30  ;;  %v12374_v37 = vpop.f32.mrf.mxu1  ;;  %v13860_v30 = vld [vmem:[#allocation39_spill] sm:$0xff] }
 0x307   : > { %10325 = vmatmul.mubr.msk.f32.gmra.mxu1 %vm4318_vm1, %v13857_v20  ;;  %v12390_v20 = vpop.f32.mrf.mxu0 }
 0x308   : > { %10125 = vmatmul.mubr.msk.f32.gmra.mxu0 %vm4318_vm1, %v12026_v53  ;;  %10327 = vmatprep.mubr.msk.f32.mxu1 %vm4318_vm1, %v13858_v56  ;;  %v12386_v53 = vpop.f32.mrf.mxu1  ;;  %v13861_v56 = vld [vmem:[#allocation38_spill] sm:$0xff] }
 0x309   : > { %10127 = vmatprep.mubr.msk.f32.mxu0 %vm4318_vm1, %v12048_v63  ;;  %v13862_v63 = vld [vmem:[#allocation41_spill] sm:$0xff] }
 0x30b   : > { %10328 = vmatmul.mubr.msk.f32.gmra.mxu1 %vm4318_vm1, %v13859_v35  ;;  %v12402_v35 = vpop.f32.mrf.mxu0 }
 0x30c   : > { %10128 = vmatmul.mubr.msk.f32.gmra.mxu0 %vm4318_vm1, %v12040_v2  ;;  %10330 = vmatprep.mubr.msk.f32.mxu1 %vm4318_vm1, %v13860_v30  ;;  %v12398_v2 = vpop.f32.mrf.mxu1  ;;  %v13863_v30 = vld [vmem:[#allocation40_spill] sm:$0xff] }
 0x30d   : > { %10130 = vmatprep.mubr.msk.f32.mxu0 %vm4318_vm1, %v12062_v33  ;;  %v13864_v33 = vld [vmem:[#allocation44_spill] sm:$0xff] }
 0x30f   : > { %10331 = vmatmul.mubr.msk.f32.gmra.mxu1 %vm4318_vm1, %v13861_v56  ;;  %v12414_v56 = vpop.f32.mrf.mxu0 }
 0x310   : > { %10131 = vmatmul.mubr.msk.f32.gmra.mxu0 %vm4318_vm1, %v12054_v19  ;;  %10333 = vmatprep.mubr.msk.f32.mxu1 %vm4318_vm1, %v13862_v63  ;;  %v12410_v19 = vpop.f32.mrf.mxu1  ;;  %v13865_v63 = vld [vmem:[#allocation42_spill] sm:$0xff] }
 0x311   : > { %10133 = vmatprep.mubr.msk.f32.mxu0 %vm4318_vm1, %v12076_v52  ;;  %v13866_v52 = vld [vmem:[#allocation50_spill] sm:$0xff] }
 0x313   : > { %10334 = vmatmul.mubr.msk.f32.gmra.mxu1 %vm4318_vm1, %v13863_v30  ;;  %v12426_v30 = vpop.f32.mrf.mxu0 }
 0x314   : > { %10134 = vmatmul.mubr.msk.f32.gmra.mxu0 %vm4318_vm1, %v12068_v34  ;;  %10336 = vmatprep.mubr.msk.f32.mxu1 %vm4318_vm1, %v13864_v33  ;;  %v12422_v34 = vpop.f32.mrf.mxu1  ;;  %v13867_v33 = vld [vmem:[#allocation47_spill] sm:$0xff] }
 0x315   : > { %10136 = vmatprep.mubr.msk.f32.mxu0 %vm4318_vm1, %v12090_v14  ;;  %v13868_v14 = vld [vmem:[#allocation56_spill] sm:$0xff] }
 0x317   : > { %10337 = vmatmul.mubr.msk.f32.gmra.mxu1 %vm4318_vm1, %v13865_v63  ;;  %v12438_v63 = vpop.f32.mrf.mxu0 }
 0x318   : > { %10137 = vmatmul.mubr.msk.f32.gmra.mxu0 %vm4318_vm1, %v12082_v51  ;;  %10339 = vmatprep.mubr.msk.f32.mxu1 %vm4318_vm1, %v13866_v52  ;;  %v12434_v51 = vpop.f32.mrf.mxu1  ;;  %v13869_v52 = vld [vmem:[#allocation53_spill] sm:$0xff] }
 0x319   : > { %10139 = vmatprep.mubr.msk.f32.mxu0 %vm4318_vm1, %v12104_v43  ;;  %v13870_v43 = vld [vmem:[#allocation62_spill] sm:$0xff] }
 0x31b   : > { %10340 = vmatmul.mubr.msk.f32.gmra.mxu1 %vm4318_vm1, %v13867_v33  ;;  %v12450_v33 = vpop.f32.mrf.mxu0 }
 0x31c   : > { %10140 = vmatmul.mubr.msk.f32.gmra.mxu0 %vm4318_vm1, %v12096_v4  ;;  %10342 = vmatprep.mubr.msk.f32.mxu1 %vm4318_vm1, %v13868_v14  ;;  %v12446_v4 = vpop.f32.mrf.mxu1  ;;  %v13872_v14 = vld [vmem:[#allocation59_spill] sm:$0xff] }
 0x31d   : > { %10142 = vmatprep.mubr.msk.f32.mxu0 %vm4318_vm1, %v12118_v0  ;;  %13871 = vst [vmem:[#allocation14_spill] sm:$0xff] %v12446_v4  ;;  %v13873_v0 = vld [vmem:[#allocation68_spill] sm:$0xff] }
 0x31f   : > { %10343 = vmatmul.mubr.msk.f32.gmra.mxu1 %vm4318_vm1, %v13869_v52  ;;  %v12462_v52 = vpop.f32.mrf.mxu0 }
 0x320   : > { %10143 = vmatmul.mubr.msk.f32.gmra.mxu0 %vm4318_vm1, %v12110_v23  ;;  %10345 = vmatprep.mubr.msk.f32.mxu1 %vm4318_vm1, %v13870_v43  ;;  %v12458_v23 = vpop.f32.mrf.mxu1 }
 0x321   : > { %10145 = vmatprep.mubr.msk.f32.mxu0 %vm4318_vm1, %v12132_v62  ;;  %v13874_v62 = vld [vmem:[#allocation65_spill] sm:$0xff]  ;;  %v12468_v4 = vpop.f32.mrf.mxu0 }
 0x322   : > { %v12464_v43 = vpop.f32.mrf.mxu1 }
 0x323   : > { %10346 = vmatmul.mubr.msk.f32.gmra.mxu1 %vm4318_vm1, %v13872_v14  ;;  %v12480_v14 = vpop.f32.mrf.mxu0 }
 0x324   : > { %10146 = vmatmul.mubr.msk.f32.gmra.mxu0 %vm4318_vm1, %v12124_v41  ;;  %10348 = vmatprep.mubr.msk.f32.mxu1 %vm4318_vm1, %v13873_v0  ;;  %v12476_v41 = vpop.f32.mrf.mxu1 }
 0x325   : > { %10148 = vmatprep.mubr.msk.f32.mxu0 %vm4318_vm1, %v12146_v40  ;;  %v13875_v40 = vld [vmem:[#allocation71_spill] sm:$0xff] }
 0x327   : > { %10349 = vmatmul.mubr.msk.f32.gmra.mxu1 %vm4318_vm1, %v13874_v62  ;;  %v13884_v62 = vld [vmem:[#allocation43_spill] sm:$0xff] }
 0x328   : > { %10149 = vmatmul.mubr.msk.f32.gmra.mxu0 %vm4318_vm1, %v12138_v59  ;;  %10351 = vmatprep.mubr.msk.f32.mxu1 %vm4318_vm1, %v11975_v27  ;;  %v12486_v59 = vpop.f32.mrf.mxu1  ;;  %v12490_v27 = vpop.f32.mrf.mxu0 }
 0x329   : > { %10151 = vmatprep.mubr.msk.f32.mxu0 %vm4318_vm1, %v12160_v3 }
 0x32b   : > { %10352 = vmatmul.mubr.msk.f32.gmra.mxu1 %vm4318_vm1, %v13875_v40 }
 0x32c   : > { %10152 = vmatmul.mubr.msk.f32.gmra.mxu0 %vm4318_vm1, %v12152_v17  ;;  %10354 = vmatprep.mubr.msk.f32.mxu1 %vm4318_vm1, %v12004_v44  ;;  %v12498_v17 = vpop.f32.mrf.mxu1  ;;  %v12502_v44 = vpop.f32.mrf.mxu0 }
 0x32d   : > { %10154 = vmatprep.mubr.msk.f32.mxu0 %vm4318_vm1, %v12174_v45 }
 0x32e   : > { %v12504_v3 = vpop.f32.mrf.mxu1  ;;  %v12508_v45 = vpop.f32.mrf.mxu0 }
 0x32f   : > { %10355 = vmatmul.mubr.msk.f32.gmra.mxu1 %vm4318_vm1, %v11990_v24 }
 0x330   : > { %10155 = vmatmul.mubr.msk.f32.gmra.mxu0 %vm4318_vm1, %v12166_v38  ;;  %10357 = vmatprep.mubr.msk.f32.mxu1 %vm4318_vm1, %v12032_v11  ;;  %v12516_v24 = vpop.f32.mrf.mxu1  ;;  %v12520_v11 = vpop.f32.mrf.mxu0 }
 0x331   : > { %10157 = vmatprep.mubr.msk.f32.mxu0 %vm4318_vm1, %v12188_v31  ;;  %v13876_v31 = vld [vmem:[#allocation73_spill] sm:$0xff] }
 0x333   : > { %10358 = vmatmul.mubr.msk.f32.gmra.mxu1 %vm4318_vm1, %v12018_v60  ;;  %v12526_v60 = vpop.f32.mrf.mxu1 }
 0x334   : > { %10158 = vmatmul.mubr.msk.f32.gmra.mxu0 %vm4318_vm1, %v12180_v58  ;;  %10360 = vmatprep.mubr.msk.f32.mxu1 %vm4318_vm1, %v12060_v42  ;;  %v12530_v42 = vpop.f32.mrf.mxu0 }
 0x335   : > { %10160 = vmatprep.mubr.msk.f32.mxu0 %vm4318_vm1, %v12202_v36 }
 0x337   : > { %10361 = vmatmul.mubr.msk.f32.gmra.mxu1 %vm4318_vm1, %v12046_v26  ;;  %v12538_v26 = vpop.f32.mrf.mxu1 }
 0x338   : > { %10161 = vmatmul.mubr.msk.f32.gmra.mxu0 %vm4318_vm1, %v12194_v46  ;;  %10363 = vmatprep.mubr.msk.f32.mxu1 %vm4318_vm1, %v12088_v15  ;;  %v12542_v15 = vpop.f32.mrf.mxu0  ;;  %v13877_v46 = vld [vmem:[#allocation8_spill] sm:$0xff] }
 0x339   : > { %10163 = vmatprep.mubr.msk.f32.mxu0 %vm4318_vm1, %v12216_v12  ;;  %v12544_v38 = vpop.f32.mrf.mxu1 }
 0x33a   : > { %v12548_v58 = vpop.f32.mrf.mxu0 }
 0x33b   : > { %10364 = vmatmul.mubr.msk.f32.gmra.mxu1 %vm4318_vm1, %v12074_v61  ;;  %v12556_v61 = vpop.f32.mrf.mxu1 }
 0x33c   : > { %10164 = vmatmul.mubr.msk.f32.gmra.mxu0 %vm4318_vm1, %v12208_v10  ;;  %10366 = vmatprep.mubr.msk.f32.mxu1 %vm4318_vm1, %v12116_v50  ;;  %v12560_v50 = vpop.f32.mrf.mxu0  ;;  %v13879_v10 = vld [vmem:[#allocation10_spill] sm:$0xff] }
 0x33d   : > { %10166 = vmatprep.mubr.msk.f32.mxu0 %vm4318_vm1, %v12230_v1 }
 0x33f   : > { %10367 = vmatmul.mubr.msk.f32.gmra.mxu1 %vm4318_vm1, %v12102_v32  ;;  %v12566_v32 = vpop.f32.mrf.mxu1 }
 0x340   : > { %10167 = vmatmul.mubr.msk.f32.gmra.mxu0 %vm4318_vm1, %v12222_v57  ;;  %10369 = vmatprep.mubr.msk.f32.mxu1 %vm4318_vm1, %v12144_v28  ;;  %v12570_v28 = vpop.f32.mrf.mxu0  ;;  %v13880_v57 = vld [vmem:[#allocation45_spill] sm:$0xff] }
 0x341   : > { %10169 = vmatprep.mubr.msk.f32.mxu0 %vm4318_vm1, %v12244_v9  ;;  %v12578_v36 = vpop.f32.mrf.mxu1  ;;  %v13882_v9 = vld [vmem:[#allocation9_spill] sm:$0xff] }
 0x343   : > { %10370 = vmatmul.mubr.msk.f32.gmra.mxu1 %vm4318_vm1, %v12130_v6  ;;  %v13878_v6 = vld [vmem:[#allocation7_spill] sm:$0xff] }
 0x344   : > { %10170 = vmatmul.mubr.msk.f32.gmra.mxu0 %vm4318_vm1, %v12236_v5  ;;  %10372 = vmatprep.mubr.msk.f32.mxu1 %vm4318_vm1, %v12172_v7  ;;  %v12582_v7 = vpop.f32.mrf.mxu0  ;;  %v13881_v5 = vld [vmem:[#allocation11_spill] sm:$0xff] }
 0x345   : > { %10172 = vmatprep.mubr.msk.f32.mxu0 %vm4318_vm1, %v12258_v8  ;;  %v13883_v8 = vld [vmem:[#allocation54_spill] sm:$0xff] }
 0x347   : > { %10373 = vmatmul.mubr.msk.f32.gmra.mxu1 %vm4318_vm1, %v13876_v31  ;;  %v12584_v12 = vpop.f32.mrf.mxu1  ;;  %v13885_v31 = vld [vmem:[#allocation49_spill] sm:$0xff] }
 0x348   : > { %10173 = vmatmul.mubr.msk.f32.gmra.mxu0 %vm4318_vm1, %v13877_v46  ;;  %10375 = vmatprep.mubr.msk.f32.mxu1 %vm4318_vm1, %v13878_v6  ;;  %v12588_v1 = vpop.f32.mrf.mxu0  ;;  %v13886_v46 = vld [vmem:[#allocation46_spill] sm:$0xff] }
 0x349   : > { %10175 = vmatprep.mubr.msk.f32.mxu0 %vm4318_vm1, %v13879_v10  ;;  %v12596_v0 = vpop.f32.mrf.mxu1 }
 0x34a   : > { %v12600_v40 = vpop.f32.mrf.mxu0 }
 0x34b   : > { %10376 = vmatmul.mubr.msk.f32.gmra.mxu1 %vm4318_vm1, %v13880_v57  ;;  %v13889_v57 = vld [vmem:[#allocation48_spill] sm:$0xff] }
 0x34c   : > { %10176 = vmatmul.mubr.msk.f32.gmra.mxu0 %vm4318_vm1, %v13881_v5  ;;  %10378 = vmatprep.mubr.msk.f32.mxu1 %vm4318_vm1, %v13882_v9  ;;  %v13890_v5 = vld [vmem:[#allocation13_spill] sm:$0xff] }
 0x34d   : > { %10178 = vmatprep.mubr.msk.f32.mxu0 %vm4318_vm1, %v13883_v8 }
 0x34f   : > { %10379 = vmatmul.mubr.msk.f32.gmra.mxu1 %vm4318_vm1, %v13884_v62  ;;  %v12606_v6 = vpop.f32.mrf.mxu1 }
 0x350   : > { %10179 = vmatmul.mubr.msk.f32.gmra.mxu0 %vm4318_vm1, %v13885_v31  ;;  %10381 = vmatprep.mubr.msk.f32.mxu1 %vm4318_vm1, %v13886_v46  ;;  %13887 = vst [vmem:[#allocation55_spill] sm:$0xff] %v12606_v6  ;;  %v12610_v10 = vpop.f32.mrf.mxu0 }
 0x351   : > { %10181 = vmatprep.mubr.msk.f32.mxu0 %vm4318_vm1, %v12300_v18  ;;  %13888 = vst [vmem:[#allocation17_spill] sm:$0xff] %v12610_v10  ;;  %v12618_v9 = vpop.f32.mrf.mxu1  ;;  %v13892_v18 = vld [vmem:[#allocation51_spill] sm:$0xff] }
 0x352   : > { %v12622_v8 = vpop.f32.mrf.mxu0 }
 0x353   : > { %10382 = vmatmul.mubr.msk.f32.gmra.mxu1 %vm4318_vm1, %v13889_v57 }
 0x354   : > { %10182 = vmatmul.mubr.msk.f32.gmra.mxu0 %vm4318_vm1, %v12292_v25  ;;  %10384 = vmatprep.mubr.msk.f32.mxu1 %vm4318_vm1, %v13890_v5  ;;  %v13894_v25 = vld [vmem:[#allocation52_spill] sm:$0xff] }
 0x355   : > { %10184 = vmatprep.mubr.msk.f32.mxu0 %vm4318_vm1, %v12314_v29  ;;  %v13897_v5 = vld [vmem:[#allocation12_spill] sm:$0xff] }
 0x357   : > { %v12624_v62 = vpop.f32.mrf.mxu1  ;;  %10385 = vmatmul.mubr.msk.f32.gmra.mxu1 %vm4318_vm1, %v13892_v18 }
 0x358   : > { %13891 = vst [vmem:[#allocation60_spill] sm:$0xff] %v12624_v62  ;;  %v12628_v31 = vpop.f32.mrf.mxu0  ;;  %10185 = vmatmul.mubr.msk.f32.gmra.mxu0 %vm4318_vm1, %v12306_v22  ;;  %10387 = vmatprep.mubr.msk.f32.mxu1 %vm4318_vm1, %v13894_v25  ;;  %v12647_v22 = vld [vmem:[%s13713_s5] ss:$0 sm:$0xff] }
 0x359   : > { %13893 = vst [vmem:[#allocation16_spill] sm:$0xff] %v12628_v31  ;;  %10187 = vmatprep.mubr.msk.f32.mxu0 %vm4318_vm1, %v12328_v39  ;;  %v12636_v46 = vpop.f32.mrf.mxu1 }
 0x35a   : > { %13895 = vst [vmem:[#allocation58_spill] sm:$0xff] %v12636_v46  ;;  %v12638_v29 = vpop.f32.mrf.mxu0  ;;  %v13898_v46 = vld [vmem:[#allocation15_spill] sm:$0xff] }
 0x35b   : > { %13896 = vst [vmem:[#allocation19_spill] sm:$0xff] %v12638_v29  ;;  %v10245_v57 = vpop.f32.mrf.mxu1  ;;  %10388 = vmatmul.mubr.msk.f32.gmra.mxu1 %vm4318_vm1, %v13897_v5 }
 0x35c   : > { %v10045_v18 = vpop.f32.mrf.mxu0  ;;  %10188 = vmatmul.mubr.msk.f32.gmra.mxu0 %vm4318_vm1, %v12320_v21  ;;  %10390 = vmatprep.mubr.msk.f32.mxu1 %vm4318_vm1, %v12340_v49  ;;  %v12663_v49 = vld [vmem:[%s13714_s6] ss:$0 sm:$0xff] }
 0x35d   : > { %v5864_v39 = vadd.f32 %v10245_v57, %v10045_v18  ;;  %10190 = vmatprep.mubr.msk.f32.mxu0 %vm4318_vm1, %v12342_v47  ;;  %v5858_v25 = vpop.f32.mrf.mxu1 }
 0x35e   : > { %v4769_v62 = vpop.f32.mrf.mxu0 }
 0x35f   : > { %v6505_v5 = vadd.f32 %v12647_v22, %v5864_v39  ;;  %v5859_v31 = vadd.f32 %v5858_v25, %v4769_v62  ;;  %v10248_v29 = vpop.f32.mrf.mxu1  ;;  %10391 = vmatmul.mubr.msk.f32.gmra.mxu1 %vm4318_vm1, %v13898_v46 }
 0x360   : > { %v10048_v21 = vpop.f32.mrf.mxu0  ;;  %10191 = vmatmul.mubr.msk.f32.gmra.mxu0 %vm4318_vm1, %v12336_v54  ;;  %10393 = vmatprep.mubr.msk.f32.mxu1 %vm4318_vm1, %v12366_v48 }
 0x361   : > { %v6633_v47 = vmax.f32 %v6505_v5, 0.0  ;;  %v6504_v57 = vadd.f32 %v12647_v22, %v5859_v31  ;;  %v5874_v62 = vadd.f32 %v10248_v29, %v10048_v21  ;;  %10193 = vmatprep.mubr.msk.f32.mxu0 %vm4318_vm1, %v12362_v13  ;;  %v5868_v46 = vpop.f32.mrf.mxu1  ;;  %v13899_v5 = vld [vmem:[#allocation57_spill] sm:$0xff] }
 0x362   : > { %v4779_v18 = vpop.f32.mrf.mxu0 }
 0x363   : > { %v6632_v39 = vmax.f32 %v6504_v57, 0.0  ;;  %v6507_v54 = vadd.f32 %v12647_v22, %v5874_v62  ;;  %v5869_v25 = vadd.f32 %v5868_v46, %v4779_v18  ;;  %v10251_v6 = vpop.f32.mrf.mxu1  ;;  %10394 = vmatmul.mubr.msk.f32.gmra.mxu1 %vm4318_vm1, %v12354_v55  ;;  %v6768_v48 = vmul.f32 %v12663_v49, %v6633_v47 }
 0x364   : > { %v10051_v10 = vpop.f32.mrf.mxu0  ;;  %10194 = vmatmul.mubr.msk.f32.gmra.mxu0 %vm4318_vm1, %v13899_v5  ;;  %10396 = vmatprep.mubr.msk.f32.mxu1 %vm4318_vm1, %v12390_v20 }
 0x365   : > { %v6635_v13 = vmax.f32 %v6507_v54, 0.0  ;;  %v6506_v31 = vadd.f32 %v12647_v22, %v5869_v25  ;;  %v5884_v29 = vadd.f32 %v10251_v6, %v10051_v10  ;;  %10196 = vmatprep.mubr.msk.f32.mxu0 %vm4318_vm1, %v12386_v53  ;;  %v5878_v21 = vpop.f32.mrf.mxu1  ;;  %v6899_v57 = vsel %vm4318_vm1, %v6768_v48, 0.0 }
 0x366   : > { %6900 = vadd.xlane.f32.xlu1 %v6899_v57  ;;  %v4789_v55 = vpop.f32.mrf.mxu0  ;;  %v6767_v47 = vmul.f32 %v12663_v49, %v6632_v39 }
 0x367   : > { %v5879_v62 = vadd.f32 %v5878_v21, %v4789_v55  ;;  %v10254_v46 = vpop.f32.mrf.mxu1  ;;  %10397 = vmatmul.mubr.msk.f32.gmra.mxu1 %vm4318_vm1, %v12378_v16  ;;  %v6634_v20 = vmax.f32 %v6506_v31, 0.0  ;;  %v6509_v18 = vadd.f32 %v12647_v22, %v5884_v29  ;;  %v6770_v10 = vmul.f32 %v12663_v49, %v6635_v13 }
 0x368   : > { %10197 = vmatmul.mubr.msk.f32.gmra.mxu0 %vm4318_vm1, %v12374_v37  ;;  %v6896_v53 = vsel %vm4318_vm1, %v6767_v47, 0.0  ;;  %v10054_v6 = vpop.f32.mrf.mxu0  ;;  %10399 = vmatprep.mubr.msk.f32.mxu1 %vm4318_vm1, %v12414_v56 }
 0x369   : > { %v6508_v39 = vadd.f32 %v12647_v22, %v5879_v62  ;;  %6897 = vadd.xlane.f32.xlu0 %v6896_v53  ;;  %v5894_v54 = vadd.f32 %v10254_v46, %v10054_v6  ;;  %10199 = vmatprep.mubr.msk.f32.mxu0 %vm4318_vm1, %v12410_v19  ;;  %v5888_v16 = vpop.f32.mrf.mxu1  ;;  %v6637_v31 = vmax.f32 %v6509_v18, 0.0  ;;  %v6905_v13 = vsel %vm4318_vm1, %v6770_v10, 0.0 }
 0x36a   : > { %v4799_v25 = vpop.f32.mrf.mxu0  ;;  %v6769_v19 = vmul.f32 %v12663_v49, %v6634_v20 }
 0x36b   : > { %v6636_v48 = vmax.f32 %v6508_v39, 0.0  ;;  %v5889_v5 = vadd.f32 %v5888_v16, %v4799_v25  ;;  %v10257_v37 = vpop.f32.mrf.mxu1  ;;  %10400 = vmatmul.mubr.msk.f32.gmra.mxu1 %vm4318_vm1, %v12402_v35  ;;  %v6511_v56 = vadd.f32 %v12647_v22, %v5894_v54  ;;  %v6772_v6 = vmul.f32 %v12663_v49, %v6637_v31 }
 0x36c   : > { %10200 = vmatmul.mubr.msk.f32.gmra.mxu0 %vm4318_vm1, %v12398_v2  ;;  %v10057_v29 = vpop.f32.mrf.mxu0  ;;  %10402 = vmatprep.mubr.msk.f32.mxu1 %vm4318_vm1, %v12438_v63 }
 0x36d   : > { %v6510_v21 = vadd.f32 %v12647_v22, %v5889_v5  ;;  %6906 = vadd.xlane.f32.xlu0 %v6905_v13  ;;  %v5904_v57 = vadd.f32 %v10257_v37, %v10057_v29  ;;  %10202 = vmatprep.mubr.msk.f32.mxu0 %vm4318_vm1, %v12434_v51  ;;  %v5898_v35 = vpop.f32.mrf.mxu1  ;;  %v6771_v55 = vmul.f32 %v12663_v49, %v6636_v48  ;;  %v6639_v20 = vmax.f32 %v6511_v56, 0.0  ;;  %v13900_v56 = vld [vmem:[#allocation14_spill] sm:$0xff] }
 0x36e   : > { %v4809_v47 = vpop.f32.mrf.mxu0  ;;  %v6902_v51 = vsel %vm4318_vm1, %v6769_v19, 0.0 }
 0x36f   : > { %v6638_v2 = vmax.f32 %v6510_v21, 0.0  ;;  %v5899_v62 = vadd.f32 %v5898_v35, %v4809_v47  ;;  %v10260_v46 = vpop.f32.mrf.mxu1  ;;  %10403 = vmatmul.mubr.msk.f32.gmra.mxu1 %vm4318_vm1, %v12426_v30  ;;  %v6908_v63 = vsel %vm4318_vm1, %v6771_v55, 0.0  ;;  %v6513_v18 = vadd.f32 %v12647_v22, %v5904_v57 }
 0x370   : > { %10203 = vmatmul.mubr.msk.f32.gmra.mxu0 %vm4318_vm1, %v12422_v34  ;;  %6909 = vadd.xlane.f32.xlu1 %v6908_v63  ;;  %v10060_v53 = vpop.f32.mrf.mxu0 }
 0x371   : > { %v6512_v10 = vadd.f32 %v12647_v22, %v5899_v62  ;;  %6903 = vadd.xlane.f32.xlu0 %v6902_v51  ;;  %v5914_v39 = vadd.f32 %v10260_v46, %v10060_v53  ;;  %10205 = vmatprep.mubr.msk.f32.mxu0 %vm4318_vm1, %v12458_v23  ;;  %v5908_v30 = vpop.f32.mrf.mxu1  ;;  %v6773_v54 = vmul.f32 %v12663_v49, %v6638_v2  ;;  %v6641_v37 = vmax.f32 %v6513_v18, 0.0 }
 0x372   : > { %10405 = vmatprep.mubr.msk.f32.mxu1 %vm4318_vm1, %v12462_v52  ;;  %v4819_v34 = vpop.f32.mrf.mxu0  ;;  %v6911_v23 = vsel %vm4318_vm1, %v6772_v6, 0.0  ;;  %v6774_v52 = vmul.f32 %v12663_v49, %v6639_v20 }
 0x373   : > { %v6640_v16 = vmax.f32 %v6512_v10, 0.0  ;;  %v5909_v25 = vadd.f32 %v5908_v30, %v4819_v34  ;;  %v10263_v48 = vpop.f32.mrf.mxu1  ;;  %10406 = vmatmul.mubr.msk.f32.gmra.mxu1 %vm4318_vm1, %v12450_v33  ;;  %v6914_v5 = vsel %vm4318_vm1, %v6773_v54, 0.0  ;;  %v6515_v31 = vadd.f32 %v12647_v22, %v5914_v39 }
 0x374   : > { %10206 = vmatmul.mubr.msk.f32.gmra.mxu0 %vm4318_vm1, %v13900_v56  ;;  %6915 = vadd.xlane.f32.xlu1 %v6914_v5  ;;  %v10063_v13 = vpop.f32.mrf.mxu0 }
 0x375   : > { %v6514_v29 = vadd.f32 %v12647_v22, %v5909_v25  ;;  %6912 = vadd.xlane.f32.xlu0 %v6911_v23  ;;  %v5924_v19 = vadd.f32 %v10263_v48, %v10063_v13  ;;  %10208 = vmatprep.mubr.msk.f32.mxu0 %vm4318_vm1, %v12476_v41  ;;  %v5918_v33 = vpop.f32.mrf.mxu1  ;;  %v6775_v21 = vmul.f32 %v12663_v49, %v6640_v16  ;;  %v6643_v62 = vmax.f32 %v6515_v31, 0.0 }
 0x376   : > { %10408 = vmatprep.mubr.msk.f32.mxu1 %vm4318_vm1, %v12480_v14  ;;  %v4829_v57 = vpop.f32.mrf.mxu0  ;;  %v6917_v41 = vsel %vm4318_vm1, %v6774_v52, 0.0  ;;  %v6776_v14 = vmul.f32 %v12663_v49, %v6641_v37 }
 0x377   : > { %v6642_v35 = vmax.f32 %v6514_v29, 0.0  ;;  %v5919_v55 = vadd.f32 %v5918_v33, %v4829_v57  ;;  %v10266_v47 = vpop.f32.mrf.mxu1  ;;  %10409 = vmatmul.mubr.msk.f32.gmra.mxu1 %vm4318_vm1, %v12468_v4  ;;  %v6920_v2 = vsel %vm4318_vm1, %v6775_v21, 0.0  ;;  %v6517_v46 = vadd.f32 %v12647_v22, %v5924_v19 }
 0x378   : > { %10209 = vmatmul.mubr.msk.f32.gmra.mxu0 %vm4318_vm1, %v12464_v43  ;;  %6921 = vadd.xlane.f32.xlu1 %v6920_v2  ;;  %v10066_v63 = vpop.f32.mrf.mxu0 }
 0x379   : > { %v6516_v20 = vadd.f32 %v12647_v22, %v5919_v55  ;;  %6918 = vadd.xlane.f32.xlu0 %v6917_v41  ;;  %v5934_v18 = vadd.f32 %v10266_v47, %v10066_v63  ;;  %10211 = vmatprep.mubr.msk.f32.mxu0 %vm4318_vm1, %v12498_v17  ;;  %v5928_v4 = vpop.f32.mrf.mxu1  ;;  %v6777_v51 = vmul.f32 %v12663_v49, %v6642_v35  ;;  %v6645_v30 = vmax.f32 %v6517_v46, 0.0 }
 0x37a   : > { %10411 = vmatprep.mubr.msk.f32.mxu1 %vm4318_vm1, %v12502_v44  ;;  %v4839_v43 = vpop.f32.mrf.mxu0  ;;  %v6923_v17 = vsel %vm4318_vm1, %v6776_v14, 0.0  ;;  %v6778_v44 = vmul.f32 %v12663_v49, %v6643_v62 }
 0x37b   : > { %v6644_v53 = vmax.f32 %v6516_v20, 0.0  ;;  %v5929_v6 = vadd.f32 %v5928_v4, %v4839_v43  ;;  %v10269_v10 = vpop.f32.mrf.mxu1  ;;  %10412 = vmatmul.mubr.msk.f32.gmra.mxu1 %vm4318_vm1, %v12490_v27  ;;  %v6926_v39 = vsel %vm4318_vm1, %v6777_v51, 0.0  ;;  %v6519_v54 = vadd.f32 %v12647_v22, %v5934_v18 }
 0x37c   : > { %10212 = vmatmul.mubr.msk.f32.gmra.mxu0 %vm4318_vm1, %v12486_v59  ;;  %6927 = vadd.xlane.f32.xlu1 %v6926_v39  ;;  %v10069_v34 = vpop.f32.mrf.mxu0 }
 0x37d   : > { %v6518_v16 = vadd.f32 %v12647_v22, %v5929_v6  ;;  %6924 = vadd.xlane.f32.xlu0 %v6923_v17  ;;  %v5944_v25 = vadd.f32 %v10269_v10, %v10069_v34  ;;  %10214 = vmatprep.mubr.msk.f32.mxu0 %vm4318_vm1, %v12516_v24  ;;  %v5938_v27 = vpop.f32.mrf.mxu1  ;;  %v6779_v48 = vmul.f32 %v12663_v49, %v6644_v53  ;;  %v6647_v23 = vmax.f32 %v6519_v54, 0.0 }
 0x37e   : > { %10414 = vmatprep.mubr.msk.f32.mxu1 %vm4318_vm1, %v12520_v11  ;;  %v4849_v59 = vpop.f32.mrf.mxu0  ;;  %v6929_v24 = vsel %vm4318_vm1, %v6778_v44, 0.0  ;;  %v6780_v11 = vmul.f32 %v12663_v49, %v6645_v30 }
 0x37f   : > { %v6646_v5 = vmax.f32 %v6518_v16, 0.0  ;;  %v5939_v37 = vadd.f32 %v5938_v27, %v4849_v59  ;;  %v10272_v31 = vpop.f32.mrf.mxu1  ;;  %10415 = vmatmul.mubr.msk.f32.gmra.mxu1 %vm4318_vm1, %v12508_v45  ;;  %v6932_v56 = vsel %vm4318_vm1, %v6779_v48, 0.0  ;;  %v6521_v13 = vadd.f32 %v12647_v22, %v5944_v25 }
 0x380   : > { %10215 = vmatmul.mubr.msk.f32.gmra.mxu0 %vm4318_vm1, %v12504_v3  ;;  %6933 = vadd.xlane.f32.xlu1 %v6932_v56  ;;  %v10072_v52 = vpop.f32.mrf.mxu0 }
 0x381   : > { %v6520_v29 = vadd.f32 %v12647_v22, %v5939_v37  ;;  %6930 = vadd.xlane.f32.xlu0 %v6929_v24  ;;  %v5954_v19 = vadd.f32 %v10272_v31, %v10072_v52  ;;  %10217 = vmatprep.mubr.msk.f32.mxu0 %vm4318_vm1, %v12538_v26  ;;  %v5948_v45 = vpop.f32.mrf.mxu1  ;;  %v6781_v33 = vmul.f32 %v12663_v49, %v6646_v5  ;;  %v6649_v47 = vmax.f32 %v6521_v13, 0.0 }
 0x382   : > { %10417 = vmatprep.mubr.msk.f32.mxu1 %vm4318_vm1, %v12542_v15  ;;  %v4859_v3 = vpop.f32.mrf.mxu0  ;;  %v6935_v26 = vsel %vm4318_vm1, %v6780_v11, 0.0  ;;  %v6782_v15 = vmul.f32 %v12663_v49, %v6647_v23 }
 0x383   : > { %v6648_v21 = vmax.f32 %v6520_v29, 0.0  ;;  %v5949_v57 = vadd.f32 %v5948_v45, %v4859_v3  ;;  %v10275_v35 = vpop.f32.mrf.mxu1  ;;  %10418 = vmatmul.mubr.msk.f32.gmra.mxu1 %vm4318_vm1, %v12530_v42  ;;  %v6938_v55 = vsel %vm4318_vm1, %v6781_v33, 0.0  ;;  %v6523_v2 = vadd.f32 %v12647_v22, %v5954_v19  ;;  %v13901_v3 = vld [vmem:[#allocation17_spill] sm:$0xff] }
 0x384   : > { %10218 = vmatmul.mubr.msk.f32.gmra.mxu0 %vm4318_vm1, %v12526_v60  ;;  %6939 = vadd.xlane.f32.xlu1 %v6938_v55  ;;  %v10075_v62 = vpop.f32.mrf.mxu0  ;;  %v13902_v55 = vld [vmem:[#allocation55_spill] sm:$0xff] }
 0x385   : > { %v6522_v46 = vadd.f32 %v12647_v22, %v5949_v57  ;;  %6936 = vadd.xlane.f32.xlu0 %v6935_v26  ;;  %v5964_v41 = vadd.f32 %v10275_v35, %v10075_v62  ;;  %10220 = vmatprep.mubr.msk.f32.mxu0 %vm4318_vm1, %v12556_v61  ;;  %v5958_v42 = vpop.f32.mrf.mxu1  ;;  %v6783_v63 = vmul.f32 %v12663_v49, %v6648_v21  ;;  %v6651_v51 = vmax.f32 %v6523_v2, 0.0  ;;  %v13903_v62 = vld [vmem:[#allocation58_spill] sm:$0xff] }
 0x386   : > { %10420 = vmatprep.mubr.msk.f32.mxu1 %vm4318_vm1, %v12560_v50  ;;  %v4869_v60 = vpop.f32.mrf.mxu0  ;;  %v6941_v61 = vsel %vm4318_vm1, %v6782_v15, 0.0  ;;  %v6784_v50 = vmul.f32 %v12663_v49, %v6649_v47 }
 0x387   : > { %v6650_v14 = vmax.f32 %v6522_v46, 0.0  ;;  %v5959_v20 = vadd.f32 %v5958_v42, %v4869_v60  ;;  %v10278_v18 = vpop.f32.mrf.mxu1  ;;  %10421 = vmatmul.mubr.msk.f32.gmra.mxu1 %vm4318_vm1, %v12548_v58  ;;  %v6944_v4 = vsel %vm4318_vm1, %v6783_v63, 0.0  ;;  %v6525_v43 = vadd.f32 %v12647_v22, %v5964_v41  ;;  %v13904_v41 = vld [vmem:[#allocation19_spill] sm:$0xff] }
 0x388   : > { %10221 = vmatmul.mubr.msk.f32.gmra.mxu0 %vm4318_vm1, %v12544_v38  ;;  %6945 = vadd.xlane.f32.xlu1 %v6944_v4  ;;  %v10078_v53 = vpop.f32.mrf.mxu0 }
 0x389   : > { %v6524_v6 = vadd.f32 %v12647_v22, %v5959_v20  ;;  %6942 = vadd.xlane.f32.xlu0 %v6941_v61  ;;  %v5974_v10 = vadd.f32 %v10278_v18, %v10078_v53  ;;  %10223 = vmatprep.mubr.msk.f32.mxu0 %vm4318_vm1, %v12578_v36  ;;  %v5968_v58 = vpop.f32.mrf.mxu1  ;;  %v6785_v39 = vmul.f32 %v12663_v49, %v6650_v14  ;;  %v6653_v44 = vmax.f32 %v6525_v43, 0.0  ;;  %v13905_v20 = vld [vmem:[#allocation16_spill] sm:$0xff] }
 0x38a   : > { %10423 = vmatprep.mubr.msk.f32.mxu1 %vm4318_vm1, %v12582_v7  ;;  %v4879_v38 = vpop.f32.mrf.mxu0  ;;  %v6947_v36 = vsel %vm4318_vm1, %v6784_v50, 0.0  ;;  %v6786_v7 = vmul.f32 %v12663_v49, %v6651_v51  ;;  %v13906_v43 = vld [vmem:[#allocation60_spill] sm:$0xff] }
 0x38b   : > { %v6652_v30 = vmax.f32 %v6524_v6, 0.0  ;;  %v5969_v54 = vadd.f32 %v5968_v58, %v4879_v38  ;;  %v10281_v17 = vpop.f32.mrf.mxu1  ;;  %10424 = vmatmul.mubr.msk.f32.gmra.mxu1 %vm4318_vm1, %v12570_v28  ;;  %v6950_v34 = vsel %vm4318_vm1, %v6785_v39, 0.0  ;;  %v6527_v16 = vadd.f32 %v12647_v22, %v5974_v10 }
 0x38c   : > { %10224 = vmatmul.mubr.msk.f32.gmra.mxu0 %vm4318_vm1, %v12566_v32  ;;  %6951 = vadd.xlane.f32.xlu1 %v6950_v34  ;;  %v10081_v25 = vpop.f32.mrf.mxu0 }
 0x38d   : > { %v6526_v27 = vadd.f32 %v12647_v22, %v5969_v54  ;;  %6948 = vadd.xlane.f32.xlu0 %v6947_v36  ;;  %v5984_v48 = vadd.f32 %v10281_v17, %v10081_v25  ;;  %10226 = vmatprep.mubr.msk.f32.mxu0 %vm4318_vm1, %v12596_v0  ;;  %v5978_v28 = vpop.f32.mrf.mxu1  ;;  %v6787_v59 = vmul.f32 %v12663_v49, %v6652_v30  ;;  %v6655_v23 = vmax.f32 %v6527_v16, 0.0 }
 0x38e   : > { %10426 = vmatprep.mubr.msk.f32.mxu1 %vm4318_vm1, %v12600_v40  ;;  %v4889_v32 = vpop.f32.mrf.mxu0  ;;  %v6953_v0 = vsel %vm4318_vm1, %v6786_v7, 0.0  ;;  %v6788_v40 = vmul.f32 %v12663_v49, %v6653_v44 }
 0x38f   : > { %v6654_v5 = vmax.f32 %v6526_v27, 0.0  ;;  %v5979_v37 = vadd.f32 %v5978_v28, %v4889_v32  ;;  %v10284_v31 = vpop.f32.mrf.mxu1  ;;  %10427 = vmatmul.mubr.msk.f32.gmra.mxu1 %vm4318_vm1, %v12588_v1  ;;  %v6956_v56 = vsel %vm4318_vm1, %v6787_v59, 0.0  ;;  %v6529_v13 = vadd.f32 %v12647_v22, %v5984_v48 }
 0x390   : > { %10227 = vmatmul.mubr.msk.f32.gmra.mxu0 %vm4318_vm1, %v12584_v12  ;;  %6957 = vadd.xlane.f32.xlu1 %v6956_v56  ;;  %v10084_v24 = vpop.f32.mrf.mxu0 }
 0x391   : > { %v6528_v52 = vadd.f32 %v12647_v22, %v5979_v37  ;;  %6954 = vadd.xlane.f32.xlu0 %v6953_v0  ;;  %v5994_v11 = vadd.f32 %v10284_v31, %v10084_v24  ;;  %10229 = vmatprep.mubr.msk.f32.mxu0 %vm4318_vm1, %v12618_v9  ;;  %v5988_v1 = vpop.f32.mrf.mxu1  ;;  %v6789_v29 = vmul.f32 %v12663_v49, %v6654_v5  ;;  %v6657_v57 = vmax.f32 %v6529_v13, 0.0 }
 0x392   : > { %10429 = vmatprep.mubr.msk.f32.mxu1 %vm4318_vm1, %v12622_v8  ;;  %v4899_v12 = vpop.f32.mrf.mxu0  ;;  %v6959_v9 = vsel %vm4318_vm1, %v6788_v40, 0.0  ;;  %v6790_v8 = vmul.f32 %v12663_v49, %v6655_v23 }
 0x393   : > { %v6656_v19 = vmax.f32 %v6528_v52, 0.0  ;;  %v5989_v45 = vadd.f32 %v5988_v1, %v4899_v12  ;;  %v10287_v33 = vpop.f32.mrf.mxu1  ;;  %10430 = vmatmul.mubr.msk.f32.gmra.mxu1 %vm4318_vm1, %v13901_v3  ;;  %v6962_v21 = vsel %vm4318_vm1, %v6789_v29, 0.0  ;;  %v6531_v35 = vadd.f32 %v12647_v22, %v5994_v11 }
 0x394   : > { %10230 = vmatmul.mubr.msk.f32.gmra.mxu0 %vm4318_vm1, %v13902_v55  ;;  %6963 = vadd.xlane.f32.xlu1 %v6962_v21  ;;  %v10087_v47 = vpop.f32.mrf.mxu0  ;;  %v6965_v61 = vsel %vm4318_vm1, %v6790_v8, 0.0  ;;  %v6792_v50 = vmul.f32 %v12663_v49, %v6657_v57 }
 0x395   : > { %v6530_v2 = vadd.f32 %v12647_v22, %v5989_v45  ;;  %6960 = vadd.xlane.f32.xlu0 %v6959_v9  ;;  %v6004_v26 = vadd.f32 %v10287_v33, %v10087_v47  ;;  %10232 = vmatprep.mubr.msk.f32.mxu0 %vm4318_vm1, %v13903_v62  ;;  %v5998_v15 = vpop.f32.mrf.mxu1  ;;  %v6791_v46 = vmul.f32 %v12663_v49, %v6656_v19  ;;  %v6659_v4 = vmax.f32 %v6531_v35, 0.0 }
 0x396   : > { %10432 = vmatprep.mubr.msk.f32.mxu1 %vm4318_vm1, %v13904_v41  ;;  %v4909_v42 = vpop.f32.mrf.mxu0  ;;  %v6971_v36 = vsel %vm4318_vm1, %v6792_v50, 0.0 }
 0x397   : > { %v6658_v63 = vmax.f32 %v6530_v2, 0.0  ;;  %v5999_v60 = vadd.f32 %v5998_v15, %v4909_v42  ;;  %v10290_v14 = vpop.f32.mrf.mxu1  ;;  %10433 = vmatmul.mubr.msk.f32.gmra.mxu1 %vm4318_vm1, %v13905_v20  ;;  %v6968_v18 = vsel %vm4318_vm1, %v6791_v46, 0.0  ;;  %v6533_v51 = vadd.f32 %v12647_v22, %v6004_v26 }
 0x398   : > { %10233 = vmatmul.mubr.msk.f32.gmra.mxu0 %vm4318_vm1, %v13906_v43  ;;  %6969 = vadd.xlane.f32.xlu1 %v6968_v18  ;;  %v10090_v53 = vpop.f32.mrf.mxu0  ;;  %v6794_v7 = vmul.f32 %v12663_v49, %v6659_v4 }
 0x399   : > { %v6532_v6 = vadd.f32 %v12647_v22, %v5999_v60  ;;  %6966 = vadd.xlane.f32.xlu0 %v6965_v61  ;;  %v6014_v10 = vadd.f32 %v10290_v14, %v10090_v53  ;;  %v6008_v58 = vpop.f32.mrf.mxu1  ;;  %v6793_v39 = vmul.f32 %v12663_v49, %v6658_v63  ;;  %v6661_v44 = vmax.f32 %v6533_v51, 0.0 }
 0x39a   : > { %v4919_v38 = vpop.f32.mrf.mxu0  ;;  %v6977_v0 = vsel %vm4318_vm1, %v6794_v7, 0.0 }
 0x39b   : > { %v6660_v30 = vmax.f32 %v6532_v6, 0.0  ;;  %v6009_v54 = vadd.f32 %v6008_v58, %v4919_v38  ;;  %v10293_v17 = vpop.f32.mrf.mxu1  ;;  %v6974_v34 = vsel %vm4318_vm1, %v6793_v39, 0.0  ;;  %v6535_v16 = vadd.f32 %v12647_v22, %v6014_v10 }
 0x39c   : > { %6975 = vadd.xlane.f32.xlu1 %v6974_v34  ;;  %v10093_v25 = vpop.f32.mrf.mxu0  ;;  %v6796_v40 = vmul.f32 %v12663_v49, %v6661_v44 }
 0x39d   : > { %v6534_v27 = vadd.f32 %v12647_v22, %v6009_v54  ;;  %6972 = vadd.xlane.f32.xlu0 %v6971_v36  ;;  %v6024_v48 = vadd.f32 %v10293_v17, %v10093_v25  ;;  %v6018_v28 = vpop.f32.mrf.mxu1  ;;  %v6795_v59 = vmul.f32 %v12663_v49, %v6660_v30  ;;  %v6663_v23 = vmax.f32 %v6535_v16, 0.0 }
 0x39e   : > { %v4929_v32 = vpop.f32.mrf.mxu0  ;;  %v6983_v35 = vsel %vm4318_vm1, %v6796_v40, 0.0 }
 0x39f   : > { %v6662_v5 = vmax.f32 %v6534_v27, 0.0  ;;  %v6019_v37 = vadd.f32 %v6018_v28, %v4929_v32  ;;  %v10296_v31 = vpop.f32.mrf.mxu1  ;;  %v6980_v56 = vsel %vm4318_vm1, %v6795_v59, 0.0  ;;  %v6537_v13 = vadd.f32 %v12647_v22, %v6024_v48 }
 0x3a0   : > { %6981 = vadd.xlane.f32.xlu1 %v6980_v56  ;;  %v10096_v24 = vpop.f32.mrf.mxu0  ;;  %v6798_v9 = vmul.f32 %v12663_v49, %v6663_v23 }
 0x3a1   : > { %v6536_v52 = vadd.f32 %v12647_v22, %v6019_v37  ;;  %6978 = vadd.xlane.f32.xlu0 %v6977_v0  ;;  %v6034_v11 = vadd.f32 %v10296_v31, %v10096_v24  ;;  %v6028_v1 = vpop.f32.mrf.mxu1  ;;  %v6797_v29 = vmul.f32 %v12663_v49, %v6662_v5  ;;  %v6665_v21 = vmax.f32 %v6537_v13, 0.0 }
 0x3a2   : > { %v4939_v12 = vpop.f32.mrf.mxu0  ;;  %v6989_v14 = vsel %vm4318_vm1, %v6798_v9, 0.0 }
 0x3a3   : > { %v6664_v19 = vmax.f32 %v6536_v52, 0.0  ;;  %v6029_v45 = vadd.f32 %v6028_v1, %v4939_v12  ;;  %v10299_v33 = vpop.f32.mrf.mxu1  ;;  %v6986_v3 = vsel %vm4318_vm1, %v6797_v29, 0.0  ;;  %v6539_v57 = vadd.f32 %v12647_v22, %v6034_v11 }
 0x3a4   : > { %6987 = vadd.xlane.f32.xlu1 %v6986_v3  ;;  %v10099_v55 = vpop.f32.mrf.mxu0  ;;  %v6800_v18 = vmul.f32 %v12663_v49, %v6665_v21 }
 0x3a5   : > { %v6538_v47 = vadd.f32 %v12647_v22, %v6029_v45  ;;  %6984 = vadd.xlane.f32.xlu0 %v6983_v35  ;;  %v6044_v8 = vadd.f32 %v10299_v33, %v10099_v55  ;;  %v6038_v2 = vpop.f32.mrf.mxu1  ;;  %v6799_v26 = vmul.f32 %v12663_v49, %v6664_v19  ;;  %v6667_v63 = vmax.f32 %v6539_v57, 0.0 }
 0x3a6   : > { %v4949_v62 = vpop.f32.mrf.mxu0  ;;  %v6995_v30 = vsel %vm4318_vm1, %v6800_v18, 0.0 }
 0x3a7   : > { %v6666_v15 = vmax.f32 %v6538_v47, 0.0  ;;  %v6039_v46 = vadd.f32 %v6038_v2, %v4949_v62  ;;  %v10302_v41 = vpop.f32.mrf.mxu1  ;;  %v6992_v42 = vsel %vm4318_vm1, %v6799_v26, 0.0  ;;  %v6541_v60 = vadd.f32 %v12647_v22, %v6044_v8 }
 0x3a8   : > { %6993 = vadd.xlane.f32.xlu1 %v6992_v42  ;;  %v10102_v20 = vpop.f32.mrf.mxu0  ;;  %v6802_v17 = vmul.f32 %v12663_v49, %v6667_v63 }
 0x3a9   : > { %v6540_v4 = vadd.f32 %v12647_v22, %v6039_v46  ;;  %6990 = vadd.xlane.f32.xlu0 %v6989_v14  ;;  %v6054_v51 = vadd.f32 %v10302_v41, %v10102_v20  ;;  %v6048_v43 = vpop.f32.mrf.mxu1  ;;  %v6801_v61 = vmul.f32 %v12663_v49, %v6666_v15  ;;  %v6669_v39 = vmax.f32 %v6541_v60, 0.0 }
 0x3aa   : > { %v4959_v53 = vpop.f32.mrf.mxu0  ;;  %v7001_v5 = vsel %vm4318_vm1, %v6802_v17, 0.0 }
 0x3ab   : > { %v6668_v50 = vmax.f32 %v6540_v4, 0.0  ;;  %v6049_v6 = vadd.f32 %v6048_v43, %v4959_v53  ;;  %v10305_v10 = vpop.f32.mrf.mxu1  ;;  %v6998_v58 = vsel %vm4318_vm1, %v6801_v61, 0.0  ;;  %v6543_v38 = vadd.f32 %v12647_v22, %v6054_v51 }
 0x3ac   : > { %6999 = vadd.xlane.f32.xlu1 %v6998_v58  ;;  %v10105_v54 = vpop.f32.mrf.mxu0  ;;  %v6804_v31 = vmul.f32 %v12663_v49, %v6669_v39 }
 0x3ad   : > { %v6542_v34 = vadd.f32 %v12647_v22, %v6049_v6  ;;  %6996 = vadd.xlane.f32.xlu0 %v6995_v30  ;;  %v6064_v44 = vadd.f32 %v10305_v10, %v10105_v54  ;;  %v6058_v16 = vpop.f32.mrf.mxu1  ;;  %v6803_v36 = vmul.f32 %v12663_v49, %v6668_v50  ;;  %v6671_v59 = vmax.f32 %v6543_v38, 0.0 }
 0x3ae   : > { %v4969_v25 = vpop.f32.mrf.mxu0  ;;  %v7007_v19 = vsel %vm4318_vm1, %v6804_v31, 0.0 }
 0x3af   : > { %v6670_v7 = vmax.f32 %v6542_v34, 0.0  ;;  %v6059_v27 = vadd.f32 %v6058_v16, %v4969_v25  ;;  %v10308_v48 = vpop.f32.mrf.mxu1  ;;  %v7004_v28 = vsel %vm4318_vm1, %v6803_v36, 0.0  ;;  %v6545_v32 = vadd.f32 %v12647_v22, %v6064_v44 }
 0x3b0   : > { %7005 = vadd.xlane.f32.xlu1 %v7004_v28  ;;  %v10108_v37 = vpop.f32.mrf.mxu0  ;;  %v6806_v33 = vmul.f32 %v12663_v49, %v6671_v59 }
 0x3b1   : > { %v6544_v56 = vadd.f32 %v12647_v22, %v6059_v27  ;;  %7002 = vadd.xlane.f32.xlu0 %v7001_v5  ;;  %v6074_v23 = vadd.f32 %v10308_v48, %v10108_v37  ;;  %v6068_v13 = vpop.f32.mrf.mxu1  ;;  %v6805_v0 = vmul.f32 %v12663_v49, %v6670_v7  ;;  %v6673_v29 = vmax.f32 %v6545_v32, 0.0 }
 0x3b2   : > { %v4979_v24 = vpop.f32.mrf.mxu0  ;;  %v7013_v15 = vsel %vm4318_vm1, %v6806_v33, 0.0 }
 0x3b3   : > { %v6672_v40 = vmax.f32 %v6544_v56, 0.0  ;;  %v6069_v52 = vadd.f32 %v6068_v13, %v4979_v24  ;;  %v10311_v11 = vpop.f32.mrf.mxu1  ;;  %v7010_v1 = vsel %vm4318_vm1, %v6805_v0, 0.0  ;;  %v6547_v12 = vadd.f32 %v12647_v22, %v6074_v23 }
 0x3b4   : > { %7011 = vadd.xlane.f32.xlu1 %v7010_v1  ;;  %v10111_v45 = vpop.f32.mrf.mxu0  ;;  %v6808_v41 = vmul.f32 %v12663_v49, %v6673_v29 }
 0x3b5   : > { %v6546_v3 = vadd.f32 %v12647_v22, %v6069_v52  ;;  %7008 = vadd.xlane.f32.xlu0 %v7007_v19  ;;  %v6084_v21 = vadd.f32 %v10311_v11, %v10111_v45  ;;  %v6078_v57 = vpop.f32.mrf.mxu1  ;;  %v6807_v35 = vmul.f32 %v12663_v49, %v6672_v40  ;;  %v6675_v26 = vmax.f32 %v6547_v12, 0.0 }
 0x3b6   : > { %v4989_v55 = vpop.f32.mrf.mxu0  ;;  %v7019_v50 = vsel %vm4318_vm1, %v6808_v41, 0.0 }
 0x3b7   : > { %v6674_v9 = vmax.f32 %v6546_v3, 0.0  ;;  %v6079_v47 = vadd.f32 %v6078_v57, %v4989_v55  ;;  %v10314_v8 = vpop.f32.mrf.mxu1  ;;  %v7016_v2 = vsel %vm4318_vm1, %v6807_v35, 0.0  ;;  %v6549_v62 = vadd.f32 %v12647_v22, %v6084_v21 }
 0x3b8   : > { %7017 = vadd.xlane.f32.xlu1 %v7016_v2  ;;  %v10114_v46 = vpop.f32.mrf.mxu0  ;;  %v6810_v10 = vmul.f32 %v12663_v49, %v6675_v26 }
 0x3b9   : > { %v6548_v42 = vadd.f32 %v12647_v22, %v6079_v47  ;;  %7014 = vadd.xlane.f32.xlu0 %v7013_v15  ;;  %v6094_v63 = vadd.f32 %v10314_v8, %v10114_v46  ;;  %v6088_v60 = vpop.f32.mrf.mxu1  ;;  %v6809_v14 = vmul.f32 %v12663_v49, %v6674_v9  ;;  %v6677_v61 = vmax.f32 %v6549_v62, 0.0 }
 0x3ba   : > { %v4999_v20 = vpop.f32.mrf.mxu0  ;;  %v7025_v7 = vsel %vm4318_vm1, %v6810_v10, 0.0 }
 0x3bb   : > { %v6676_v18 = vmax.f32 %v6548_v42, 0.0  ;;  %v6089_v4 = vadd.f32 %v6088_v60, %v4999_v20  ;;  %v10317_v51 = vpop.f32.mrf.mxu1  ;;  %v7022_v43 = vsel %vm4318_vm1, %v6809_v14, 0.0  ;;  %v6551_v53 = vadd.f32 %v12647_v22, %v6094_v63 }
 0x3bc   : > { %7023 = vadd.xlane.f32.xlu1 %v7022_v43  ;;  %v10117_v6 = vpop.f32.mrf.mxu0  ;;  %v6812_v48 = vmul.f32 %v12663_v49, %v6677_v61 }
 0x3bd   : > { %v6550_v58 = vadd.f32 %v12647_v22, %v6089_v4  ;;  %7020 = vadd.xlane.f32.xlu0 %v7019_v50  ;;  %v6104_v39 = vadd.f32 %v10317_v51, %v10117_v6  ;;  %v6098_v38 = vpop.f32.mrf.mxu1  ;;  %v6811_v30 = vmul.f32 %v12663_v49, %v6676_v18  ;;  %v6679_v36 = vmax.f32 %v6551_v53, 0.0 }
 0x3be   : > { %v5009_v54 = vpop.f32.mrf.mxu0  ;;  %v7031_v40 = vsel %vm4318_vm1, %v6812_v48, 0.0 }
 0x3bf   : > { %v6678_v17 = vmax.f32 %v6550_v58, 0.0  ;;  %v6099_v34 = vadd.f32 %v6098_v38, %v5009_v54  ;;  %v10320_v44 = vpop.f32.mrf.mxu1  ;;  %v7028_v16 = vsel %vm4318_vm1, %v6811_v30, 0.0  ;;  %v6553_v25 = vadd.f32 %v12647_v22, %v6104_v39 }
 0x3c0   : > { %7029 = vadd.xlane.f32.xlu1 %v7028_v16  ;;  %v10120_v27 = vpop.f32.mrf.mxu0  ;;  %v6814_v11 = vmul.f32 %v12663_v49, %v6679_v36 }
 0x3c1   : > { %v6552_v28 = vadd.f32 %v12647_v22, %v6099_v34  ;;  %7026 = vadd.xlane.f32.xlu0 %v7025_v7  ;;  %v6114_v59 = vadd.f32 %v10320_v44, %v10120_v27  ;;  %v6108_v32 = vpop.f32.mrf.mxu1  ;;  %v6813_v5 = vmul.f32 %v12663_v49, %v6678_v17  ;;  %v6681_v0 = vmax.f32 %v6553_v25, 0.0 }
 0x3c2   : > { %v5019_v37 = vpop.f32.mrf.mxu0  ;;  %v7037_v9 = vsel %vm4318_vm1, %v6814_v11, 0.0 }
 0x3c3   : > { %v6680_v31 = vmax.f32 %v6552_v28, 0.0  ;;  %v6109_v56 = vadd.f32 %v6108_v32, %v5019_v37  ;;  %v10323_v23 = vpop.f32.mrf.mxu1  ;;  %v7034_v13 = vsel %vm4318_vm1, %v6813_v5, 0.0  ;;  %v6555_v24 = vadd.f32 %v12647_v22, %v6114_v59  ;;  %v12944_v37 = vld [vmem:[%s13713_s5] ss:$0 sm:$0xff] }
 0x3c4   : > { %7035 = vadd.xlane.f32.xlu1 %v7034_v13  ;;  %v10123_v52 = vpop.f32.mrf.mxu0  ;;  %v6816_v8 = vmul.f32 %v12663_v49, %v6681_v0 }
 0x3c5   : > { %v6554_v1 = vadd.f32 %v12647_v22, %v6109_v56  ;;  %7032 = vadd.xlane.f32.xlu0 %v7031_v40  ;;  %v6124_v29 = vadd.f32 %v10323_v23, %v10123_v52  ;;  %v6118_v12 = vpop.f32.mrf.mxu1  ;;  %v6815_v19 = vmul.f32 %v12663_v49, %v6680_v31  ;;  %v6683_v35 = vmax.f32 %v6555_v24, 0.0  ;;  %v12953_v40 = vld [vmem:[%s13714_s6] ss:$0 sm:$0xff] }
 0x3c6   : > { %v5029_v45 = vpop.f32.mrf.mxu0  ;;  %v7043_v18 = vsel %vm4318_vm1, %v6816_v8, 0.0 }
 0x3c7   : > { %v6682_v33 = vmax.f32 %v6554_v1, 0.0  ;;  %v6119_v3 = vadd.f32 %v6118_v12, %v5029_v45  ;;  %v10326_v21 = vpop.f32.mrf.mxu1  ;;  %v7040_v57 = vsel %vm4318_vm1, %v6815_v19, 0.0  ;;  %v6557_v55 = vadd.f32 %v12647_v22, %v6124_v29 }
 0x3c8   : > { %7041 = vadd.xlane.f32.xlu1 %v7040_v57  ;;  %v10126_v47 = vpop.f32.mrf.mxu0  ;;  %v6818_v51 = vmul.f32 %v12663_v49, %v6683_v35 }
 0x3c9   : > { %v6556_v2 = vadd.f32 %v12647_v22, %v6119_v3  ;;  %7038 = vadd.xlane.f32.xlu0 %v7037_v9  ;;  %v6134_v26 = vadd.f32 %v10326_v21, %v10126_v47  ;;  %v6128_v62 = vpop.f32.mrf.mxu1  ;;  %v6817_v15 = vmul.f32 %v12663_v49, %v6682_v33  ;;  %v6685_v14 = vmax.f32 %v6557_v55, 0.0 }
 0x3ca   : > { %v5039_v46 = vpop.f32.mrf.mxu0  ;;  %v7049_v17 = vsel %vm4318_vm1, %v6818_v51, 0.0  ;;  %v13907_v51 = vlaneseq }
 0x3cb   : > { %v6684_v41 = vmax.f32 %v6556_v2, 0.0  ;;  %v6129_v42 = vadd.f32 %v6128_v62, %v5039_v46  ;;  %v10329_v63 = vpop.f32.mrf.mxu1  ;;  %v7046_v60 = vsel %vm4318_vm1, %v6817_v15, 0.0  ;;  %v6559_v20 = vadd.f32 %v12647_v22, %v6134_v26 }
 0x3cc   : > { %7047 = vadd.xlane.f32.xlu1 %v7046_v60  ;;  %v10129_v4 = vpop.f32.mrf.mxu0  ;;  %v6820_v44 = vmul.f32 %v12663_v49, %v6685_v14 }
 0x3cd   : > { %v6558_v43 = vadd.f32 %v12647_v22, %v6129_v42  ;;  %7044 = vadd.xlane.f32.xlu0 %v7043_v18  ;;  %v6144_v61 = vadd.f32 %v10329_v63, %v10129_v4  ;;  %v6138_v53 = vpop.f32.mrf.mxu1  ;;  %v6819_v50 = vmul.f32 %v12663_v49, %v6684_v41  ;;  %v6687_v30 = vmax.f32 %v6559_v20, 0.0 }
 0x3ce   : > { %v5049_v6 = vpop.f32.mrf.mxu0 }
 0x3cf   : > { %v6686_v10 = vmax.f32 %v6558_v43, 0.0  ;;  %v6139_v58 = vadd.f32 %v6138_v53, %v5049_v6  ;;  %v10332_v39 = vpop.f32.mrf.mxu1  ;;  %v7052_v38 = vsel %vm4318_vm1, %v6819_v50, 0.0  ;;  %v6561_v54 = vadd.f32 %v12647_v22, %v6144_v61 }
 0x3d0   : > { %7053 = vadd.xlane.f32.xlu1 %v7052_v38  ;;  %v10132_v34 = vpop.f32.mrf.mxu0  ;;  %v6822_v23 = vmul.f32 %v12663_v49, %v6687_v30  ;;  %v12971_v43 = vshrl.u32 %v13907_v51, 7 }
 0x3d1   : > { %v6560_v16 = vadd.f32 %v12647_v22, %v6139_v58  ;;  %7050 = vadd.xlane.f32.xlu0 %v7049_v17  ;;  %v6154_v36 = vadd.f32 %v10332_v39, %v10132_v34  ;;  %v6148_v25 = vpop.f32.mrf.mxu1  ;;  %v6821_v7 = vmul.f32 %v12663_v49, %v6686_v10  ;;  %v6689_v5 = vmax.f32 %v6561_v54, 0.0  ;;  %v13908_v10 = vld [vmem:[#allocation6_spill] sm:$0xff] }
 0x3d2   : > { %v5059_v27 = vpop.f32.mrf.mxu0  ;;  %v7055_v22 = vsel %vm4318_vm1, %v6820_v44, 0.0  ;;  %v7061_v33 = vsel %vm4318_vm1, %v6822_v23, 0.0  ;;  %v7541_v58 = vadd.s32 4294967288, %v13908_v10 }
 0x3d3   : > { %v6688_v48 = vmax.f32 %v6560_v16, 0.0  ;;  %v6149_v28 = vadd.f32 %v6148_v25, %v5059_v27  ;;  %v10335_v59 = vpop.f32.mrf.mxu1  ;;  %v7058_v32 = vsel %vm4318_vm1, %v6821_v7, 0.0  ;;  %v6563_v31 = vadd.f32 %v12944_v37, %v6154_v36 }
 0x3d4   : > { %7059 = vadd.xlane.f32.xlu1 %v7058_v32  ;;  %v10135_v56 = vpop.f32.mrf.mxu0  ;;  %v6824_v21 = vmul.f32 %v12953_v40, %v6689_v5  ;;  %v12981_v7 = vstv %s12962_s28  ;;  %v7555_v27 = vadd.s32 4294967272, %v13908_v10  ;;  %s10546_s28 = smov [#allocation3]  }
 0x3d5   : > { %v6562_v13 = vadd.f32 %v12944_v37, %v6149_v28  ;;  %7056 = vadd.xlane.f32.xlu0 %v7055_v22  ;;  %v6164_v0 = vadd.f32 %v10335_v59, %v10135_v56  ;;  %v6158_v24 = vpop.f32.mrf.mxu1  ;;  %v6823_v52 = vmul.f32 %v12953_v40, %v6688_v48  ;;  %v6691_v45 = vmax.f32 %v6563_v31, 0.0  ;;  %s10486_s11 = sshll.u32 %s10546_s28, 4  ;;  %s10487_s11 = int_to_ptr.vmem [resolvable:$false] %s10486_s11 }
 0x3d6   : > { %v5069_v11 = vpop.f32.mrf.mxu0  ;;  %v7067_v41 = vsel %vm4318_vm1, %v6824_v21, 0.0  ;;  %v7548_v48 = vadd.s32 4294967280, %v13908_v10  ;;  %v7562_v28 = vadd.s32 4294967264, %v13908_v10  ;;  %v12988_v22 = vsub.s32 %v7541_v58, %v12971_v43  ;;  %s10488_s23 = scalar_lea.vmem %s10487_s11, 256  ;;  %p10489_p0 = scmp.lt.s32.totalorder %s8230_s20, %s10487_s11 }
 0x3d7   : > { %v6690_v1 = vmax.f32 %v6562_v13, 0.0  ;;  %v6159_v29 = vadd.f32 %v6158_v24, %v5069_v11  ;;  %v10338_v12 = vpop.f32.mrf.mxu1  ;;  %v7064_v19 = vsel %vm4318_vm1, %v6823_v52, 0.0  ;;  %v6565_v49 = vadd.f32 %v12944_v37, %v6164_v0  ;;  %p10490_p1 = scmp.lt.s32.totalorder %s10488_s23, %s10482_s27 }
 0x3d8   : > { %7065 = vadd.xlane.f32.xlu1 %v7064_v19  ;;  %v10138_v3 = vpop.f32.mrf.mxu0  ;;  %v6826_v63 = vmul.f32 %v12953_v40, %v6691_v45  ;;  %v13000_v45 = vsub.s32 %v7555_v27, %v12971_v43 }
 0x3d9   : > { %v6564_v57 = vadd.f32 %v12944_v37, %v6159_v29  ;;  %7062 = vadd.xlane.f32.xlu0 %v7061_v33  ;;  %v6174_v35 = vadd.f32 %v10338_v12, %v10138_v3  ;;  %v6168_v55 = vpop.f32.mrf.mxu1  ;;  %v6825_v9 = vmul.f32 %v12953_v40, %v6690_v1  ;;  %v6693_v15 = vmax.f32 %v6565_v49, 0.0  ;;  %p10491_p2 = por %p10490_p1, %p10489_p0 }
 0x3da   : > { %v5079_v47 = vpop.f32.mrf.mxu0  ;;  %v7073_v30 = vsel %vm4318_vm1, %v6826_v63, 0.0  ;;  %v12997_v12 = vsub.s32 %v13908_v10, %v12971_v43  ;;  %v13003_v49 = vsub.s32 %v7548_v48, %v12971_v43  ;;  %v13006_v33 = vsub.s32 %v7562_v28, %v12971_v43 }
 0x3db   : > { %v6692_v8 = vmax.f32 %v6564_v57, 0.0  ;;  %v6169_v2 = vadd.f32 %v6168_v55, %v5079_v47  ;;  %v10341_v26 = vpop.f32.mrf.mxu1  ;;  %v7070_v62 = vsel %vm4318_vm1, %v6825_v9, 0.0  ;;  %v6567_v46 = vadd.f32 %v12944_v37, %v6174_v35  ;;  %p10492_p3 = pnand %p10491_p2, %p10485_p13 }
 0x3dc   : > { %7071 = vadd.xlane.f32.xlu1 %v7070_v62  ;;  %v10141_v42 = vpop.f32.mrf.mxu0  ;;  %v6828_v17 = vmul.f32 %v12953_v40, %v6693_v15  ;;  %v7569_v3 = vadd.s32 4294967256, %v13908_v10  ;;  %v7576_v9 = vadd.s32 4294967248, %v13908_v10  ;;  %v7583_v63 = vadd.s32 4294967240, %v13908_v10 }
 0x3dd   : > { %v6566_v60 = vadd.f32 %v12944_v37, %v6169_v2  ;;  %7068 = vadd.xlane.f32.xlu0 %v7067_v41  ;;  %v6184_v14 = vadd.f32 %v10341_v26, %v10141_v42  ;;  %v6178_v20 = vpop.f32.mrf.mxu1  ;;  %v6827_v18 = vmul.f32 %v12953_v40, %v6692_v8  ;;  %v6695_v39 = vmax.f32 %v6567_v46, 0.0 }
 0x3de   : > { %v5089_v4 = vpop.f32.mrf.mxu0  ;;  %v7079_v13 = vsel %vm4318_vm1, %v6828_v17, 0.0 }
 0x3df   : > { %v6694_v61 = vmax.f32 %v6566_v60, 0.0  ;;  %v6179_v53 = vadd.f32 %v6178_v20, %v5089_v4  ;;  %v10344_v50 = vpop.f32.mrf.mxu1  ;;  %v7076_v6 = vsel %vm4318_vm1, %v6827_v18, 0.0  ;;  %v6569_v38 = vadd.f32 %v12944_v37, %v6184_v14 }
 0x3e0   : > { %7077 = vadd.xlane.f32.xlu1 %v7076_v6  ;;  %v10144_v54 = vpop.f32.mrf.mxu0  ;;  %v6830_v24 = vmul.f32 %v12953_v40, %v6695_v39  ;;  %v13018_v14 = vsub.s32 %v7569_v3, %v12971_v43  ;;  %v7590_v20 = vadd.s32 4294967232, %v13908_v10  ;;  %v7597_v18 = vadd.s32 4294967224, %v13908_v10 }
 0x3e1   : > { %v6568_v34 = vadd.f32 %v12944_v37, %v6179_v53  ;;  %7074 = vadd.xlane.f32.xlu0 %v7073_v30  ;;  %v6194_v44 = vadd.f32 %v10344_v50, %v10144_v54  ;;  %v6188_v16 = vpop.f32.mrf.mxu1  ;;  %v6829_v36 = vmul.f32 %v12953_v40, %v6694_v61  ;;  %v6697_v56 = vmax.f32 %v6569_v38, 0.0 }
 0x3e2   : > { %v5099_v25 = vpop.f32.mrf.mxu0  ;;  %v7085_v2 = vsel %vm4318_vm1, %v6830_v24, 0.0  ;;  %v7604_v4 = vadd.s32 4294967216, %v13908_v10  ;;  %v13025_v6 = vsub.s32 %v7576_v9, %v12971_v43  ;;  %v13036_v27 = vsub.s32 %v7590_v20, %v12971_v43 }
 0x3e3   : > { %v6696_v59 = vmax.f32 %v6568_v34, 0.0  ;;  %v6189_v32 = vadd.f32 %v6188_v16, %v5099_v25  ;;  %v10347_v5 = vpop.f32.mrf.mxu1  ;;  %v7082_v31 = vsel %vm4318_vm1, %v6829_v36, 0.0  ;;  %v6571_v23 = vadd.f32 %v12944_v37, %v6194_v44 }
 0x3e4   : > { %7083 = vadd.xlane.f32.xlu1 %v7082_v31  ;;  %v10147_v0 = vpop.f32.mrf.mxu0  ;;  %v6832_v62 = vmul.f32 %v12953_v40, %v6697_v56  ;;  %v13033_v36 = vsub.s32 %v7583_v63, %v12971_v43  ;;  %v13039_v48 = vsub.s32 %v7597_v18, %v12971_v43  ;;  %v13042_v28 = vsub.s32 %v7604_v4, %v12971_v43 }
 0x3e5   : > { %v6570_v52 = vadd.f32 %v12944_v37, %v6189_v32  ;;  %7080 = vadd.xlane.f32.xlu0 %v7079_v13  ;;  %v6204_v11 = vadd.f32 %v10347_v5, %v10147_v0  ;;  %v6198_v1 = vpop.f32.mrf.mxu1  ;;  %v6831_v29 = vmul.f32 %v12953_v40, %v6696_v59  ;;  %v6699_v47 = vmax.f32 %v6571_v23, 0.0 }
 0x3e6   : > { %v5109_v19 = vpop.f32.mrf.mxu0  ;;  %v7091_v38 = vsel %vm4318_vm1, %v6832_v62, 0.0  ;;  %v7611_v59 = vadd.s32 4294967208, %v13908_v10 }
 0x3e7   : > { %v6698_v21 = vmax.f32 %v6570_v52, 0.0  ;;  %v6199_v57 = vadd.f32 %v6198_v1, %v5109_v19  ;;  %v10350_v35 = vpop.f32.mrf.mxu1  ;;  %v7088_v55 = vsel %vm4318_vm1, %v6831_v29, 0.0  ;;  %v6573_v8 = vadd.f32 %v12944_v37, %v6204_v11 }
 0x3e8   : > { %7089 = vadd.xlane.f32.xlu1 %v7088_v55  ;;  %v10150_v26 = vpop.f32.mrf.mxu0  ;;  %v6834_v54 = vmul.f32 %v12953_v40, %v6699_v47  ;;  %v7618_v1 = vadd.s32 4294967200, %v13908_v10 }
 0x3e9   : > { %v6572_v15 = vadd.f32 %v12944_v37, %v6199_v57  ;;  %7086 = vadd.xlane.f32.xlu0 %v7085_v2  ;;  %v6214_v46 = vadd.f32 %v10350_v35, %v10150_v26  ;;  %v6208_v41 = vpop.f32.mrf.mxu1  ;;  %v6833_v42 = vmul.f32 %v12953_v40, %v6698_v21  ;;  %v6701_v58 = vmax.f32 %v6573_v8, 0.0 }
 0x3ea   : > { %v5119_v60 = vpop.f32.mrf.mxu0  ;;  %v7097_v24 = vsel %vm4318_vm1, %v6834_v54, 0.0  ;;  %v7625_v57 = vadd.s32 4294967192, %v13908_v10  ;;  %v13055_v8 = vsub.s32 %v7611_v59, %v12971_v43  ;;  %v7632_v2 = vadd.s32 4294967184, %v13908_v10 }
 0x3eb   : > { %v6700_v51 = vmax.f32 %v6572_v15, 0.0  ;;  %v6209_v61 = vadd.f32 %v6208_v41, %v5119_v60  ;;  %v10353_v53 = vpop.f32.mrf.mxu1  ;;  %v7094_v50 = vsel %vm4318_vm1, %v6833_v42, 0.0  ;;  %v6575_v39 = vadd.f32 %v12944_v37, %v6214_v46 }
 0x3ec   : > { %7095 = vadd.xlane.f32.xlu1 %v7094_v50  ;;  %v10153_v30 = vpop.f32.mrf.mxu0  ;;  %v6836_v11 = vmul.f32 %v12953_v40, %v6701_v58  ;;  %v13064_v18 = vsub.s32 %v7618_v1, %v12971_v43  ;;  %v13068_v50 = vsub.s32 %v7625_v57, %v12971_v43  ;;  %v13079_v59 = vadd.s32 4294967176, %v13908_v10 }
 0x3ed   : > { %v6574_v17 = vadd.f32 %v12944_v37, %v6209_v61  ;;  %7092 = vadd.xlane.f32.xlu0 %v7091_v38  ;;  %v6224_v34 = vadd.f32 %v10353_v53, %v10153_v30  ;;  %v6218_v44 = vpop.f32.mrf.mxu1  ;;  %v6835_v16 = vmul.f32 %v12953_v40, %v6700_v51  ;;  %v6703_v0 = vmax.f32 %v6575_v39, 0.0 }
 0x3ee   : > { %v5129_v25 = vpop.f32.mrf.mxu0  ;;  %v7103_v42 = vsel %vm4318_vm1, %v6836_v11, 0.0 }
 0x3ef   : > { %v6702_v32 = vmax.f32 %v6574_v17, 0.0  ;;  %v6577_v5 = vadd.f32 %v12944_v37, %v6224_v34  ;;  %v6219_v31 = vadd.f32 %v6218_v44, %v5129_v25  ;;  %v6901_v56 = vpop.xlane.xlu1 %6900  ;;  %v10356_v23 = vpop.f32.mrf.mxu1  ;;  %v7100_v13 = vsel %vm4318_vm1, %v6835_v16, 0.0 }
 0x3f0   : > { %7101 = vadd.xlane.f32.xlu1 %v7100_v13  ;;  %v10156_v52 = vpop.f32.mrf.mxu0  ;;  %v7282_v55 = vadd.f32 %v12981_v7, %v6901_v56  ;;  %v6838_v20 = vmul.f32 %v12953_v40, %v6703_v0  ;;  %v13074_v17 = vsub.s32 %v7632_v2, %v12971_v43 }
 0x3f1   : > { %v6576_v29 = vadd.f32 %v12944_v37, %v6219_v31  ;;  %7098 = vadd.xlane.f32.xlu0 %v7097_v24  ;;  %v6234_v19 = vadd.f32 %v10356_v23, %v10156_v52  ;;  %v6228_v3 = vpop.f32.mrf.mxu1  ;;  %v6837_v21 = vmul.f32 %v12953_v40, %v6702_v32  ;;  %v6705_v35 = vmax.f32 %v6577_v5, 0.0 }
 0x3f2   : > { %v6898_v9 = vpop.xlane.xlu0 %6897  ;;  %v5139_v47 = vpop.f32.mrf.mxu0  ;;  %v7545_v34 = vrot.slane %v7282_v55, %v12988_v22  ;;  %v7109_v31 = vsel %vm4318_vm1, %v6838_v20, 0.0 }
 0x3f3   : > { %v6704_v26 = vmax.f32 %v6576_v29, 0.0  ;;  %v6579_v62 = vadd.f32 %v12944_v37, %v6234_v19  ;;  %v7281_v15 = vadd.f32 %v12981_v7, %v6898_v9  ;;  %v6229_v46 = vadd.f32 %v6228_v3, %v5139_v47  ;;  %v10359_v41 = vpop.f32.mrf.mxu1 }
 0x3f4   : > { %v7106_v63 = vsel %vm4318_vm1, %v6837_v21, 0.0  ;;  %v10159_v60 = vpop.f32.mrf.mxu0  ;;  %v6840_v54 = vmul.f32 %v12953_v40, %v6705_v35 }
 0x3f5   : > { %v6707_v4 = vmax.f32 %v6579_v62, 0.0  ;;  %v6578_v51 = vadd.f32 %v12944_v37, %v6229_v46  ;;  %7104 = vadd.xlane.f32.xlu0 %v7103_v42  ;;  %7107 = vadd.xlane.f32.xlu1 %v7106_v63  ;;  %v6244_v61 = vadd.f32 %v10359_v41, %v10159_v60  ;;  %v6238_v53 = vpop.f32.mrf.mxu1  ;;  %v7540_v58 = vrot.slane %v7281_v15, %v12997_v12 }
 0x3f6   : > { %v6907_v39 = vpop.xlane.xlu0 %6906  ;;  %v5149_v38 = vpop.f32.mrf.mxu0  ;;  %v6839_v30 = vmul.f32 %v12953_v40, %v6704_v26  ;;  %v7115_v57 = vsel %vm4318_vm1, %v6840_v54, 0.0 }
 0x3f7   : > { %v6706_v44 = vmax.f32 %v6578_v51, 0.0  ;;  %v6581_v16 = vadd.f32 %v12944_v37, %v6244_v61  ;;  %v10362_v25 = vpop.f32.mrf.mxu1  ;;  %v7284_v32 = vadd.f32 %v12981_v7, %v6907_v39  ;;  %v6239_v5 = vadd.f32 %v6238_v53, %v5149_v38 }
 0x3f8   : > { %v7112_v56 = vsel %vm4318_vm1, %v6839_v30, 0.0  ;;  %v10162_v23 = vpop.f32.mrf.mxu0  ;;  %v6842_v10 = vmul.f32 %v12953_v40, %v6707_v4  ;;  %v7547_v1 = vsel %vm7546_vm0, %v7545_v34, %v7540_v58 }
 0x3f9   : > { %v6709_v13 = vmax.f32 %v6581_v16, 0.0  ;;  %7110 = vadd.xlane.f32.xlu0 %v7109_v31  ;;  %7113 = vadd.xlane.f32.xlu1 %v7112_v56  ;;  %v6254_v0 = vadd.f32 %v10362_v25, %v10162_v23  ;;  %v6910_v24 = vpop.xlane.xlu1 %6909  ;;  %v6248_v52 = vpop.f32.mrf.mxu1  ;;  %v6841_v11 = vmul.f32 %v12953_v40, %v6706_v44  ;;  %v6580_v29 = vadd.f32 %v12944_v37, %v6239_v5 }
 0x3fa   : > { %v6904_v19 = vpop.xlane.xlu0 %6903  ;;  %v7285_v3 = vadd.f32 %v12981_v7, %v6910_v24  ;;  %v5159_v21 = vpop.f32.mrf.mxu0  ;;  %v7559_v26 = vrot.slane %v7284_v32, %v13000_v45  ;;  %v7121_v51 = vsel %vm4318_vm1, %v6842_v10, 0.0 }
 0x3fb   : > { %v6583_v35 = vadd.f32 %v12944_v37, %v6254_v0  ;;  %v7283_v55 = vadd.f32 %v12981_v7, %v6904_v19  ;;  %v6249_v9 = vadd.f32 %v6248_v52, %v5159_v21  ;;  %v10365_v47 = vpop.f32.mrf.mxu1  ;;  %v7118_v2 = vsel %vm4318_vm1, %v6841_v11, 0.0 }
 0x3fc   : > { %v6708_v62 = vmax.f32 %v6580_v29, 0.0  ;;  %v7566_v15 = vrot.slane %v7285_v3, %v13006_v33  ;;  %v10165_v46 = vpop.f32.mrf.mxu0  ;;  %v6844_v41 = vmul.f32 %v12953_v40, %v6709_v13 }
 0x3fd   : > { %v7552_v42 = vrot.slane %v7283_v55, %v13003_v49  ;;  %v6582_v63 = vadd.f32 %v12944_v37, %v6249_v9  ;;  %7116 = vadd.xlane.f32.xlu0 %v7115_v57  ;;  %7119 = vadd.xlane.f32.xlu1 %v7118_v2  ;;  %v6264_v60 = vadd.f32 %v10365_v47, %v10165_v46  ;;  %v6916_v20 = vpop.xlane.xlu1 %6915  ;;  %v6258_v4 = vpop.f32.mrf.mxu1  ;;  %v6711_v61 = vmax.f32 %v6583_v35, 0.0 }
 0x3fe   : > { %v6913_v53 = vpop.xlane.xlu0 %6912  ;;  %v7287_v58 = vadd.f32 %v12981_v7, %v6916_v20  ;;  %v5169_v39 = vpop.f32.mrf.mxu0  ;;  %v6843_v38 = vmul.f32 %v12953_v40, %v6708_v62  ;;  %v7127_v30 = vsel %vm4318_vm1, %v6844_v41, 0.0 }
 0x3ff   : > { %v7554_v54 = vsel %vm7553_vm3, %v7552_v42, %v7547_v1  ;;  %v6710_v34 = vmax.f32 %v6582_v63, 0.0  ;;  %v6585_v44 = vadd.f32 %v12944_v37, %v6264_v60  ;;  %v7286_v16 = vadd.f32 %v12981_v7, %v6913_v53  ;;  %v10368_v25 = vpop.f32.mrf.mxu1 }
 0x400   : > { %v7561_v32 = vsel %vm7560_vm4, %v7559_v26, %v7554_v54  ;;  %v7580_v5 = vrot.slane %v7287_v58, %v13025_v6  ;;  %v6259_v31 = vadd.f32 %v6258_v4, %v5169_v39  ;;  %v7124_v56 = vsel %vm4318_vm1, %v6843_v38, 0.0  ;;  %v10168_v23 = vpop.f32.mrf.mxu0 }
 0x401   : > { %v7568_v13 = vsel %vm7567_vm5, %v7566_v15, %v7561_v32  ;;  %v6713_v0 = vmax.f32 %v6585_v44, 0.0  ;;  %v7573_v24 = vrot.slane %v7286_v16, %v13018_v14  ;;  %7122 = vadd.xlane.f32.xlu0 %v7121_v51  ;;  %7125 = vadd.xlane.f32.xlu1 %v7124_v56  ;;  %v6274_v52 = vadd.f32 %v10368_v25, %v10168_v23  ;;  %v6922_v11 = vpop.xlane.xlu1 %6921  ;;  %v6268_v10 = vpop.f32.mrf.mxu1 }
 0x402   : > { %v6584_v1 = vadd.f32 %v12944_v37, %v6259_v31  ;;  %v6919_v29 = vpop.xlane.xlu0 %6918  ;;  %v7289_v19 = vadd.f32 %v12981_v7, %v6922_v11  ;;  %v5179_v3 = vpop.f32.mrf.mxu0  ;;  %v6845_v21 = vmul.f32 %v12953_v40, %v6710_v34  ;;  %v6846_v57 = vmul.f32 %v12953_v40, %v6711_v61 }
 0x403   : > { %v7575_v35 = vsel %vm7574_vm6, %v7573_v24, %v7568_v13  ;;  %v6587_v55 = vadd.f32 %v12944_v37, %v6274_v52  ;;  %v7288_v9 = vadd.f32 %v12981_v7, %v6919_v29  ;;  %v6269_v47 = vadd.f32 %v6268_v10, %v5179_v3  ;;  %v10371_v2 = vpop.f32.mrf.mxu1 }
 0x404   : > { %v7582_v26 = vsel %vm7581_vm7, %v7580_v5, %v7575_v35  ;;  %v6712_v62 = vmax.f32 %v6584_v1, 0.0  ;;  %v7594_v15 = vrot.slane %v7289_v19, %v13036_v27  ;;  %v7130_v46 = vsel %vm4318_vm1, %v6845_v21, 0.0  ;;  %v10171_v41 = vpop.f32.mrf.mxu0 }
 0x405   : > { %v6715_v42 = vmax.f32 %v6587_v55, 0.0  ;;  %v7587_v63 = vrot.slane %v7288_v9, %v13033_v36  ;;  %v6586_v60 = vadd.f32 %v12944_v37, %v6269_v47  ;;  %7128 = vadd.xlane.f32.xlu0 %v7127_v30  ;;  %7131 = vadd.xlane.f32.xlu1 %v7130_v46  ;;  %v6284_v20 = vadd.f32 %v10371_v2, %v10171_v41  ;;  %v6928_v4 = vpop.xlane.xlu1 %6927  ;;  %v6278_v51 = vpop.f32.mrf.mxu1 }
 0x406   : > { %v6925_v61 = vpop.xlane.xlu0 %6924  ;;  %v7291_v53 = vadd.f32 %v12981_v7, %v6928_v4  ;;  %v5189_v58 = vpop.f32.mrf.mxu0  ;;  %v7133_v39 = vsel %vm4318_vm1, %v6846_v57, 0.0  ;;  %v6847_v38 = vmul.f32 %v12953_v40, %v6712_v62  ;;  %v6848_v54 = vmul.f32 %v12953_v40, %v6713_v0 }
 0x407   : > { %v7589_v34 = vsel %vm7588_vm8, %v7587_v63, %v7582_v26  ;;  %v6714_v44 = vmax.f32 %v6586_v60, 0.0  ;;  %v6589_v30 = vadd.f32 %v12944_v37, %v6284_v20  ;;  %v7290_v16 = vadd.f32 %v12981_v7, %v6925_v61  ;;  %v10374_v25 = vpop.f32.mrf.mxu1 }
 0x408   : > { %v7596_v32 = vsel %vm7595_vm9, %v7594_v15, %v7589_v34  ;;  %v7608_v5 = vrot.slane %v7291_v53, %v13042_v28  ;;  %v6279_v31 = vadd.f32 %v6278_v51, %v5189_v58  ;;  %v7136_v56 = vsel %vm4318_vm1, %v6847_v38, 0.0  ;;  %v10174_v23 = vpop.f32.mrf.mxu0 }
 0x409   : > { %v6717_v13 = vmax.f32 %v6589_v30, 0.0  ;;  %v7601_v0 = vrot.slane %v7290_v16, %v13039_v48  ;;  %7134 = vadd.xlane.f32.xlu0 %v7133_v39  ;;  %7137 = vadd.xlane.f32.xlu1 %v7136_v56  ;;  %v6294_v24 = vadd.f32 %v10374_v25, %v10174_v23  ;;  %v6934_v52 = vpop.xlane.xlu1 %6933  ;;  %v6288_v11 = vpop.f32.mrf.mxu1  ;;  %v7139_v10 = vsel %vm4318_vm1, %v6848_v54, 0.0 }
 0x40a   : > { %v6588_v1 = vadd.f32 %v12944_v37, %v6279_v31  ;;  %v6931_v29 = vpop.xlane.xlu0 %6930  ;;  %v7293_v19 = vadd.f32 %v12981_v7, %v6934_v52  ;;  %v5199_v3 = vpop.f32.mrf.mxu0  ;;  %v6849_v21 = vmul.f32 %v12953_v40, %v6714_v44  ;;  %v6850_v57 = vmul.f32 %v12953_v40, %v6715_v42 }
 0x40b   : > { %v7603_v35 = vsel %vm13721_vm10, %v7601_v0, %v7596_v32  ;;  %v6591_v55 = vadd.f32 %v12944_v37, %v6294_v24  ;;  %v7292_v9 = vadd.f32 %v12981_v7, %v6931_v29  ;;  %v6289_v47 = vadd.f32 %v6288_v11, %v5199_v3  ;;  %v10377_v2 = vpop.f32.mrf.mxu1 }
 0x40c   : > { %v7610_v26 = vsel %vm13720_vm11, %v7608_v5, %v7603_v35  ;;  %v6716_v62 = vmax.f32 %v6588_v1, 0.0  ;;  %v7622_v15 = vrot.slane %v7293_v19, %v13064_v18  ;;  %v7142_v46 = vsel %vm4318_vm1, %v6849_v21, 0.0  ;;  %v10177_v41 = vpop.f32.mrf.mxu0 }
 0x40d   : > { %v6719_v63 = vmax.f32 %v6591_v55, 0.0  ;;  %v7615_v42 = vrot.slane %v7292_v9, %v13055_v8  ;;  %v6590_v60 = vadd.f32 %v12944_v37, %v6289_v47  ;;  %7140 = vadd.xlane.f32.xlu0 %v7139_v10  ;;  %7143 = vadd.xlane.f32.xlu1 %v7142_v46  ;;  %v6304_v20 = vadd.f32 %v10377_v2, %v10177_v41  ;;  %v6940_v4 = vpop.xlane.xlu1 %6939  ;;  %v6298_v51 = vpop.f32.mrf.mxu1 }
 0x40e   : > { %v6937_v61 = vpop.xlane.xlu0 %6936  ;;  %v7295_v53 = vadd.f32 %v12981_v7, %v6940_v4  ;;  %v5209_v58 = vpop.f32.mrf.mxu0  ;;  %v7145_v39 = vsel %vm4318_vm1, %v6850_v57, 0.0  ;;  %v6852_v38 = vmul.f32 %v12953_v40, %v6717_v13  ;;  %v6851_v54 = vmul.f32 %v12953_v40, %v6716_v62 }
 0x40f   : > { %v7617_v34 = vsel %vm7616_vm12, %v7615_v42, %v7610_v26  ;;  %v6718_v44 = vmax.f32 %v6590_v60, 0.0  ;;  %v6593_v30 = vadd.f32 %v12944_v37, %v6304_v20  ;;  %v7294_v16 = vadd.f32 %v12981_v7, %v6937_v61  ;;  %v10380_v25 = vpop.f32.mrf.mxu1 }
 0x410   : > { %v7624_v32 = vsel %vm7623_vm13, %v7622_v15, %v7617_v34  ;;  %v7636_v5 = vrot.slane %v7295_v53, %v13074_v17  ;;  %v6299_v31 = vadd.f32 %v6298_v51, %v5209_v58  ;;  %v7151_v56 = vsel %vm4318_vm1, %v6852_v38, 0.0  ;;  %v10180_v23 = vpop.f32.mrf.mxu0 }
 0x411   : > { %v6721_v0 = vmax.f32 %v6593_v30, 0.0  ;;  %v7629_v13 = vrot.slane %v7294_v16, %v13068_v50  ;;  %7146 = vadd.xlane.f32.xlu0 %v7145_v39  ;;  %7152 = vadd.xlane.f32.xlu1 %v7151_v56  ;;  %v6314_v24 = vadd.f32 %v10380_v25, %v10180_v23  ;;  %v13159_v52 = vsub.s32 %v13079_v59, %v12971_v43  ;;  %v6946_v11 = vpop.xlane.xlu1 %6945  ;;  %v6308_v10 = vpop.f32.mrf.mxu1 }
 0x412   : > { %v6592_v1 = vadd.f32 %v12944_v37, %v6299_v31  ;;  %v6943_v29 = vpop.xlane.xlu0 %6942  ;;  %v7297_v19 = vadd.f32 %v12981_v7, %v6946_v11  ;;  %v5219_v3 = vpop.f32.mrf.mxu0  ;;  %v7148_v21 = vsel %vm4318_vm1, %v6851_v54, 0.0  ;;  %v6854_v57 = vmul.f32 %v12953_v40, %v6719_v63 }
 0x413   : > { %v7631_v35 = vsel %vm7630_vm14, %v7629_v13, %v7624_v32  ;;  %v6595_v55 = vadd.f32 %v12944_v37, %v6314_v24  ;;  %v7296_v9 = vadd.f32 %v12981_v7, %v6943_v29  ;;  %v6309_v43 = vadd.f32 %v6308_v10, %v5219_v3  ;;  %v10383_v59 = vpop.f32.mrf.mxu1 }
 0x414   : > { %v7638_v47 = vsel %vm7637_vm15, %v7636_v5, %v7631_v35  ;;  %v6720_v2 = vmax.f32 %v6592_v1, 0.0  ;;  %v7157_v26 = vsel %vm4318_vm1, %v6854_v57, 0.0  ;;  %v10183_v62 = vpop.f32.mrf.mxu0  ;;  %v6853_v15 = vmul.f32 %v12953_v40, %v6718_v44 }
 0x415   : > { %v6723_v46 = vmax.f32 %v6595_v55, 0.0  ;;  %v7643_v41 = vrot.slane %v7296_v9, %v13159_v52  ;;  %v6594_v63 = vadd.f32 %v12944_v37, %v6309_v43  ;;  %7149 = vadd.xlane.f32.xlu0 %v7148_v21  ;;  %7158 = vadd.xlane.f32.xlu1 %v7157_v26  ;;  %v6324_v42 = vadd.f32 %v10383_v59, %v10183_v62  ;;  %v6952_v60 = vpop.xlane.xlu1 %6951  ;;  %v6318_v20 = vpop.f32.mrf.mxu1 }
 0x416   : > { %v7649_v4 = vrot.slane %v7297_v19, %v12997_v12  ;;  %v6949_v51 = vpop.xlane.xlu0 %6948  ;;  %v7299_v61 = vadd.f32 %v12981_v7, %v6952_v60  ;;  %v5229_v53 = vpop.f32.mrf.mxu0  ;;  %v6856_v58 = vmul.f32 %v12953_v40, %v6721_v0  ;;  %v6855_v39 = vmul.f32 %v12953_v40, %v6720_v2 }
 0x417   : > { %v13178_v38 = vsel %vm7644_vm2, %v7643_v41, %v7638_v47  ;;  %v6722_v54 = vmax.f32 %v6594_v63, 0.0  ;;  %v6597_v34 = vadd.f32 %v12944_v37, %v6324_v42  ;;  %v7298_v44 = vadd.f32 %v12981_v7, %v6949_v51  ;;  %v10386_v30 = vpop.f32.mrf.mxu1 }
 0x418   : > { %v7658_v16 = vrot.slane %v7299_v61, %v13003_v49  ;;  %v6319_v25 = vadd.f32 %v6318_v20, %v5229_v53  ;;  %v7154_v32 = vsel %vm4318_vm1, %v6853_v15, 0.0  ;;  %v7163_v5 = vsel %vm4318_vm1, %v6856_v58, 0.0  ;;  %v10186_v31 = vpop.f32.mrf.mxu0 }
 0x419   : > { %v7653_v56 = vrot.slane %v7298_v44, %v12988_v22  ;;  %7155 = vadd.xlane.f32.xlu0 %v7154_v32  ;;  %7164 = vadd.xlane.f32.xlu1 %v7163_v5  ;;  %v6334_v23 = vadd.f32 %v10386_v30, %v10186_v31  ;;  %v6958_v0 = vpop.xlane.xlu1 %6957  ;;  %v6328_v13 = vpop.f32.mrf.mxu1  ;;  %v7160_v24 = vsel %vm4318_vm1, %v6855_v39, 0.0  ;;  %v6858_v11 = vmul.f32 %v12953_v40, %v6723_v46 }
 0x41a   : > { %v6725_v10 = vmax.f32 %v6597_v34, 0.0  ;;  %v6596_v1 = vadd.f32 %v12944_v37, %v6319_v25  ;;  %v6955_v29 = vpop.xlane.xlu0 %6954  ;;  %v7301_v19 = vadd.f32 %v12981_v7, %v6958_v0  ;;  %v5239_v3 = vpop.f32.mrf.mxu0  ;;  %v6857_v21 = vmul.f32 %v12953_v40, %v6722_v54 }
 0x41b   : > { %v7654_v57 = vsel %vm7546_vm0, %v7653_v56, %v7649_v4  ;;  %v6599_v35 = vadd.f32 %v12944_v37, %v6334_v23  ;;  %v7300_v55 = vadd.f32 %v12981_v7, %v6955_v29  ;;  %v6329_v9 = vadd.f32 %v6328_v13, %v5239_v3  ;;  %v10389_v43 = vpop.f32.mrf.mxu1 }
 0x41c   : > { %v7659_v59 = vsel %vm7553_vm3, %v7658_v16, %v7654_v57  ;;  %v6724_v47 = vmax.f32 %v6596_v1, 0.0  ;;  %v7668_v2 = vrot.slane %v7301_v19, %v13006_v33  ;;  %v7169_v26 = vsel %vm4318_vm1, %v6858_v11, 0.0  ;;  %v10189_v62 = vpop.f32.mrf.mxu0 }
 0x41d   : > { %v6727_v15 = vmax.f32 %v6599_v35, 0.0  ;;  %v7663_v46 = vrot.slane %v7300_v55, %v13000_v45  ;;  %v6598_v41 = vadd.f32 %v12944_v37, %v6329_v9  ;;  %7161 = vadd.xlane.f32.xlu0 %v7160_v24  ;;  %7170 = vadd.xlane.f32.xlu1 %v7169_v26  ;;  %v6344_v63 = vadd.f32 %v10389_v43, %v10189_v62  ;;  %v6964_v42 = vpop.xlane.xlu1 %6963  ;;  %v6338_v60 = vpop.f32.mrf.mxu1 }
 0x41e   : > { %v6961_v20 = vpop.xlane.xlu0 %6960  ;;  %v7303_v4 = vadd.f32 %v12981_v7, %v6964_v42  ;;  %v5249_v51 = vpop.f32.mrf.mxu0  ;;  %v7166_v61 = vsel %vm4318_vm1, %v6857_v21, 0.0  ;;  %v6860_v53 = vmul.f32 %v12953_v40, %v6725_v10  ;;  %v6859_v58 = vmul.f32 %v12953_v40, %v6724_v47 }
 0x41f   : > { %v7664_v39 = vsel %vm7560_vm4, %v7663_v46, %v7659_v59  ;;  %v6726_v54 = vmax.f32 %v6598_v41, 0.0  ;;  %v6601_v34 = vadd.f32 %v12944_v37, %v6344_v63  ;;  %v7302_v44 = vadd.f32 %v12981_v7, %v6961_v20  ;;  %v10392_v30 = vpop.f32.mrf.mxu1 }
 0x420   : > { %v7669_v16 = vsel %vm7567_vm5, %v7668_v2, %v7664_v39  ;;  %v7678_v25 = vrot.slane %v7303_v4, %v13025_v6  ;;  %v6339_v32 = vadd.f32 %v6338_v60, %v5249_v51  ;;  %v7175_v5 = vsel %vm4318_vm1, %v6860_v53, 0.0  ;;  %v10192_v31 = vpop.f32.mrf.mxu0 }
 0x421   : > { %v6729_v56 = vmax.f32 %v6601_v34, 0.0  ;;  %v7673_v23 = vrot.slane %v7302_v44, %v13018_v14  ;;  %7167 = vadd.xlane.f32.xlu0 %v7166_v61  ;;  %7176 = vadd.xlane.f32.xlu1 %v7175_v5  ;;  %v6354_v0 = vadd.f32 %v10392_v30, %v10192_v31  ;;  %v6970_v13 = vpop.xlane.xlu1 %6969  ;;  %v6348_v24 = vpop.f32.mrf.mxu1  ;;  %v7172_v11 = vsel %vm4318_vm1, %v6859_v58, 0.0 }
 0x422   : > { %v6600_v10 = vadd.f32 %v12944_v37, %v6339_v32  ;;  %v6967_v1 = vpop.xlane.xlu0 %6966  ;;  %v7305_v29 = vadd.f32 %v12981_v7, %v6970_v13  ;;  %v5259_v19 = vpop.f32.mrf.mxu0  ;;  %v6862_v3 = vmul.f32 %v12953_v40, %v6727_v15  ;;  %v6861_v21 = vmul.f32 %v12953_v40, %v6726_v54 }
 0x423   : > { %v7674_v57 = vsel %vm7574_vm6, %v7673_v23, %v7669_v16  ;;  %v6603_v35 = vadd.f32 %v12944_v37, %v6354_v0  ;;  %v7304_v55 = vadd.f32 %v12981_v7, %v6967_v1  ;;  %v6349_v9 = vadd.f32 %v6348_v24, %v5259_v19  ;;  %v10395_v43 = vpop.f32.mrf.mxu1 }
 0x424   : > { %v7679_v59 = vsel %vm7581_vm7, %v7678_v25, %v7674_v57  ;;  %v6728_v47 = vmax.f32 %v6600_v10, 0.0  ;;  %v7688_v2 = vrot.slane %v7305_v29, %v13036_v27  ;;  %v7181_v26 = vsel %vm4318_vm1, %v6862_v3, 0.0  ;;  %v10195_v62 = vpop.f32.mrf.mxu0 }
 0x425   : > { %v6731_v46 = vmax.f32 %v6603_v35, 0.0  ;;  %v7683_v15 = vrot.slane %v7304_v55, %v13033_v36  ;;  %v6602_v41 = vadd.f32 %v12944_v37, %v6349_v9  ;;  %7173 = vadd.xlane.f32.xlu0 %v7172_v11  ;;  %7182 = vadd.xlane.f32.xlu1 %v7181_v26  ;;  %v6364_v63 = vadd.f32 %v10395_v43, %v10195_v62  ;;  %v6976_v42 = vpop.xlane.xlu1 %6975  ;;  %v6358_v60 = vpop.f32.mrf.mxu1 }
 0x426   : > { %v6973_v20 = vpop.xlane.xlu0 %6972  ;;  %v7307_v4 = vadd.f32 %v12981_v7, %v6976_v42  ;;  %v5269_v51 = vpop.f32.mrf.mxu0  ;;  %v7178_v61 = vsel %vm4318_vm1, %v6861_v21, 0.0  ;;  %v6864_v53 = vmul.f32 %v12953_v40, %v6729_v56  ;;  %v6863_v58 = vmul.f32 %v12953_v40, %v6728_v47 }
 0x427   : > { %v7684_v39 = vsel %vm7588_vm8, %v7683_v15, %v7679_v59  ;;  %v6730_v54 = vmax.f32 %v6602_v41, 0.0  ;;  %v6605_v34 = vadd.f32 %v12944_v37, %v6364_v63  ;;  %v7306_v44 = vadd.f32 %v12981_v7, %v6973_v20  ;;  %v10398_v30 = vpop.f32.mrf.mxu1 }
 0x428   : > { %v7689_v16 = vsel %vm7595_vm9, %v7688_v2, %v7684_v39  ;;  %v7698_v25 = vrot.slane %v7307_v4, %v13042_v28  ;;  %v6359_v32 = vadd.f32 %v6358_v60, %v5269_v51  ;;  %v7187_v5 = vsel %vm4318_vm1, %v6864_v53, 0.0  ;;  %v10198_v31 = vpop.f32.mrf.mxu0 }
 0x429   : > { %v6733_v23 = vmax.f32 %v6605_v34, 0.0  ;;  %v7693_v56 = vrot.slane %v7306_v44, %v13039_v48  ;;  %7179 = vadd.xlane.f32.xlu0 %v7178_v61  ;;  %7188 = vadd.xlane.f32.xlu1 %v7187_v5  ;;  %v6374_v0 = vadd.f32 %v10398_v30, %v10198_v31  ;;  %v6982_v13 = vpop.xlane.xlu1 %6981  ;;  %v6368_v24 = vpop.f32.mrf.mxu1  ;;  %v7184_v11 = vsel %vm4318_vm1, %v6863_v58, 0.0  ;;  %v13257_v61 = vld [vmem:[%s13714_s6] ss:$0 sm:$0xff] }
 0x42a   : > { %v6604_v10 = vadd.f32 %v12944_v37, %v6359_v32  ;;  %v6979_v1 = vpop.xlane.xlu0 %6978  ;;  %v7309_v29 = vadd.f32 %v12981_v7, %v6982_v13  ;;  %v5279_v19 = vpop.f32.mrf.mxu0  ;;  %v6866_v3 = vmul.f32 %v12953_v40, %v6731_v46  ;;  %v6865_v21 = vmul.f32 %v12953_v40, %v6730_v54  ;;  %v13249_v40 = vld [vmem:[%s13713_s5] ss:$0 sm:$0xff] }
 0x42b   : > { %v7694_v57 = vsel %vm13721_vm10, %v7693_v56, %v7689_v16  ;;  %v6607_v35 = vadd.f32 %v12944_v37, %v6374_v0  ;;  %v7308_v55 = vadd.f32 %v12981_v7, %v6979_v1  ;;  %v6369_v9 = vadd.f32 %v6368_v24, %v5279_v19  ;;  %v10401_v43 = vpop.f32.mrf.mxu1 }
 0x42c   : > { %v7699_v59 = vsel %vm13720_vm11, %v7698_v25, %v7694_v57  ;;  %v6732_v47 = vmax.f32 %v6604_v10, 0.0  ;;  %v7708_v2 = vrot.slane %v7309_v29, %v13064_v18  ;;  %v7193_v26 = vsel %vm4318_vm1, %v6866_v3, 0.0  ;;  %v10201_v62 = vpop.f32.mrf.mxu0 }
 0x42d   : > { %v6735_v15 = vmax.f32 %v6607_v35, 0.0  ;;  %v7703_v46 = vrot.slane %v7308_v55, %v13055_v8  ;;  %v6606_v37 = vadd.f32 %v13249_v40, %v6369_v9  ;;  %7185 = vadd.xlane.f32.xlu0 %v7184_v11  ;;  %7194 = vadd.xlane.f32.xlu1 %v7193_v26  ;;  %v6384_v41 = vadd.f32 %v10401_v43, %v10201_v62  ;;  %v6988_v63 = vpop.xlane.xlu1 %6987  ;;  %v6378_v42 = vpop.f32.mrf.mxu1 }
 0x42e   : > { %vm8199_vm11 = vcmask 1041409   ;;  %v6985_v60 = vpop.xlane.xlu0 %6984  ;;  %v7311_v20 = vadd.f32 %v12981_v7, %v6988_v63  ;;  %v5289_v4 = vpop.f32.mrf.mxu0  ;;  %v7190_v51 = vsel %vm4318_vm1, %v6865_v21, 0.0  ;;  %v6867_v53 = vmul.f32 %v13257_v61, %v6732_v47 }
 0x42f   : > { %v6868_v58 = vmul.f32 %v13257_v61, %v6733_v23  ;;  %v7704_v39 = vsel %vm7616_vm12, %v7703_v46, %v7699_v59  ;;  %v6734_v54 = vmax.f32 %v6606_v37, 0.0  ;;  %v6609_v34 = vadd.f32 %v13249_v40, %v6384_v41  ;;  %v10404_v30 = vpop.f32.mrf.mxu1 }
 0x430   : > { %v7310_v44 = vadd.f32 %v12981_v7, %v6985_v60  ;;  %v7709_v16 = vsel %vm7623_vm13, %v7708_v2, %v7704_v39  ;;  %v7718_v25 = vrot.slane %v7311_v20, %v13074_v17  ;;  %v6379_v32 = vadd.f32 %v6378_v42, %v5289_v4  ;;  %v10204_v31 = vpop.f32.mrf.mxu0 }
 0x431   : > { %v7196_v5 = vsel %vm4318_vm1, %v6867_v53, 0.0  ;;  %v6737_v56 = vmax.f32 %v6609_v34, 0.0  ;;  %7191 = vadd.xlane.f32.xlu1 %v7190_v51  ;;  %v6394_v23 = vadd.f32 %v10404_v30, %v10204_v31  ;;  %v6994_v13 = vpop.xlane.xlu1 %6993  ;;  %v6388_v24 = vpop.f32.mrf.mxu1  ;;  %v7199_v11 = vsel %vm4318_vm1, %v6868_v58, 0.0 }
 0x432   : > { %v7713_v0 = vrot.slane %v7310_v44, %v13068_v50  ;;  %7197 = vadd.xlane.f32.xlu0 %v7196_v5  ;;  %v6608_v10 = vadd.f32 %v13249_v40, %v6379_v32  ;;  %v6991_v1 = vpop.xlane.xlu0 %6990  ;;  %v7313_v29 = vadd.f32 %v12981_v7, %v6994_v13  ;;  %v5299_v19 = vpop.f32.mrf.mxu0  ;;  %v6869_v3 = vmul.f32 %v13257_v61, %v6734_v54 }
 0x433   : > { %v6870_v21 = vmul.f32 %v13257_v61, %v6735_v15  ;;  %v6611_v35 = vadd.f32 %v13249_v40, %v6394_v23  ;;  %v7312_v55 = vadd.f32 %v12981_v7, %v6991_v1  ;;  %v6389_v9 = vadd.f32 %v6388_v24, %v5299_v19  ;;  %v10407_v43 = vpop.f32.mrf.mxu1 }
 0x434   : > { %v7714_v57 = vsel %vm7630_vm14, %v7713_v0, %v7709_v16  ;;  %v6736_v47 = vmax.f32 %v6608_v10, 0.0  ;;  %v7728_v2 = vrot.slane %v7313_v29, %v12997_v12  ;;  %v7202_v26 = vsel %vm4318_vm1, %v6869_v3, 0.0  ;;  %v10207_v62 = vpop.f32.mrf.mxu0 }
 0x435   : > { %v7719_v59 = vsel %vm7637_vm15, %v7718_v25, %v7714_v57  ;;  %v6739_v46 = vmax.f32 %v6611_v35, 0.0  ;;  %v7723_v37 = vrot.slane %v7312_v55, %v13159_v52  ;;  %v6610_v15 = vadd.f32 %v13249_v40, %v6389_v9  ;;  %7200 = vadd.xlane.f32.xlu1 %v7199_v11  ;;  %v7000_v63 = vpop.xlane.xlu1 %6999  ;;  %v6398_v42 = vpop.f32.mrf.mxu1 }
 0x436   : > { %7203 = vadd.xlane.f32.xlu0 %v7202_v26  ;;  %v6404_v41 = vadd.f32 %v10407_v43, %v10207_v62  ;;  %v6997_v60 = vpop.xlane.xlu0 %6996  ;;  %v7315_v20 = vadd.f32 %v12981_v7, %v7000_v63  ;;  %v5309_v4 = vpop.f32.mrf.mxu0  ;;  %v7205_v51 = vsel %vm4318_vm1, %v6870_v21, 0.0  ;;  %v6871_v53 = vmul.f32 %v13257_v61, %v6736_v47 }
 0x437   : > { %v6872_v58 = vmul.f32 %v13257_v61, %v6737_v56  ;;  %v7724_v39 = vsel %vm7644_vm2, %v7723_v37, %v7719_v59  ;;  %v6738_v54 = vmax.f32 %v6610_v15, 0.0  ;;  %v7314_v44 = vadd.f32 %v12981_v7, %v6997_v60  ;;  %v10410_v30 = vpop.f32.mrf.mxu1 }
 0x438   : > { %v6613_v34 = vadd.f32 %v13249_v40, %v6404_v41  ;;  %v13290_v16 = vsel %vm8199_vm11, %v7724_v39, %v13178_v38  ;;  %v7737_v25 = vrot.slane %v7315_v20, %v13003_v49  ;;  %v6399_v32 = vadd.f32 %v6398_v42, %v5309_v4  ;;  %v10210_v31 = vpop.f32.mrf.mxu0 }
 0x439   : > { %v7208_v5 = vsel %vm4318_vm1, %v6871_v53, 0.0  ;;  %v7732_v56 = vrot.slane %v7314_v44, %v12988_v22  ;;  %7206 = vadd.xlane.f32.xlu1 %v7205_v51  ;;  %v6414_v23 = vadd.f32 %v10410_v30, %v10210_v31  ;;  %v7006_v13 = vpop.xlane.xlu1 %7005  ;;  %v6408_v24 = vpop.f32.mrf.mxu1  ;;  %v7211_v11 = vsel %vm4318_vm1, %v6872_v58, 0.0 }
 0x43a   : > { %v6741_v0 = vmax.f32 %v6613_v34, 0.0  ;;  %7209 = vadd.xlane.f32.xlu0 %v7208_v5  ;;  %v6612_v10 = vadd.f32 %v13249_v40, %v6399_v32  ;;  %v7003_v38 = vpop.xlane.xlu0 %7002  ;;  %v7317_v1 = vadd.f32 %v12981_v7, %v7006_v13  ;;  %v5319_v29 = vpop.f32.mrf.mxu0  ;;  %v6873_v19 = vmul.f32 %v13257_v61, %v6738_v54 }
 0x43b   : > { %v6874_v3 = vmul.f32 %v13257_v61, %v6739_v46  ;;  %v7733_v21 = vsel %vm7546_vm0, %v7732_v56, %v7728_v2  ;;  %v6615_v57 = vadd.f32 %v13249_v40, %v6414_v23  ;;  %v7316_v35 = vadd.f32 %v12981_v7, %v7003_v38  ;;  %v10413_v9 = vpop.f32.mrf.mxu1 }
 0x43c   : > { %v6409_v55 = vadd.f32 %v6408_v24, %v5319_v29  ;;  %v7738_v43 = vsel %vm7553_vm3, %v7737_v25, %v7733_v21  ;;  %v6740_v59 = vmax.f32 %v6612_v10, 0.0  ;;  %v7747_v47 = vrot.slane %v7317_v1, %v13006_v33  ;;  %v10213_v62 = vpop.f32.mrf.mxu0 }
 0x43d   : > { %v7214_v26 = vsel %vm4318_vm1, %v6873_v19, 0.0  ;;  %v6743_v37 = vmax.f32 %v6615_v57, 0.0  ;;  %v7742_v15 = vrot.slane %v7316_v35, %v13000_v45  ;;  %7212 = vadd.xlane.f32.xlu1 %v7211_v11  ;;  %v6424_v2 = vadd.f32 %v10413_v9, %v10213_v62  ;;  %v7012_v41 = vpop.xlane.xlu1 %7011  ;;  %v6418_v63 = vpop.f32.mrf.mxu1 }
 0x43e   : > { %v6614_v46 = vadd.f32 %v13249_v40, %v6409_v55  ;;  %7215 = vadd.xlane.f32.xlu0 %v7214_v26  ;;  %v7009_v42 = vpop.xlane.xlu0 %7008  ;;  %v7319_v60 = vadd.f32 %v12981_v7, %v7012_v41  ;;  %v5329_v20 = vpop.f32.mrf.mxu0  ;;  %v7217_v4 = vsel %vm4318_vm1, %v6874_v3, 0.0  ;;  %v6875_v51 = vmul.f32 %v13257_v61, %v6740_v59 }
 0x43f   : > { %v6876_v53 = vmul.f32 %v13257_v61, %v6741_v0  ;;  %v7743_v58 = vsel %vm7560_vm4, %v7742_v15, %v7738_v43  ;;  %v6617_v54 = vadd.f32 %v13249_v40, %v6424_v2  ;;  %v7318_v34 = vadd.f32 %v12981_v7, %v7009_v42  ;;  %v10416_v44 = vpop.f32.mrf.mxu1 }
 0x440   : > { %v6742_v39 = vmax.f32 %v6614_v46, 0.0  ;;  %v7748_v30 = vsel %vm7567_vm5, %v7747_v47, %v7743_v58  ;;  %v7757_v25 = vrot.slane %v7319_v60, %v13025_v6  ;;  %v6419_v32 = vadd.f32 %v6418_v63, %v5329_v20  ;;  %v10216_v31 = vpop.f32.mrf.mxu0 }
 0x441   : > { %v7220_v5 = vsel %vm4318_vm1, %v6875_v51, 0.0  ;;  %v6745_v56 = vmax.f32 %v6617_v54, 0.0  ;;  %v7752_v23 = vrot.slane %v7318_v34, %v13018_v14  ;;  %7218 = vadd.xlane.f32.xlu1 %v7217_v4  ;;  %v6434_v0 = vadd.f32 %v10416_v44, %v10216_v31  ;;  %v7018_v13 = vpop.xlane.xlu1 %7017  ;;  %v6428_v24 = vpop.f32.mrf.mxu1 }
 0x442   : > { %7221 = vadd.xlane.f32.xlu0 %v7220_v5  ;;  %v7223_v11 = vsel %vm4318_vm1, %v6876_v53, 0.0  ;;  %v6616_v10 = vadd.f32 %v13249_v40, %v6419_v32  ;;  %v7015_v38 = vpop.xlane.xlu0 %7014  ;;  %v7321_v1 = vadd.f32 %v12981_v7, %v7018_v13  ;;  %v5339_v29 = vpop.f32.mrf.mxu0  ;;  %v6878_v19 = vmul.f32 %v13257_v61, %v6743_v37 }
 0x443   : > { %v6877_v3 = vmul.f32 %v13257_v61, %v6742_v39  ;;  %v7753_v21 = vsel %vm7574_vm6, %v7752_v23, %v7748_v30  ;;  %v6619_v57 = vadd.f32 %v13249_v40, %v6434_v0  ;;  %v7320_v35 = vadd.f32 %v12981_v7, %v7015_v38  ;;  %v10419_v9 = vpop.f32.mrf.mxu1 }
 0x444   : > { %v6429_v55 = vadd.f32 %v6428_v24, %v5339_v29  ;;  %v7758_v43 = vsel %vm7581_vm7, %v7757_v25, %v7753_v21  ;;  %v6744_v59 = vmax.f32 %v6616_v10, 0.0  ;;  %v7767_v47 = vrot.slane %v7321_v1, %v13036_v27  ;;  %v10219_v62 = vpop.f32.mrf.mxu0 }
 0x445   : > { %v7229_v26 = vsel %vm4318_vm1, %v6878_v19, 0.0  ;;  %v6747_v15 = vmax.f32 %v6619_v57, 0.0  ;;  %v7762_v37 = vrot.slane %v7320_v35, %v13033_v36  ;;  %7224 = vadd.xlane.f32.xlu1 %v7223_v11  ;;  %v6444_v2 = vadd.f32 %v10419_v9, %v10219_v62  ;;  %v7024_v41 = vpop.xlane.xlu1 %7023  ;;  %v6438_v63 = vpop.f32.mrf.mxu1 }
 0x446   : > { %v6618_v46 = vadd.f32 %v13249_v40, %v6429_v55  ;;  %7230 = vadd.xlane.f32.xlu0 %v7229_v26  ;;  %v7021_v42 = vpop.xlane.xlu0 %7020  ;;  %v7323_v60 = vadd.f32 %v12981_v7, %v7024_v41  ;;  %v5349_v20 = vpop.f32.mrf.mxu0  ;;  %v7226_v4 = vsel %vm4318_vm1, %v6877_v3, 0.0  ;;  %v6880_v51 = vmul.f32 %v13257_v61, %v6745_v56 }
 0x447   : > { %v6879_v53 = vmul.f32 %v13257_v61, %v6744_v59  ;;  %v7763_v58 = vsel %vm7588_vm8, %v7762_v37, %v7758_v43  ;;  %v6621_v54 = vadd.f32 %v13249_v40, %v6444_v2  ;;  %v7322_v34 = vadd.f32 %v12981_v7, %v7021_v42  ;;  %v10422_v44 = vpop.f32.mrf.mxu1 }
 0x448   : > { %v6746_v39 = vmax.f32 %v6618_v46, 0.0  ;;  %v7768_v30 = vsel %vm7595_vm9, %v7767_v47, %v7763_v58  ;;  %v7777_v25 = vrot.slane %v7323_v60, %v13042_v28  ;;  %v6439_v32 = vadd.f32 %v6438_v63, %v5349_v20  ;;  %v10222_v31 = vpop.f32.mrf.mxu0 }
 0x449   : > { %v7235_v5 = vsel %vm4318_vm1, %v6880_v51, 0.0  ;;  %v6749_v23 = vmax.f32 %v6621_v54, 0.0  ;;  %v7772_v56 = vrot.slane %v7322_v34, %v13039_v48  ;;  %v6454_v0 = vadd.f32 %v10422_v44, %v10222_v31  ;;  %v7030_v13 = vpop.xlane.xlu1 %7029  ;;  %v6448_v24 = vpop.f32.mrf.mxu1 }
 0x44a   : > { %7227 = vadd.xlane.f32.xlu0 %v7226_v4  ;;  %7236 = vadd.xlane.f32.xlu1 %v7235_v5  ;;  %v7232_v11 = vsel %vm4318_vm1, %v6879_v53, 0.0  ;;  %v6620_v10 = vadd.f32 %v13249_v40, %v6439_v32  ;;  %v7027_v38 = vpop.xlane.xlu0 %7026  ;;  %v7325_v1 = vadd.f32 %v12981_v7, %v7030_v13  ;;  %v5359_v29 = vpop.f32.mrf.mxu0  ;;  %v6882_v19 = vmul.f32 %v13257_v61, %v6747_v15 }
 0x44b   : > { %v6881_v3 = vmul.f32 %v13257_v61, %v6746_v39  ;;  %v7773_v21 = vsel %vm13721_vm10, %v7772_v56, %v7768_v30  ;;  %v6623_v57 = vadd.f32 %v13249_v40, %v6454_v0  ;;  %v7324_v35 = vadd.f32 %v12981_v7, %v7027_v38  ;;  %v10425_v9 = vpop.f32.mrf.mxu1 }
 0x44c   : > { %v6449_v55 = vadd.f32 %v6448_v24, %v5359_v29  ;;  %vm13909_vm11 = vcmask 720512   ;;  %v6748_v59 = vmax.f32 %v6620_v10, 0.0  ;;  %v7787_v47 = vrot.slane %v7325_v1, %v13064_v18  ;;  %v10225_v62 = vpop.f32.mrf.mxu0 }
 0x44d   : > { %v7778_v43 = vsel %vm13909_vm11, %v7777_v25, %v7773_v21  ;;  %v7241_v26 = vsel %vm4318_vm1, %v6882_v19, 0.0  ;;  %v6751_v37 = vmax.f32 %v6623_v57, 0.0  ;;  %v7782_v15 = vrot.slane %v7324_v35, %v13055_v8  ;;  %v7036_v41 = vpop.xlane.xlu1 %7035  ;;  %v6458_v63 = vpop.f32.mrf.mxu1 }
 0x44e   : > { %v6622_v46 = vadd.f32 %v13249_v40, %v6449_v55  ;;  %7233 = vadd.xlane.f32.xlu0 %v7232_v11  ;;  %7242 = vadd.xlane.f32.xlu1 %v7241_v26  ;;  %v6464_v2 = vadd.f32 %v10425_v9, %v10225_v62  ;;  %vm8201_vm10 = vcmask 1042434   ;;  %v7033_v42 = vpop.xlane.xlu0 %7032  ;;  %v7327_v60 = vadd.f32 %v12981_v7, %v7036_v41  ;;  %v5369_v20 = vpop.f32.mrf.mxu0 }
 0x44f   : > { %v7238_v4 = vsel %vm4318_vm1, %v6881_v3, 0.0  ;;  %v6884_v51 = vmul.f32 %v13257_v61, %v6749_v23  ;;  %v6883_v53 = vmul.f32 %v13257_v61, %v6748_v59  ;;  %v7783_v58 = vsel %vm7616_vm12, %v7782_v15, %v7778_v43  ;;  %v10428_v44 = vpop.f32.mrf.mxu1 }
 0x450   : > { %v6750_v39 = vmax.f32 %v6622_v46, 0.0  ;;  %v6625_v54 = vadd.f32 %v13249_v40, %v6464_v2  ;;  %v7326_v34 = vadd.f32 %v12981_v7, %v7033_v42  ;;  %v7788_v30 = vsel %vm7623_vm13, %v7787_v47, %v7783_v58  ;;  %v10228_v31 = vpop.f32.mrf.mxu0 }
 0x451   : > { %v7797_v25 = vrot.slane %v7327_v60, %v13074_v17  ;;  %v6459_v32 = vadd.f32 %v6458_v63, %v5369_v20  ;;  %v7247_v5 = vsel %vm4318_vm1, %v6884_v51, 0.0  ;;  %v6474_v0 = vadd.f32 %v10428_v44, %v10228_v31  ;;  %v7042_v13 = vpop.xlane.xlu1 %7041  ;;  %v6468_v24 = vpop.f32.mrf.mxu1 }
 0x452   : > { %v6753_v56 = vmax.f32 %v6625_v54, 0.0  ;;  %v7792_v23 = vrot.slane %v7326_v34, %v13068_v50  ;;  %7239 = vadd.xlane.f32.xlu0 %v7238_v4  ;;  %7248 = vadd.xlane.f32.xlu1 %v7247_v5  ;;  %v7244_v11 = vsel %vm4318_vm1, %v6883_v53, 0.0  ;;  %v7039_v38 = vpop.xlane.xlu0 %7038  ;;  %v7329_v1 = vadd.f32 %v12981_v7, %v7042_v13  ;;  %v5379_v29 = vpop.f32.mrf.mxu0 }
 0x453   : > { %v6624_v10 = vadd.f32 %v13249_v40, %v6459_v32  ;;  %v6886_v19 = vmul.f32 %v13257_v61, %v6751_v37  ;;  %v6885_v3 = vmul.f32 %v13257_v61, %v6750_v39  ;;  %v6627_v57 = vadd.f32 %v13249_v40, %v6474_v0  ;;  %v10431_v9 = vpop.f32.mrf.mxu1 }
 0x454   : > { %v7793_v21 = vsel %vm7630_vm14, %v7792_v23, %v7788_v30  ;;  %v7328_v35 = vadd.f32 %v12981_v7, %v7039_v38  ;;  %v6469_v55 = vadd.f32 %v6468_v24, %v5379_v29  ;;  %v7807_v47 = vrot.slane %v7329_v1, %v12997_v12  ;;  %v10231_v62 = vpop.f32.mrf.mxu0 }
 0x455   : > { %v7798_v43 = vsel %vm7637_vm15, %v7797_v25, %v7793_v21  ;;  %v6752_v59 = vmax.f32 %v6624_v10, 0.0  ;;  %v7253_v26 = vsel %vm4318_vm1, %v6886_v19, 0.0  ;;  %v6755_v15 = vmax.f32 %v6627_v57, 0.0  ;;  %v7048_v41 = vpop.xlane.xlu1 %7047  ;;  %v6478_v63 = vpop.f32.mrf.mxu1 }
 0x456   : > { %v7802_v37 = vrot.slane %v7328_v35, %v13159_v52  ;;  %v6626_v46 = vadd.f32 %v13249_v40, %v6469_v55  ;;  %7245 = vadd.xlane.f32.xlu0 %v7244_v11  ;;  %7254 = vadd.xlane.f32.xlu1 %v7253_v26  ;;  %v6484_v2 = vadd.f32 %v10431_v9, %v10231_v62  ;;  %v7045_v42 = vpop.xlane.xlu0 %7044  ;;  %v5389_v20 = vpop.f32.mrf.mxu0  ;;  %v7250_v4 = vsel %vm4318_vm1, %v6885_v3, 0.0 }
 0x457   : > { %v7331_v60 = vadd.f32 %v12981_v7, %v7048_v41  ;;  %v6888_v51 = vmul.f32 %v13257_v61, %v6753_v56  ;;  %v6887_v53 = vmul.f32 %v13257_v61, %v6752_v59  ;;  %v7330_v34 = vadd.f32 %v12981_v7, %v7045_v42  ;;  %v10434_v44 = vpop.f32.mrf.mxu1 }
 0x458   : > { %v7803_v58 = vsel %vm7644_vm2, %v7802_v37, %v7798_v43  ;;  %v6754_v39 = vmax.f32 %v6626_v46, 0.0  ;;  %v6629_v54 = vadd.f32 %v13249_v40, %v6484_v2  ;;  %v6479_v32 = vadd.f32 %v6478_v63, %v5389_v20  ;;  %v10234_v31 = vpop.f32.mrf.mxu0 }
 0x459   : > { %v13389_v30 = vsel %vm8201_vm10, %v7803_v58, %v13290_v16  ;;  %v7816_v25 = vrot.slane %v7331_v60, %v13003_v49  ;;  %v7259_v5 = vsel %vm4318_vm1, %v6888_v51, 0.0  ;;  %v7811_v23 = vrot.slane %v7330_v34, %v12988_v22  ;;  %v7054_v13 = vpop.xlane.xlu1 %7053  ;;  %v6488_v24 = vpop.f32.mrf.mxu1 }
 0x45a   : > { %v6757_v56 = vmax.f32 %v6629_v54, 0.0  ;;  %7251 = vadd.xlane.f32.xlu0 %v7250_v4  ;;  %7260 = vadd.xlane.f32.xlu1 %v7259_v5  ;;  %v6494_v0 = vadd.f32 %v10434_v44, %v10234_v31  ;;  %v7256_v11 = vsel %vm4318_vm1, %v6887_v53, 0.0  ;;  %v6628_v10 = vadd.f32 %v13249_v40, %v6479_v32  ;;  %v7051_v16 = vpop.xlane.xlu0 %7050  ;;  %v5399_v1 = vpop.f32.mrf.mxu0 }
 0x45b   : > { %v7333_v38 = vadd.f32 %v12981_v7, %v7054_v13  ;;  %v6890_v29 = vmul.f32 %v13257_v61, %v6755_v15  ;;  %v6889_v19 = vmul.f32 %v13257_v61, %v6754_v39  ;;  %v7812_v3 = vsel %vm7546_vm0, %v7811_v23, %v7807_v47 }
 0x45c   : > { %v6631_v21 = vadd.f32 %v13249_v40, %v6494_v0  ;;  %v7332_v57 = vadd.f32 %v12981_v7, %v7051_v16  ;;  %v6489_v35 = vadd.f32 %v6488_v24, %v5399_v1  ;;  %v7817_v55 = vsel %vm7553_vm3, %v7816_v25, %v7812_v3 }
 0x45d   : > { %v6756_v9 = vmax.f32 %v6628_v10, 0.0  ;;  %v7826_v43 = vrot.slane %v7333_v38, %v13006_v33  ;;  %v7265_v59 = vsel %vm4318_vm1, %v6890_v29, 0.0  ;;  %v7060_v15 = vpop.xlane.xlu1 %7059  ;;  %v6892_v2 = vmul.f32 %v13257_v61, %v6757_v56 }
 0x45e   : > { %v7821_v26 = vrot.slane %v7332_v57, %v13000_v45  ;;  %v6630_v62 = vadd.f32 %v13249_v40, %v6489_v35  ;;  %7257 = vadd.xlane.f32.xlu0 %v7256_v11  ;;  %7266 = vadd.xlane.f32.xlu1 %v7265_v59  ;;  %v6759_v47 = vmax.f32 %v6631_v21, 0.0  ;;  %v7057_v37 = vpop.xlane.xlu0 %7056  ;;  %v7335_v46 = vadd.f32 %v12981_v7, %v7060_v15 }
 0x45f   : > { %v7334_v42 = vadd.f32 %v12981_v7, %v7057_v37  ;;  %v7262_v60 = vsel %vm4318_vm1, %v6889_v19, 0.0  ;;  %v7271_v4 = vsel %vm4318_vm1, %v6892_v2, 0.0  ;;  %v6891_v51 = vmul.f32 %v13257_v61, %v6756_v9 }
 0x460   : > { %v7822_v41 = vsel %vm7560_vm4, %v7821_v26, %v7817_v55  ;;  %v6758_v63 = vmax.f32 %v6630_v62, 0.0  ;;  %v7836_v40 = vrot.slane %v7335_v46, %v13025_v6  ;;  %v6894_v23 = vmul.f32 %v13257_v61, %v6759_v47 }
 0x461   : > { %v7827_v20 = vsel %vm7567_vm5, %v7826_v43, %v7822_v41  ;;  %v7831_v53 = vrot.slane %v7334_v42, %v13018_v14  ;;  %v7066_v58 = vpop.xlane.xlu1 %7065  ;;  %v7268_v56 = vsel %vm4318_vm1, %v6891_v51, 0.0  ;;  %vm13910_vm10 = vcmask 654912  }
 0x462   : > { %7263 = vadd.xlane.f32.xlu0 %v7262_v60  ;;  %7272 = vadd.xlane.f32.xlu1 %v7271_v4  ;;  %v6893_v39 = vmul.f32 %v13257_v61, %v6758_v63  ;;  %v7063_v54 = vpop.xlane.xlu0 %7062  ;;  %v7337_v34 = vadd.f32 %v12981_v7, %v7066_v58  ;;  %v7277_v29 = vsel %vm4318_vm1, %v6894_v23, 0.0 }
 0x463   : > { %v7832_v44 = vsel %vm7574_vm6, %v7831_v53, %v7827_v20  ;;  %v7336_v25 = vadd.f32 %v12981_v7, %v7063_v54 }
 0x464   : > { %v7274_v32 = vsel %vm4318_vm1, %v6893_v39, 0.0  ;;  %v7837_v5 = vsel %vm7581_vm7, %v7836_v40, %v7832_v44  ;;  %v7846_v31 = vrot.slane %v7337_v34, %v13036_v27  ;;  %vm8203_vm1 = vcmask 1043459  }
 0x465   : > { %v7841_v0 = vrot.slane %v7336_v25, %v13033_v36  ;;  %v7072_v13 = vpop.xlane.xlu1 %7071 }
 0x466   : > { %7269 = vadd.xlane.f32.xlu0 %v7268_v56  ;;  %7275 = vadd.xlane.f32.xlu1 %v7274_v32  ;;  %v7069_v24 = vpop.xlane.xlu0 %7068  ;;  %v7339_v11 = vadd.f32 %v12981_v7, %v7072_v13 }
 0x467   : > { %v7842_v10 = vsel %vm7588_vm8, %v7841_v0, %v7837_v5  ;;  %v7338_v16 = vadd.f32 %v12981_v7, %v7069_v24 }
 0x468   : > { %v7847_v38 = vsel %vm7595_vm9, %v7846_v31, %v7842_v10  ;;  %v7856_v1 = vrot.slane %v7339_v11, %v13042_v28 }
 0x469   : > { %v7851_v61 = vrot.slane %v7338_v16, %v13039_v48  ;;  %v7078_v19 = vpop.xlane.xlu1 %7077 }
 0x46a   : > { %7278 = vadd.xlane.f32.xlu0 %v7277_v29  ;;  %v7075_v3 = vpop.xlane.xlu0 %7074  ;;  %v7341_v21 = vadd.f32 %v12981_v7, %v7078_v19 }
 0x46b   : > { %v7852_v57 = vsel %vm13910_vm10, %v7851_v61, %v7847_v38  ;;  %v7340_v35 = vadd.f32 %v12981_v7, %v7075_v3 }
 0x46c   : > { %v7857_v55 = vsel %vm13909_vm11, %v7856_v1, %v7852_v57  ;;  %v7866_v9 = vrot.slane %v7341_v21, %v13064_v18 }
 0x46d   : > { %v7861_v43 = vrot.slane %v7340_v35, %v13055_v8  ;;  %v7084_v59 = vpop.xlane.xlu1 %7083 }
 0x46e   : > { %v7081_v26 = vpop.xlane.xlu0 %7080  ;;  %v7343_v62 = vadd.f32 %v12981_v7, %v7084_v59 }
 0x46f   : > { %v7862_v15 = vsel %vm7616_vm12, %v7861_v43, %v7857_v55  ;;  %v7342_v47 = vadd.f32 %v12981_v7, %v7081_v26 }
 0x470   : > { %v7867_v37 = vsel %vm7623_vm13, %v7866_v9, %v7862_v15  ;;  %v7876_v46 = vrot.slane %v7343_v62, %v13074_v17 }
 0x471   : > { %v7871_v2 = vrot.slane %v7342_v47, %v13068_v50  ;;  %v7090_v41 = vpop.xlane.xlu1 %7089 }
 0x472   : > { %v7087_v63 = vpop.xlane.xlu0 %7086  ;;  %v7345_v4 = vadd.f32 %v12981_v7, %v7090_v41 }
 0x473   : > { %v7872_v42 = vsel %vm7630_vm14, %v7871_v2, %v7867_v37  ;;  %v7344_v60 = vadd.f32 %v12981_v7, %v7087_v63 }
 0x474   : > { %v7877_v20 = vsel %vm7637_vm15, %v7876_v46, %v7872_v42  ;;  %v7886_v25 = vrot.slane %v7345_v4, %v12997_v12 }
 0x475   : > { %v7881_v40 = vrot.slane %v7344_v60, %v13159_v52  ;;  %v7096_v51 = vpop.xlane.xlu1 %7095 }
 0x476   : > { %v7093_v53 = vpop.xlane.xlu0 %7092  ;;  %v7347_v58 = vadd.f32 %v12981_v7, %v7096_v51 }
 0x477   : > { %v7882_v39 = vsel %vm7644_vm2, %v7881_v40, %v7877_v20  ;;  %v7346_v54 = vadd.f32 %v12981_v7, %v7093_v53 }
 0x478   : > { %v13455_v34 = vsel %vm8203_vm1, %v7882_v39, %v13389_v30  ;;  %v7895_v44 = vrot.slane %v7347_v58, %v13003_v49  ;;  %vm8205_vm1 = vcmask 1044484  }
 0x479   : > { %v7890_v32 = vrot.slane %v7346_v54, %v12988_v22  ;;  %v7102_v5 = vpop.xlane.xlu1 %7101 }
 0x47a   : > { %v7099_v31 = vpop.xlane.xlu0 %7098  ;;  %v7349_v56 = vadd.f32 %v12981_v7, %v7102_v5 }
 0x47b   : > { %v7891_v23 = vsel %vm7546_vm0, %v7890_v32, %v7886_v25  ;;  %v7348_v0 = vadd.f32 %v12981_v7, %v7099_v31 }
 0x47c   : > { %v7896_v13 = vsel %vm7553_vm3, %v7895_v44, %v7891_v23  ;;  %v7905_v24 = vrot.slane %v7349_v56, %v13006_v33 }
 0x47d   : > { %v7900_v30 = vrot.slane %v7348_v0, %v13000_v45 }
 0x47e   : > { %v7105_v11 = vpop.xlane.xlu0 %7104  ;;  %v7108_v10 = vpop.xlane.xlu1 %7107 }
 0x47f   : > { %v7901_v16 = vsel %vm7560_vm4, %v7900_v30, %v7896_v13  ;;  %v7350_v38 = vadd.f32 %v12981_v7, %v7105_v11  ;;  %v7351_v1 = vadd.f32 %v12981_v7, %v7108_v10 }
 0x480   : > { %v7906_v29 = vsel %vm7567_vm5, %v7905_v24, %v7901_v16 }
 0x481   : > { %v7910_v61 = vrot.slane %v7350_v38, %v13018_v14  ;;  %v7915_v19 = vrot.slane %v7351_v1, %v13025_v6 }
 0x482   : > { %v7111_v3 = vpop.xlane.xlu0 %7110  ;;  %v7114_v21 = vpop.xlane.xlu1 %7113 }
 0x483   : > { %v7911_v57 = vsel %vm7574_vm6, %v7910_v61, %v7906_v29  ;;  %v7352_v35 = vadd.f32 %v12981_v7, %v7111_v3  ;;  %v7353_v55 = vadd.f32 %v12981_v7, %v7114_v21 }
 0x484   : > { %v7916_v9 = vsel %vm7581_vm7, %v7915_v19, %v7911_v57 }
 0x485   : > { %v7920_v43 = vrot.slane %v7352_v35, %v13033_v36  ;;  %v7925_v59 = vrot.slane %v7353_v55, %v13036_v27 }
 0x486   : > { %v7117_v26 = vpop.xlane.xlu0 %7116  ;;  %v7120_v62 = vpop.xlane.xlu1 %7119 }
 0x487   : > { %v7921_v15 = vsel %vm7588_vm8, %v7920_v43, %v7916_v9  ;;  %v7354_v47 = vadd.f32 %v12981_v7, %v7117_v26  ;;  %v7355_v37 = vadd.f32 %v12981_v7, %v7120_v62 }
 0x488   : > { %v7926_v46 = vsel %vm7595_vm9, %v7925_v59, %v7921_v15 }
 0x489   : > { %v7930_v2 = vrot.slane %v7354_v47, %v13039_v48  ;;  %v7935_v41 = vrot.slane %v7355_v37, %v13042_v28 }
 0x48a   : > { %v7123_v63 = vpop.xlane.xlu0 %7122  ;;  %v7126_v42 = vpop.xlane.xlu1 %7125 }
 0x48b   : > { %v7931_v60 = vsel %vm13910_vm10, %v7930_v2, %v7926_v46  ;;  %v7356_v20 = vadd.f32 %v12981_v7, %v7123_v63  ;;  %v7357_v40 = vadd.f32 %v12981_v7, %v7126_v42 }
 0x48c   : > { %v7936_v4 = vsel %vm13909_vm11, %v7935_v41, %v7931_v60 }
 0x48d   : > { %v7940_v51 = vrot.slane %v7356_v20, %v13055_v8  ;;  %v7945_v53 = vrot.slane %v7357_v40, %v13064_v18 }
 0x48e   : > { %v7129_v58 = vpop.xlane.xlu0 %7128  ;;  %v7132_v39 = vpop.xlane.xlu1 %7131 }
 0x48f   : > { %v7941_v54 = vsel %vm7616_vm12, %v7940_v51, %v7936_v4  ;;  %v7358_v44 = vadd.f32 %v12981_v7, %v7129_v58  ;;  %v7359_v25 = vadd.f32 %v12981_v7, %v7132_v39 }
 0x490   : > { %v7946_v32 = vsel %vm7623_vm13, %v7945_v53, %v7941_v54 }
 0x491   : > { %v7950_v5 = vrot.slane %v7358_v44, %v13068_v50  ;;  %v7955_v31 = vrot.slane %v7359_v25, %v13074_v17 }
 0x492   : > { %v7135_v56 = vpop.xlane.xlu0 %7134  ;;  %v7138_v23 = vpop.xlane.xlu1 %7137 }
 0x493   : > { %v7951_v0 = vsel %vm7630_vm14, %v7950_v5, %v7946_v32  ;;  %v7360_v13 = vadd.f32 %v12981_v7, %v7135_v56  ;;  %v7361_v11 = vadd.f32 %v12981_v7, %v7138_v23 }
 0x494   : > { %v7956_v24 = vsel %vm7637_vm15, %v7955_v31, %v7951_v0 }
 0x495   : > { %v7960_v30 = vrot.slane %v7360_v13, %v13159_v52  ;;  %v7965_v19 = vrot.slane %v7361_v11, %v12997_v12 }
 0x496   : > { %v7141_v10 = vpop.xlane.xlu0 %7140  ;;  %v7144_v16 = vpop.xlane.xlu1 %7143 }
 0x497   : > { %v7961_v38 = vsel %vm7644_vm2, %v7960_v30, %v7956_v24  ;;  %v7362_v1 = vadd.f32 %v12981_v7, %v7141_v10  ;;  %v7363_v29 = vadd.f32 %v12981_v7, %v7144_v16 }
 0x498   : > { %v13505_v61 = vsel %vm8205_vm1, %v7961_v38, %v13455_v34  ;;  %vm8207_vm1 = vcmask 1045509  }
 0x499   : > { %v7969_v3 = vrot.slane %v7362_v1, %v12988_v22  ;;  %v7974_v21 = vrot.slane %v7363_v29, %v13003_v49 }
 0x49a   : > { %v7147_v57 = vpop.xlane.xlu0 %7146  ;;  %v7153_v35 = vpop.xlane.xlu1 %7152 }
 0x49b   : > { %v7970_v55 = vsel %vm7546_vm0, %v7969_v3, %v7965_v19  ;;  %v7364_v9 = vadd.f32 %v12981_v7, %v7147_v57  ;;  %v7366_v26 = vadd.f32 %v12981_v7, %v7153_v35 }
 0x49c   : > { %v7975_v43 = vsel %vm7553_vm3, %v7974_v21, %v7970_v55 }
 0x49d   : > { %v7979_v59 = vrot.slane %v7364_v9, %v13000_v45  ;;  %v7989_v46 = vrot.slane %v7366_v26, %v13018_v14 }
 0x49e   : > { %v7150_v34 = vpop.xlane.xlu0 %7149  ;;  %v7159_v62 = vpop.xlane.xlu1 %7158 }
 0x49f   : > { %v7980_v15 = vsel %vm7560_vm4, %v7979_v59, %v7975_v43  ;;  %v7365_v47 = vadd.f32 %v12981_v7, %v7150_v34  ;;  %v7368_v2 = vadd.f32 %v12981_v7, %v7159_v62 }
 0x4a1   : > { %v7984_v37 = vrot.slane %v7365_v47, %v13006_v33  ;;  %v7999_v4 = vrot.slane %v7368_v2, %v13033_v36 }
 0x4a2   : > { %v7156_v41 = vpop.xlane.xlu0 %7155  ;;  %v7165_v63 = vpop.xlane.xlu1 %7164 }
 0x4a3   : > { %v7985_v42 = vsel %vm7567_vm5, %v7984_v37, %v7980_v15  ;;  %v7367_v60 = vadd.f32 %v12981_v7, %v7156_v41  ;;  %v7370_v51 = vadd.f32 %v12981_v7, %v7165_v63 }
 0x4a4   : > { %v7990_v20 = vsel %vm7574_vm6, %v7989_v46, %v7985_v42 }
 0x4a5   : > { %v7994_v40 = vrot.slane %v7367_v60, %v13025_v6  ;;  %v8009_v32 = vrot.slane %v7370_v51, %v13039_v48 }
 0x4a6   : > { %v7162_v53 = vpop.xlane.xlu0 %7161  ;;  %v7171_v58 = vpop.xlane.xlu1 %7170 }
 0x4a7   : > { %v7995_v39 = vsel %vm7581_vm7, %v7994_v40, %v7990_v20  ;;  %v7369_v54 = vadd.f32 %v12981_v7, %v7162_v53  ;;  %v7372_v5 = vadd.f32 %v12981_v7, %v7171_v58 }
 0x4a8   : > { %v8000_v44 = vsel %vm7588_vm8, %v7999_v4, %v7995_v39 }
 0x4a9   : > { %v8004_v25 = vrot.slane %v7369_v54, %v13036_v27  ;;  %v8019_v30 = vrot.slane %v7372_v5, %v13055_v8 }
 0x4aa   : > { %v7168_v31 = vpop.xlane.xlu0 %7167  ;;  %v7177_v56 = vpop.xlane.xlu1 %7176 }
 0x4ab   : > { %v8005_v23 = vsel %vm7595_vm9, %v8004_v25, %v8000_v44  ;;  %v7371_v0 = vadd.f32 %v12981_v7, %v7168_v31  ;;  %v7374_v11 = vadd.f32 %v12981_v7, %v7177_v56 }
 0x4ac   : > { %v8010_v13 = vsel %vm13910_vm10, %v8009_v32, %v8005_v23 }
 0x4ad   : > { %v8014_v24 = vrot.slane %v7371_v0, %v13042_v28  ;;  %v8029_v3 = vrot.slane %v7374_v11, %v13068_v50 }
 0x4ae   : > { %v7174_v10 = vpop.xlane.xlu0 %7173  ;;  %v7183_v16 = vpop.xlane.xlu1 %7182 }
 0x4af   : > { %v8015_v38 = vsel %vm13909_vm11, %v8014_v24, %v8010_v13  ;;  %v7373_v1 = vadd.f32 %v12981_v7, %v7174_v10  ;;  %v7376_v21 = vadd.f32 %v12981_v7, %v7183_v16 }
 0x4b0   : > { %v8020_v29 = vsel %vm7616_vm12, %v8019_v30, %v8015_v38 }
 0x4b1   : > { %v8024_v19 = vrot.slane %v7373_v1, %v13064_v18  ;;  %v8039_v26 = vrot.slane %v7376_v21, %v13159_v52 }
 0x4b2   : > { %v7180_v57 = vpop.xlane.xlu0 %7179  ;;  %v7189_v35 = vpop.xlane.xlu1 %7188 }
 0x4b3   : > { %v8025_v55 = vsel %vm7623_vm13, %v8024_v19, %v8020_v29  ;;  %v7375_v9 = vadd.f32 %v12981_v7, %v7180_v57  ;;  %v7378_v39 = vadd.f32 %v12981_v7, %v7189_v35 }
 0x4b4   : > { %v8030_v43 = vsel %vm7630_vm14, %v8029_v3, %v8025_v55 }
 0x4b5   : > { %v8034_v59 = vrot.slane %v7375_v9, %v13074_v17  ;;  %v8048_v32 = vrot.slane %v7378_v39, %v12988_v22 }
 0x4b6   : > { %v7186_v34 = vpop.xlane.xlu0 %7185  ;;  %v7195_v62 = vpop.xlane.xlu1 %7194 }
 0x4b7   : > { %v8035_v15 = vsel %vm7637_vm15, %v8034_v59, %v8030_v43  ;;  %v7377_v53 = vadd.f32 %v12981_v7, %v7186_v34  ;;  %v7380_v5 = vadd.f32 %v12981_v7, %v7195_v62 }
 0x4b8   : > { %v8040_v47 = vsel %vm7644_vm2, %v8039_v26, %v8035_v15 }
 0x4b9   : > { %v13552_v37 = vsel %vm8207_vm1, %v8040_v47, %v13505_v61  ;;  %v8044_v44 = vrot.slane %v7377_v53, %v12997_v12  ;;  %v8058_v24 = vrot.slane %v7380_v5, %v13000_v45 }
 0x4ba   : > { %v7192_v46 = vpop.xlane.xlu1 %7191 }
 0x4bb   : > { %v7198_v2 = vpop.xlane.xlu0 %7197  ;;  %v7379_v58 = vadd.f32 %v12981_v7, %v7192_v46  ;;  %v8049_v23 = vsel %vm7546_vm0, %v8048_v32, %v8044_v44 }
 0x4bc   : > { %v7381_v13 = vadd.f32 %v12981_v7, %v7198_v2 }
 0x4bd   : > { %v8053_v25 = vrot.slane %v7379_v58, %v13003_v49 }
 0x4be   : > { %v7201_v41 = vpop.xlane.xlu1 %7200  ;;  %v8063_v29 = vrot.slane %v7381_v13, %v13006_v33 }
 0x4bf   : > { %v7204_v63 = vpop.xlane.xlu0 %7203  ;;  %v8054_v0 = vsel %vm7553_vm3, %v8053_v25, %v8049_v23  ;;  %v7382_v30 = vadd.f32 %v12981_v7, %v7201_v41 }
 0x4c0   : > { %v8059_v38 = vsel %vm7560_vm4, %v8058_v24, %v8054_v0  ;;  %v7383_v3 = vadd.f32 %v12981_v7, %v7204_v63 }
 0x4c1   : > { %v8068_v19 = vrot.slane %v7382_v30, %v13018_v14  ;;  %v8064_v55 = vsel %vm7567_vm5, %v8063_v29, %v8059_v38 }
 0x4c2   : > { %v7207_v42 = vpop.xlane.xlu1 %7206  ;;  %v8073_v15 = vrot.slane %v7383_v3, %v13025_v6 }
 0x4c3   : > { %v7210_v60 = vpop.xlane.xlu0 %7209  ;;  %v7384_v9 = vadd.f32 %v12981_v7, %v7207_v42  ;;  %v8069_v62 = vsel %vm7574_vm6, %v8068_v19, %v8064_v55 }
 0x4c5   : > { %v8078_v41 = vrot.slane %v7384_v9, %v13033_v36 }
 0x4c6   : > { %v7213_v20 = vpop.xlane.xlu1 %7212 }
 0x4c7   : > { %v7216_v40 = vpop.xlane.xlu0 %7215  ;;  %v7386_v63 = vadd.f32 %v12981_v7, %v7213_v20 }
 0x4c8   : > { %v7387_v44 = vadd.f32 %v12981_v7, %v7216_v40 }
 0x4ca   : > { %v7219_v4 = vpop.xlane.xlu1 %7218  ;;  %v8093_v30 = vrot.slane %v7387_v44, %v13042_v28 }
 0x4cb   : > { %v13554_v51 = vpop.xlane.xlu0 %7221 }
 0x4ce   : > { %v13559_v54 = vpop.xlane.xlu1 %7224 }
 0x4cf   : > { %v13561_v61 = vpop.xlane.xlu0 %7230  ;;  %v7390_v29 = vadd.f32 %v12981_v7, %v13559_v54 }
 0x4d3   : > { %v13567_v31 = vpop.xlane.xlu0 %7227  ;;  %v7237_v56 = vpop.xlane.xlu1 %7236 }
 0x4d4   : > { %v7394_v1 = vadd.f32 %v12981_v7, %v7237_v56  ;;  %v8088_v56 = vrot.slane %v7386_v63, %v13039_v48 }
 0x4d6   : > { %v8127_v59 = vrot.slane %v7394_v1, %v12988_v22  ;;  %v7389_v1 = vadd.f32 %v12981_v7, %v13554_v51 }
 0x4d7   : > { %v7234_v11 = vpop.xlane.xlu0 %7233  ;;  %v7243_v10 = vpop.xlane.xlu1 %7242 }
 0x4d8   : > { %v7393_v16 = vadd.f32 %v12981_v7, %v7234_v11  ;;  %v7396_v26 = vadd.f32 %v12981_v7, %v7243_v10 }
 0x4da   : > { %v8123_v21 = vrot.slane %v7393_v16, %v12997_v12  ;;  %v7385_v12 = vadd.f32 %v12981_v7, %v7210_v60  ;;  %v8074_v60 = vsel %vm7581_vm7, %v8073_v15, %v8069_v62  ;;  %v7392_v15 = vadd.f32 %v12981_v7, %v13561_v61 }
 0x4db   : > { %v7240_v57 = vpop.xlane.xlu0 %7239  ;;  %v7249_v35 = vpop.xlane.xlu1 %7248  ;;  %v8079_v5 = vsel %vm7588_vm8, %v8078_v41, %v8074_v60 }
 0x4dc   : > { %v7395_v43 = vadd.f32 %v12981_v7, %v7240_v57  ;;  %v8128_v47 = vsel %vm7546_vm0, %v8127_v59, %v8123_v21  ;;  %v7398_v53 = vadd.f32 %v12981_v7, %v7249_v35  ;;  %v8083_v39 = vrot.slane %v7385_v12, %v13036_v27  ;;  %vm13911_vm0 = vmmov %vm13910_vm10 }
 0x4dd   : > { %v7391_v21 = vadd.f32 %v12981_v7, %v13567_v31  ;;  %v8108_v31 = vrot.slane %v7390_v29, %v13068_v50 }
 0x4de   : > { %v8132_v34 = vrot.slane %v7395_v43, %v13003_v49  ;;  %v8137_v49 = vrot.slane %v7396_v26, %v13000_v45  ;;  %v8147_v0 = vrot.slane %v7398_v53, %v13018_v14  ;;  %v8084_v24 = vsel %vm7595_vm9, %v8083_v39, %v8079_v5 }
 0x4df   : > { %v7246_v46 = vpop.xlane.xlu0 %7245  ;;  %v7255_v2 = vpop.xlane.xlu1 %7254  ;;  %v8089_v38 = vsel %vm13911_vm0, %v8088_v56, %v8084_v24  ;;  %v8103_v43 = vrot.slane %v7389_v1, %v13064_v18  ;;  %v8118_v53 = vrot.slane %v7392_v15, %v13159_v52 }
 0x4e0   : > { %v8133_v22 = vsel %vm7553_vm3, %v8132_v34, %v8128_v47  ;;  %v7397_v42 = vadd.f32 %v12981_v7, %v7246_v46  ;;  %v7400_v13 = vadd.f32 %v12981_v7, %v7255_v2  ;;  %vm13912_vm3 = vmmov %vm13909_vm11  ;;  %v8113_v34 = vrot.slane %v7391_v21, %v13074_v17 }
 0x4e1   : > { %v8138_v25 = vsel %vm7560_vm4, %v8137_v49, %v8133_v22  ;;  %v8094_v9 = vsel %vm13912_vm3, %v8093_v30, %v8089_v38  ;;  %vm13913_vm4 = vmmov %vm13911_vm0 }
 0x4e2   : > { %v8142_v58 = vrot.slane %v7397_v42, %v13006_v33  ;;  %v7388_v33 = vadd.f32 %v12981_v7, %v7219_v4  ;;  %v8157_v19 = vrot.slane %v7400_v13, %v13033_v36 }
 0x4e3   : > { %v7252_v32 = vpop.xlane.xlu0 %7251  ;;  %v7261_v20 = vpop.xlane.xlu1 %7260 }
 0x4e4   : > { %v8143_v45 = vsel %vm7567_vm5, %v8142_v58, %v8138_v25  ;;  %v7399_v23 = vadd.f32 %v12981_v7, %v7252_v32  ;;  %v7402_v3 = vadd.f32 %v12981_v7, %v7261_v20  ;;  %vm13914_vm5 = vmmov %vm13912_vm3 }
 0x4e5   : > { %v8148_v11 = vsel %vm7574_vm6, %v8147_v0, %v8143_v45  ;;  %vm8209_vm6 = vcmask 1046534  }
 0x4e6   : > { %v8152_v40 = vrot.slane %v7399_v23, %v13025_v6  ;;  %v8098_v6 = vrot.slane %v7388_v33, %v13055_v8 }
 0x4e7   : > { %v7258_v10 = vpop.xlane.xlu0 %7257  ;;  %v7267_v16 = vpop.xlane.xlu1 %7266 }
 0x4e8   : > { %v8153_v14 = vsel %vm7581_vm7, %v8152_v40, %v8148_v11  ;;  %v7401_v4 = vadd.f32 %v12981_v7, %v7258_v10  ;;  %v8099_v59 = vsel %vm7616_vm12, %v8098_v6, %v8094_v9  ;;  %v7404_v26 = vadd.f32 %v12981_v7, %v7267_v16 }
 0x4e9   : > { %v8158_v51 = vsel %vm7588_vm8, %v8157_v19, %v8153_v14  ;;  %vm8211_vm7 = vcmask 1047559  }
 0x4ea   : > { %v8162_v57 = vrot.slane %v7401_v4, %v13036_v27  ;;  %v8167_v27 = vrot.slane %v7402_v3, %v13039_v48  ;;  %v8104_v48 = vsel %vm7623_vm13, %v8103_v43, %v8099_v59  ;;  %v8177_v22 = vrot.slane %v7404_v26, %v13055_v8 }
 0x4eb   : > { %v7264_v35 = vpop.xlane.xlu0 %7263  ;;  %v7273_v55 = vpop.xlane.xlu1 %7272  ;;  %v8109_v61 = vsel %vm7630_vm14, %v8108_v31, %v8104_v48 }
 0x4ec   : > { %v8163_v54 = vsel %vm7595_vm9, %v8162_v57, %v8158_v51  ;;  %v7403_v36 = vadd.f32 %v12981_v7, %v7264_v35  ;;  %v7406_v47 = vadd.f32 %v12981_v7, %v7273_v55  ;;  %v8114_v42 = vsel %vm7637_vm15, %v8113_v34, %v8109_v61 }
 0x4ed   : > { %v8168_v12 = vsel %vm13913_vm4, %v8167_v27, %v8163_v54  ;;  %v8119_v20 = vsel %vm7644_vm2, %v8118_v53, %v8114_v42 }
 0x4ee   : > { %v8172_v62 = vrot.slane %v7403_v36, %v13042_v28  ;;  %v8187_v58 = vrot.slane %v7406_v47, %v13068_v50 }
 0x4ef   : > { %v7270_v46 = vpop.xlane.xlu0 %7269  ;;  %v7276_v2 = vpop.xlane.xlu1 %7275 }
 0x4f0   : > { %v8173_v41 = vsel %vm13914_vm5, %v8172_v62, %v8168_v12  ;;  %v7405_v63 = vadd.f32 %v12981_v7, %v7270_v46  ;;  %v7407_v28 = vadd.f32 %v12981_v7, %v7276_v2 }
 0x4f1   : > { %v8178_v60 = vsel %vm7616_vm12, %v8177_v22, %v8173_v41 }
 0x4f2   : > { %v8182_v49 = vrot.slane %v7405_v63, %v13064_v18  ;;  %v8192_v25 = vrot.slane %v7407_v28, %v13074_v17  ;;  %v8210_v17 = vsel %vm8209_vm6, %v8119_v20, %v13552_v37 }
 0x4f3   : > { %v7279_v39 = vpop.xlane.xlu0 %7278 }
 0x4f4   : > { %v8183_v44 = vsel %vm7623_vm13, %v8182_v49, %v8178_v60  ;;  %v7408_v32 = vadd.f32 %v12981_v7, %v7279_v39 }
 0x4f5   : > { %v8188_v8 = vsel %vm7630_vm14, %v8187_v58, %v8183_v44 }
 0x4f6   : > { %v8193_v18 = vsel %vm7637_vm15, %v8192_v25, %v8188_v8  ;;  %v8197_v50 = vrot.slane %v7408_v32, %v13159_v52 }
 0x4f8   : > { %v8198_v5 = vsel %vm7644_vm2, %v8197_v50, %v8193_v18 }
 0x4f9   : > { %v8212_v7 = vsel %vm8211_vm7, %v8198_v5, %v8210_v17 }
 0x4fa   : > { %8214 = vst [vmem:[%s316_s13] sm:$0xff] %v8212_v7 }
 0x4fb   : > { %10495 = shalt.err (!%p10492_p3)
}
 0x4fc   : > { %s10496_s18 = scalar_lea.hbm %s13671_s24, 128  ;;  %s10500_s19 = scalar_lea.hbm %s13716_s8, 384 }
 0x4fd   : > { %p10497_p4 = scmp.ne.s32.totalorder %s13671_s24, %s10496_s18  ;;  %p10501_p9 = scmp.lt.s32.totalorder %s13671_s24, %s13716_s8 }
 0x4fe   : > { %p10502_p10 = scmp.lt.s32.totalorder %s10500_s19, %s10496_s18 }
 0x4ff   : > { %p10498_p7 = pnand %p10497_p4, %p10630_p5 }
 0x500   : > { %p10503_p11 = por %p10502_p10, %p10501_p9 }
 0x501   : > { %p10499_p8 = pneg %p10498_p7 }
 0x503   : > { %p10504_p12 = pnand %p10503_p11, %p10499_p8 }
 0x505   : > { %10507 = shalt.err (!%p10504_p12)
}
 0x506   : > { %10435 = dma.vmem_to_hbm [thread:$0]  (%p10630_p5), %s8230_s20, 128, %s13671_s24, %s8216_s25  }
 0x507 PF: > { %p10441_p13 = scmp.ge.s32.totalorder %s10542_s10, 2  ;;  %s8241_s21 = sand.u32 1, %s10530_s29  }
 0x508   : > { %s8242_s22 = scalar_lea.sflag [#allocation4], %s8241_s21 }
 0x509   : > { %p10438_p0 = pnand %p10441_p13, %p10634_p6 }
 0x50b   : > { %p10439_p1 = pneg %p10438_p0 }
 0x50d   : > { %10525 = dma.done.wait (%p10439_p1), %s8242_s22, 128  }
 0x50e   : > { %10527 = vsyncadd (%p10439_p1), %s8242_s22, 4294967168  ;;  %p19_p2 = scmp.ge.s32.totalorder %s10618_s12, 5   ;;  %s13915_s29 = smov %s10534_s30 }
 0x50f   : > { %s13916_s30 = smov %s10538_s9  ;;  %s13917_s9 = smov %s10628_s15 }
 0x510   : > { %s13918_s10 = smov %s10618_s12  ;;  %21 = sbr.rel (!%p19_p2) target bundleno = 5 (0x5), region = 90 }
 0x515   :  { %8247 = vsyncpa [#allocation4], 1 }
 0x516   :  { %8249 = vsyncpa [#allocation4 + $0x1], 1 }

</bundles_post_ra>
